<compile_context>
chip_gen: v7x
topology: tpu7x:2x2x1
jax: 0.10.0
libtpu: 0.0.40
codegen_flags: <defaults>
</compile_context>

<pallas_src>
import functools
from typing import NamedTuple

import jax
import jax.numpy as jnp
from jax.experimental import pallas as pl
from jax.experimental.pallas import tpu as pltpu

SEQ_LEN = 100          # hardcoded in the PyTorch module
EMBED_DIM = 1024       # ELMo embedding size (Linear(1024, 2000))
HIDDEN = 2000
NUM_CLASSES = 10
BN_EPS = 1e-5


class SWEMParams(NamedTuple):
    """Pre-padded / pre-cast parameters (build once with prepare_swem_params)."""
    w1: jax.Array      # (D, H_pad)      weights_dtype
    gamma: jax.Array   # (1, H_pad)      f32  (padding = 1)
    beta: jax.Array    # (1, H_pad)      f32  (padding = 0)
    w2: jax.Array      # (H_pad, NC_pad) weights_dtype (padded rows = 0)
    b2: jax.Array      # (1, NC_pad)     f32


def prepare_swem_params(w1, b1, gamma, beta, w2, b2, *, tile_h=1024, cores=2,
                        weights_dtype=jnp.bfloat16):
    """Pad + cast parameters ONCE (model init), not per forward call.

    w1: (D, H), b1: (H,) or (1, H), gamma/beta: (H,), w2: (H, NC),
    b2: (NC,) or (1, NC).  Linear weights are stored (in, out).

    b1 is accepted but dropped: a per-feature bias added before *train-mode*
    BatchNorm cancels exactly.  If eval-mode running statistics are ever used,
    b1 must be reinstated.
    """
    del b1  # cancels under train-mode BatchNorm (see docstring)
    D, H = w1.shape
    NC = w2.shape[1]
    step = tile_h * cores
    H_pad = -(-H // step) * step            # multiple of cores*tile_h (2048)
    NC_pad = -(-NC // 128) * 128            # lane-dense classifier slab

    w1p = jnp.zeros((D, H_pad), weights_dtype).at[:, :H].set(
        w1.astype(weights_dtype))
    # Padding invariant: gamma_pad=1, beta_pad=0, w2 pad rows=0 -> padded
    # (zero-variance) hidden columns remain exactly zero through BN/ReLU/w2.
    gmp = jnp.ones((1, H_pad), jnp.float32).at[:, :H].set(
        gamma.reshape(1, H).astype(jnp.float32))
    btp = jnp.zeros((1, H_pad), jnp.float32).at[:, :H].set(
        beta.reshape(1, H).astype(jnp.float32))
    w2p = jnp.zeros((H_pad, NC_pad), weights_dtype).at[:H, :NC].set(
        w2.astype(weights_dtype))
    b2p = jnp.zeros((1, NC_pad), jnp.float32).at[:, :NC].set(
        b2.reshape(1, NC).astype(jnp.float32))
    return SWEMParams(w1p, gmp, btp, w2p, b2p)


def _swem_kernel(pooled_ref, w1_ref, gamma_ref, beta_ref, w2_ref, out_ref):
    """One hidden-dimension tile (for one core) of the SWEM forward pass.

    Grid: (core, hidden_tile).  The pooled block and the per-core output
    block keep a constant block index along the hidden axis (resident in
    VMEM); w1/gamma/beta/w2 tiles stream through double-buffered VMEM.
    """
    @pl.when(pl.program_id(1) == 0)
    def _init():
        out_ref[...] = jnp.zeros_like(out_ref)

    # fc[0] tile: Linear(D, tile_h).  b1 omitted — it cancels exactly under
    # the train-mode BatchNorm that follows.
    h = jnp.dot(pooled_ref[...], w1_ref[...],
                preferred_element_type=jnp.float32)          # (B, tile_h) f32

    # fc[1] tile: BatchNorm1d (train-mode batch statistics).  Stats are
    # per-hidden-feature over the full (resident) batch, so tiling the hidden
    # axis — and splitting it across cores — is exact.
    mean = jnp.mean(h, axis=0, keepdims=True)                # (1, tile_h)
    centered = h - mean
    var = jnp.mean(centered * centered, axis=0, keepdims=True)   # biased var
    h = centered * (gamma_ref[...] * jax.lax.rsqrt(var + BN_EPS)) + beta_ref[...]

    # fc[2]: ReLU (f32 on the VPU — no bf16 element-wise work, v5e-safe).
    h = jnp.maximum(h, 0.0)

    # fc[3] tile: partial Linear(tile_h, NC_pad); accumulate into the
    # resident, lane-dense (128-wide) f32 per-core output block.
    out_ref[...] += jnp.dot(h.astype(w2_ref.dtype), w2_ref[...],
                            preferred_element_type=jnp.float32)


@functools.partial(jax.jit,
                   static_argnames=("swem_type", "num_classes", "tile_h", "cores"))
def swem_forward(x, params: SWEMParams, *, swem_type, num_classes,
                 tile_h=1024, cores=2):
    """x: (B, L, D) f32 -> logits (B, num_classes) f32.

    `params` must come from prepare_swem_params(..., tile_h=tile_h, cores=cores).
    """
    assert tile_h % 128 == 0, "hidden tile must be lane-aligned"
    B, L, D = x.shape
    H_pad = params.w1.shape[1]
    NC_pad = params.w2.shape[1]
    assert params.w1.shape[0] == D
    assert H_pad % (tile_h * cores) == 0, "params were prepared for other tiling"

    # Pooling (== MaxPool1d / AvgPool1d(kernel=L) on the permuted tensor) done
    # in XLA at full HBM bandwidth; cast once to the weight-streaming dtype so
    # the kernel never re-casts per grid step.
    pooled = jnp.max(x, axis=1) if swem_type == "max" else jnp.mean(x, axis=1)
    pooled = pooled.astype(params.w1.dtype)                  # (B, D)

    tiles_per_core = (H_pad // tile_h) // cores

    grid_spec = pltpu.PrefetchScalarGridSpec(
        num_scalar_prefetch=0,
        grid=(cores, tiles_per_core),
        in_specs=[
            # pooled: constant block index -> fetched once, resident.
            pl.BlockSpec((B, D), lambda c, j: (0, 0)),
            # Streamed hidden-dimension tiles (double-buffered by Pallas).
            pl.BlockSpec((D, tile_h),
                         lambda c, j: (0, c * tiles_per_core + j)),      # w1
            pl.BlockSpec((1, tile_h),
                         lambda c, j: (0, c * tiles_per_core + j)),      # gamma
            pl.BlockSpec((1, tile_h),
                         lambda c, j: (0, c * tiles_per_core + j)),      # beta
            pl.BlockSpec((tile_h, NC_pad),
                         lambda c, j: (c * tiles_per_core + j, 0)),      # w2
        ],
        # Per-core resident f32 accumulator across the hidden-reduction axis.
        out_specs=pl.BlockSpec((None, B, NC_pad), lambda c, j: (c, 0, 0)),
    )

    partials = pl.pallas_call(
        _swem_kernel,
        out_shape=jax.ShapeDtypeStruct((cores, B, NC_pad), jnp.float32),
        grid_spec=grid_spec,
        compiler_params=pltpu.CompilerParams(
            # Core axis is independent (megacore-shardable on v7x); the hidden
            # axis reduces into the resident per-core output block.
            dimension_semantics=("parallel", "arbitrary"),
            # ~5 MB (bf16) / ~10 MB (f32) actual footprint; 32 MiB fits every
            # generation's physical VMEM (v7x: 64 MiB) with headroom.
            vmem_limit_bytes=32 * 1024 * 1024,
        ),
    )(pooled, params.w1, params.gamma, params.beta, params.w2)

    # Cheap cross-core combine + output bias, fused by XLA under this jit.
    logits = jnp.sum(partials, axis=0) + params.b2           # (B, NC_pad)
    return logits[:, :num_classes]


def _reference(x, w1, b1, gamma, beta, w2, b2, *, swem_type="max"):
    pooled = jnp.max(x, axis=1) if swem_type == "max" else jnp.mean(x, axis=1)
    h = pooled @ w1 + b1
    mean = jnp.mean(h, axis=0, keepdims=True)
    var = jnp.mean((h - mean) ** 2, axis=0, keepdims=True)
    h = (h - mean) / jnp.sqrt(var + BN_EPS) * gamma.reshape(1, -1) \
        + beta.reshape(1, -1)
    h = jnp.maximum(h, 0.0)
    return h @ w2 + b2.reshape(1, -1)


if __name__ == "__main__":
    key = jax.random.PRNGKey(0)
    kx, kw1, kb1, kw2, kb2 = jax.random.split(key, 5)

    B = 8
    x = jax.random.normal(kx, (B, SEQ_LEN, EMBED_DIM), dtype=jnp.float32)

    # Deterministic parameter init (PyTorch-style uniform for Linear layers,
    # ones/zeros for BatchNorm affine params).  Linear weights stored (in, out).
    lim1 = 1.0 / (EMBED_DIM ** 0.5)
    w1 = jax.random.uniform(kw1, (EMBED_DIM, HIDDEN), jnp.float32, -lim1, lim1)
    b1 = jax.random.uniform(kb1, (1, HIDDEN), jnp.float32, -lim1, lim1)
    gamma = jnp.ones((HIDDEN,), jnp.float32)
    beta = jnp.zeros((HIDDEN,), jnp.float32)
    lim2 = 1.0 / (HIDDEN ** 0.5)
    w2 = jax.random.uniform(kw2, (HIDDEN, NUM_CLASSES), jnp.float32, -lim2, lim2)
    b2 = jax.random.uniform(kb2, (1, NUM_CLASSES), jnp.float32, -lim2, lim2)

    # Padded/cast params built ONCE and reused for every forward call.
    params_bf16 = jax.block_until_ready(
        prepare_swem_params(w1, b1, gamma, beta, w2, b2))    # default bf16
    params_f32 = jax.block_until_ready(
        prepare_swem_params(w1, b1, gamma, beta, w2, b2,
                            weights_dtype=jnp.float32))

    for swem_type in ("max", "ave"):
        ref = _reference(x, w1, b1, gamma, beta, w2, b2, swem_type=swem_type)

        # f32 weight path: bit-faithful matmuls (b1 cancels under train BN).
        out32 = jax.block_until_ready(
            swem_forward(x, params_f32, swem_type=swem_type,
                         num_classes=NUM_CLASSES))
        assert out32.shape == (B, NUM_CLASSES)
        assert jnp.allclose(out32, ref, atol=1e-3, rtol=1e-3), (
            f"f32 mismatch for swem_type={swem_type}")

        # Default bf16 weight-streaming path (activations at the MXU inputs
        # are bf16 too) — looser tolerance.
        out16 = jax.block_until_ready(
            swem_forward(x, params_bf16, swem_type=swem_type,
                         num_classes=NUM_CLASSES))
        assert out16.shape == (B, NUM_CLASSES)
        assert jnp.allclose(out16, ref, atol=5e-2, rtol=5e-2), (
            f"bf16 mismatch for swem_type={swem_type}")

    print("KERNEL_OK")
</pallas_src>

<mosaic_0001>
module attributes {stable_mosaic.version = 11 : i64} {
  func.func @_swem_kernel(%arg0: i32, %arg1: i32, %arg2: memref<8x1024xf32, #tpu.memory_space<vmem>>, %arg3: memref<1024x1024xf32, #tpu.memory_space<vmem>>, %arg4: memref<1x1024xf32, #tpu.memory_space<vmem>>, %arg5: memref<1x1024xf32, #tpu.memory_space<vmem>>, %arg6: memref<1024x128xf32, #tpu.memory_space<vmem>>, %arg7: memref<1x8x128xf32, #tpu.memory_space<vmem>>) attributes {dimension_semantics = [#tpu.dimension_semantics<parallel>, #tpu.dimension_semantics<arbitrary>], iteration_bounds = array<i64: 2, 1>, scalar_prefetch = 0 : i64, scratch_operands = 0 : i64, tpu.core_type = #tpu.core_type<tc>, window_params = [{pipeline_mode = #tpu.pipeline_mode<synchronous>, transform_indices = @transform_0, window_bounds = array<i64: 8, 1024>}, {transform_indices = @transform_1, window_bounds = array<i64: 1024, 1024>}, {transform_indices = @transform_2, window_bounds = array<i64: 1, 1024>}, {transform_indices = @transform_3, window_bounds = array<i64: 1, 1024>}, {transform_indices = @transform_4, window_bounds = array<i64: 1024, 128>}, {transform_indices = @transform_5, window_bounds = array<i64: 1, 8, 128>}]} {
    %c0_i32 = arith.constant 0 : i32
    %0 = arith.cmpi eq, %arg1, %c0_i32 : i32
    %1 = arith.extui %0 : i1 to i32
    %c0_i32_0 = arith.constant 0 : i32
    %2 = arith.cmpi ne, %1, %c0_i32_0 : i32
    scf.if %2 {
      %cst_23 = arith.constant 0.000000e+00 : f32
      %37 = vector.broadcast %cst_23 : f32 to vector<8x128xf32>
      %c0_24 = arith.constant 0 : index
      %c0_25 = arith.constant 0 : index
      %c0_26 = arith.constant 0 : index
      %38 = vector.load %arg7[%c0_24, %c0_25, %c0_26] : memref<1x8x128xf32, #tpu.memory_space<vmem>>, vector<1x8x128xf32>
      %39 = vector.shape_cast %38 : vector<1x8x128xf32> to vector<8x128xf32>
      %40 = vector.shape_cast %37 : vector<8x128xf32> to vector<1x8x128xf32>
      tpu.vector_store %arg7[%c0_24, %c0_25, %c0_26], %40 {strides = array<i32>} : memref<1x8x128xf32, #tpu.memory_space<vmem>>, vector<1x8x128xf32>,
    } else {
    }
    %c0 = arith.constant 0 : index
    %c0_1 = arith.constant 0 : index
    %3 = vector.load %arg2[%c0, %c0_1] : memref<8x1024xf32, #tpu.memory_space<vmem>>, vector<8x1024xf32>
    %c0_2 = arith.constant 0 : index
    %c0_3 = arith.constant 0 : index
    %4 = vector.load %arg3[%c0_2, %c0_3] : memref<1024x1024xf32, #tpu.memory_space<vmem>>, vector<1024x1024xf32>
    %cst = arith.constant dense<0.000000e+00> : vector<8x1024xf32>
    %5 = tpu.matmul %3, %4, %cst {dimension_numbers = #tpu.dot_dimension_numbers<[1], [0], [0], [1], [0, 0, 1, 1], [], []>} : vector<8x1024xf32>, vector<1024x1024xf32>, vector<8x1024xf32> -> vector<8x1024xf32>
    %cst_4 = arith.constant dense<0.000000e+00> : vector<1024xf32>
    %6 = vector.multi_reduction <add>, %5, %cst_4 [0] : vector<8x1024xf32> to vector<1024xf32>
    %7 = vector.shape_cast %6 : vector<1024xf32> to vector<1x1024xf32>
    %cst_5 = arith.constant 8.000000e+00 : f32
    %8 = vector.broadcast %cst_5 : f32 to vector<1x1024xf32>
    %9 = arith.divf %7, %8 : vector<1x1024xf32>
    %10 = vector.broadcast %9 : vector<1x1024xf32> to vector<8x1024xf32>
    %11 = arith.subf %5, %10 : vector<8x1024xf32>
    %12 = arith.mulf %11, %11 : vector<8x1024xf32>
    %cst_6 = arith.constant dense<0.000000e+00> : vector<1024xf32>
    %13 = vector.multi_reduction <add>, %12, %cst_6 [0] : vector<8x1024xf32> to vector<1024xf32>
    %14 = vector.shape_cast %13 : vector<1024xf32> to vector<1x1024xf32>
    %cst_7 = arith.constant 8.000000e+00 : f32
    %15 = vector.broadcast %cst_7 : f32 to vector<1x1024xf32>
    %16 = arith.divf %14, %15 : vector<1x1024xf32>
    %c0_8 = arith.constant 0 : index
    %c0_9 = arith.constant 0 : index
    %17 = vector.load %arg4[%c0_8, %c0_9] : memref<1x1024xf32, #tpu.memory_space<vmem>>, vector<1x1024xf32>
    %cst_10 = arith.constant 9.99999974E-6 : f32
    %18 = vector.broadcast %cst_10 : f32 to vector<1x1024xf32>
    %19 = arith.addf %16, %18 : vector<1x1024xf32>
    %20 = math.rsqrt %19 : vector<1x1024xf32>
    %21 = arith.mulf %17, %20 : vector<1x1024xf32>
    %22 = vector.broadcast %21 : vector<1x1024xf32> to vector<8x1024xf32>
    %23 = arith.mulf %11, %22 : vector<8x1024xf32>
    %c0_11 = arith.constant 0 : index
    %c0_12 = arith.constant 0 : index
    %24 = vector.load %arg5[%c0_11, %c0_12] : memref<1x1024xf32, #tpu.memory_space<vmem>>, vector<1x1024xf32>
    %25 = vector.broadcast %24 : vector<1x1024xf32> to vector<8x1024xf32>
    %26 = arith.addf %23, %25 : vector<8x1024xf32>
    %cst_13 = arith.constant 0.000000e+00 : f32
    %27 = vector.broadcast %cst_13 : f32 to vector<8x1024xf32>
    %28 = arith.maximumf %26, %27 : vector<8x1024xf32>
    %c0_14 = arith.constant 0 : index
    %c0_15 = arith.constant 0 : index
    %c0_16 = arith.constant 0 : index
    %29 = vector.load %arg7[%c0_14, %c0_15, %c0_16] : memref<1x8x128xf32, #tpu.memory_space<vmem>>, vector<1x8x128xf32>
    %30 = vector.shape_cast %29 : vector<1x8x128xf32> to vector<8x128xf32>
    %c0_17 = arith.constant 0 : index
    %c0_18 = arith.constant 0 : index
    %31 = vector.load %arg6[%c0_17, %c0_18] : memref<1024x128xf32, #tpu.memory_space<vmem>>, vector<1024x128xf32>
    %cst_19 = arith.constant dense<0.000000e+00> : vector<8x128xf32>
    %32 = tpu.matmul %28, %31, %cst_19 {dimension_numbers = #tpu.dot_dimension_numbers<[1], [0], [0], [1], [0, 0, 1, 1], [], []>} : vector<8x1024xf32>, vector<1024x128xf32>, vector<8x128xf32> -> vector<8x128xf32>
    %33 = arith.addf %30, %32 : vector<8x128xf32>
    %c0_20 = arith.constant 0 : index
    %c0_21 = arith.constant 0 : index
    %c0_22 = arith.constant 0 : index
    %34 = vector.load %arg7[%c0_20, %c0_21, %c0_22] : memref<1x8x128xf32, #tpu.memory_space<vmem>>, vector<1x8x128xf32>
    %35 = vector.shape_cast %34 : vector<1x8x128xf32> to vector<8x128xf32>
    %36 = vector.shape_cast %33 : vector<8x128xf32> to vector<1x8x128xf32>
    tpu.vector_store %arg7[%c0_20, %c0_21, %c0_22], %36 {strides = array<i32>} : memref<1x8x128xf32, #tpu.memory_space<vmem>>, vector<1x8x128xf32>,
    return
  }
  func.func @transform_0(%arg0: i32, %arg1: i32) -> (i32, i32) {
    %c0_i32 = arith.constant 0 : i32
    %c0_i32_0 = arith.constant 0 : i32
    %c0_i32_1 = arith.constant 0 : i32
    return %c0_i32, %c0_i32_0 : i32, i32
  }
  func.func @transform_1(%arg0: i32, %arg1: i32) -> (i32, i32) {
    %c1_i32 = arith.constant 1 : i32
    %0 = arith.muli %arg0, %c1_i32 : i32
    %1 = arith.addi %0, %arg1 : i32
    %c0_i32 = arith.constant 0 : i32
    %c0_i32_0 = arith.constant 0 : i32
    return %c0_i32, %1 : i32, i32
  }
  func.func @transform_2(%arg0: i32, %arg1: i32) -> (i32, i32) {
    %c1_i32 = arith.constant 1 : i32
    %0 = arith.muli %arg0, %c1_i32 : i32
    %1 = arith.addi %0, %arg1 : i32
    %c0_i32 = arith.constant 0 : i32
    %c0_i32_0 = arith.constant 0 : i32
    return %c0_i32, %1 : i32, i32
  }
  func.func @transform_3(%arg0: i32, %arg1: i32) -> (i32, i32) {
    %c1_i32 = arith.constant 1 : i32
    %0 = arith.muli %arg0, %c1_i32 : i32
    %1 = arith.addi %0, %arg1 : i32
    %c0_i32 = arith.constant 0 : i32
    %c0_i32_0 = arith.constant 0 : i32
    return %c0_i32, %1 : i32, i32
  }
  func.func @transform_4(%arg0: i32, %arg1: i32) -> (i32, i32) {
    %c1_i32 = arith.constant 1 : i32
    %0 = arith.muli %arg0, %c1_i32 : i32
    %1 = arith.addi %0, %arg1 : i32
    %c0_i32 = arith.constant 0 : i32
    %c0_i32_0 = arith.constant 0 : i32
    return %1, %c0_i32 : i32, i32
  }
  func.func @transform_5(%arg0: i32, %arg1: i32) -> (i32, i32, i32) {
    %c0_i32 = arith.constant 0 : i32
    %c0_i32_0 = arith.constant 0 : i32
    %c0_i32_1 = arith.constant 0 : i32
    return %arg0, %c0_i32, %c0_i32_0 : i32, i32, i32
  }
}

</mosaic_0001>

<bundles_post_ra>
// kernel: swem_forward.1
= control target key start
LH: loop header
LB: loop body
LE: loop exit
PB: predicated region body
PF: predicated region fallthrough
CT: control target
= control target key end

     0   :  { %s6655_s0 = inlined_call_operand.vmem [shape: f32[8,1024], index: 0, kind: input, shape index: {}]   ;;  %s6656_s1 = inlined_call_operand.hbm [shape: f32[1024,2048], index: 1, kind: input, shape index: {}]   ;;  %s6657_s2 = inlined_call_operand.hbm [shape: f32[1,2048], index: 2, kind: input, shape index: {}]   ;;  %s6658_s3 = inlined_call_operand.hbm [shape: f32[1,2048], index: 3, kind: input, shape index: {}]   ;;  %s6659_s4 = inlined_call_operand.hbm [shape: f32[2048,128], index: 4, kind: input, shape index: {}]   ;;  %s6660_s5 = inlined_call_operand.vmem [shape: f32[2,8,128], index: 5, kind: output, shape index: {}]  }
   0x1   :  { %6668 = sst [smem:[#allocation15_spill]] %s6656_s1 }
   0x2   :  { %6669 = sst [smem:[#allocation16_spill]] %s6657_s2 }
   0x3   :  { %10 = vsyncpa [#allocation3], 0 }
   0x4   :  { %12 = vsyncpa [#allocation3 + $0x1], 0 }
   0x5   :  { %13 = vsyncpa [#allocation5], 0 }
   0x6   :  { %15 = vsyncpa [#allocation5 + $0x1], 0 }
   0x7   :  { %16 = vsyncpa [#allocation8], 0 }
   0x8   :  { %18 = vsyncpa [#allocation8 + $0x1], 0  ;;  %s5092_s18 = smov 0   ;;  %s5094_s19 = smov 0  }
   0x9   :  { %s5096_s20 = smov 0   ;;  %s5098_s21 = smov 0  }
   0xa   :  { %s5100_s22 = smov 0   ;;  %s5102_s23 = smov 0  }
   0xb LB: > { %6670 = sst [smem:[#allocation12_spill]] %s5038_s20  ;;  %s6662_s24 = sadd.s32 4294967295, %s5050_s23   ;;  %s5050_s23 = sphi %s5102_s23, %s24_s23   ;;  %s5046_s22 = sphi %s5100_s22, %s6690_s22   ;;  %s5042_s21 = sphi %s5098_s21, %s6689_s21   ;;  %s5038_s20 = sphi %s5096_s20, %s6685_s20   ;;  %s5034_s19 = sphi %s5094_s19, %s6688_s19   ;;  %s5030_s18 = sphi %s5092_s18, %s6687_s18  }
   0xc   : > { %s36_s25 = sadd.s32 1, %s5046_s22  ;;  %s66_s26 = sadd.s32 1, %s5038_s20 }
   0xd   : > { %p38_p0 = scmp.ge.s32.totalorder %s36_s25, 2  ;;  %p73_p1 = scmp.ne.s32.totalorder %s5038_s20, %s5034_s19 }
   0xe   : > { %p74_p2 = scmp.eq.s32.totalorder %s5050_s23, 0  ;;  %p79_p4 = scmp.ne.s32.totalorder %s5034_s19, %s5030_s18 }
   0xf   : > { %s6692_s25 = smov (%p38_p0, %s36_s25), 0  ;;  %p80_p5 = scmp.eq.s32.totalorder %s6662_s24, 0 }
  0x10   : > { %6671 = sst [smem:[#allocation13_spill]] %s6692_s25  ;;  %p75_p3 = por %p74_p2, %p73_p1 }
  0x11   : > { %s63_s27 = ssub.s32 %s5046_s22, %s6692_s25  ;;  %p5133_p7 = por %p80_p5, %p79_p4 }
  0x12   : > { %p64_p6 = scmp.eq.s32.totalorder %s63_s27, 0  ;;  %p4792_p8 = scmp.lt.s32.totalorder %s5050_s23, 2 }
  0x13   : > { %s6672_s28 = scalar_select %p5133_p7, 1, 0 }
  0x14   : > { %s5139_s29 = scalar_select %p64_p6, %s5038_s20, %s66_s26  }
  0x15   : > { %s5142_s30 = sand.u32 1, %s5038_s20   ;;  %p5144_p9 = pnand %p4792_p8, %p75_p3 }
  0x16   : > { %6673 = sst [smem:[#allocation14_spill]] %s5139_s29  ;;  %s238_s7 = sand.u32 1, %s5050_s23  }
  0x17   : > { %s6674_s6 = scalar_select %p5144_p9, 1, 0 }
  0x18   : > { %s6663_s8 = sshll.u32 %s5142_s30, 3  ;;  %s3452_s9 = sshll.u32 %s5046_s22, 7 }
  0x19   : > { %s6675_s2 = sld [smem:[#allocation16_spill]]  ;;  %s242_s13 = scalar_lea.vmem [#allocation4], %s6663_s8 }
  0x1a   : > { %s251_s14 = sshll.u32 %s242_s13, 4  ;;  %s5162_s15 = scalar_lea.sflag [#allocation5], %s238_s7  ;;  %s5160_s14 = int_to_ptr.vmem [resolvable:$true] %s251_s14 }
  0x1b   : > { %p5168_p11 = pneg %p5144_p9 }
  0x1f   : > { %s5156_s12 = scalar_lea.hbm %s6675_s2, %s3452_s9  ;;  %s4877_s27 = scalar_lea.hbm %s6675_s2, 256 }
  0x20   : > { %s4872_s16 = scalar_lea.hbm %s5156_s12, 128  ;;  %p4878_p0 = scmp.lt.u32.totalorder %s5156_s12, %s6675_s2 }
  0x21   : > { %p4873_p10 = scmp.ne.s32.totalorder %s5156_s12, %s4872_s16  ;;  %p4879_p1 = scmp.lt.u32.totalorder %s4877_s27, %s4872_s16 }
  0x22   : > { %p4881_p3 = scmp.lt.u32.totalorder %s4872_s16, %s5156_s12 }
  0x23   : > { %p4875_p12 = pnand %p5168_p11, %p4873_p10  ;;  %p4880_p2 = por %p4879_p1, %p4878_p0 }
  0x25   : > { %p4876_p13 = pneg %p4875_p12  ;;  %p4882_p4 = por %p4881_p3, %p4880_p2 }
  0x27   : > { %p4883_p5 = pnand %p4882_p4, %p4876_p13 }
  0x29   : > { %4886 = shalt.err (!%p4883_p5)
}
  0x2a   : > { %s4887_s7 = scalar_lea.vmem %s5160_s14, 128  ;;  %s5052_s13 = smov [#allocation4]  }
  0x2b   : > { %p4888_p6 = scmp.ne.s32.totalorder %s5160_s14, %s4887_s7  ;;  %s4892_s18 = sshll.u32 %s5052_s13, 4  ;;  %s4893_s18 = int_to_ptr.vmem [resolvable:$false] %s4892_s18 }
  0x2c   : > { %s4894_s26 = scalar_lea.vmem %s4893_s18, 256  ;;  %p4895_p12 = scmp.lt.s32.totalorder %s5160_s14, %s4893_s18 }
  0x2d   : > { %p4890_p8 = pnand %p4888_p6, %p5168_p11  ;;  %p4896_p7 = scmp.lt.s32.totalorder %s4894_s26, %s4887_s7 }
  0x2f   : > { %p4891_p10 = pneg %p4890_p8  ;;  %p4897_p0 = por %p4896_p7, %p4895_p12 }
  0x31   : > { %p4898_p1 = pnand %p4897_p0, %p4891_p10 }
  0x33   : > { %4901 = shalt.err (!%p4898_p1)
}
  0x34   : > { %4785 = dma.hbm_to_vmem [thread:$0]  (!%p5144_p9), %s5156_s12, 128, %s5160_s14, %s5162_s15  }
  0x35   : > { %s5197_s10 = scalar_lea.hbm %s6658_s3, %s3452_s9  ;;  %p3443_p7 = scmp.ge.s32.totalorder %s5050_s23, 1 }
  0x36   : > { %p298_p13 = scmp.lt.s32.totalorder %s5050_s23, 3  ;;  %s3431_s7 = sshll.u32 %s5142_s30, 13 }
  0x37   : > { %s3451_s13 = sshll.u32 %s5046_s22, 10  ;;  %s6678_s1 = sld [smem:[#allocation15_spill]] }
  0x38   : > { %p5201_p2 = pnand %p3443_p7, %p298_p13  ;;  %s220_s12 = scalar_lea.vmem [#allocation2], %s3431_s7 }
  0x39   : > { %s228_s9 = sshll.u32 %s220_s12, 4  ;;  %s217_s14 = scalar_lea.sflag [#allocation3], %s5142_s30  ;;  %s5212_s9 = int_to_ptr.vmem [resolvable:$true] %s228_s9 }
  0x3a   : > { %s6677_s11 = scalar_select %p5201_p2, 1, 0 }
  0x3d   : > { %s5210_s24 = scalar_lea.hbm %s6678_s1, %s3451_s13  ;;  %s4907_s18 = scalar_lea.hbm %s6678_s1, 262144 }
  0x3e   : > { %s4902_s16 = scalar_lea.hbm %s5210_s24, 131072  ;;  %p4908_p6 = scmp.lt.u32.totalorder %s5210_s24, %s6678_s1 }
  0x3f   : > { %p4903_p3 = scmp.ne.s32.totalorder %s5210_s24, %s4902_s16  ;;  %p4909_p8 = scmp.lt.u32.totalorder %s4907_s18, %s4902_s16 }
  0x40   : > { %p4911_p12 = scmp.lt.u32.totalorder %s4902_s16, %s5210_s24 }
  0x41   : > { %p4905_p4 = pnand %p4903_p3, %p5168_p11  ;;  %p4910_p10 = por %p4909_p8, %p4908_p6 }
  0x43   : > { %p4906_p5 = pneg %p4905_p4  ;;  %p4912_p0 = por %p4911_p12, %p4910_p10 }
  0x45   : > { %p4913_p1 = pnand %p4912_p0, %p4906_p5 }
  0x47   : > { %4916 = shalt.err (!%p4913_p1)
}
  0x48   : > { %s4917_s7 = scalar_lea.vmem %s5212_s9, 131072  ;;  %s5053_s8 = smov [#allocation2]  }
  0x49   : > { %p4918_p7 = scmp.ne.s32.totalorder %s5212_s9, %s4917_s7  ;;  %s4922_s12 = sshll.u32 %s5053_s8, 4  ;;  %s4923_s12 = int_to_ptr.vmem [resolvable:$false] %s4922_s12 }
  0x4a   : > { %s4924_s27 = scalar_lea.vmem %s4923_s12, 262144  ;;  %p4925_p4 = scmp.lt.s32.totalorder %s5212_s9, %s4923_s12 }
  0x4b   : > { %p4920_p13 = pnand %p4918_p7, %p5168_p11  ;;  %p4926_p2 = scmp.lt.s32.totalorder %s4924_s27, %s4917_s7 }
  0x4d   : > { %p4921_p3 = pneg %p4920_p13  ;;  %p4927_p6 = por %p4926_p2, %p4925_p4 }
  0x4f   : > { %p4928_p8 = pnand %p4927_p6, %p4921_p3 }
  0x51   : > { %4931 = shalt.err (!%p4928_p8)
}
  0x52   : > { %s5054_s16 = smov 2048   ;;  %s5055_s18 = smov 1024  }
  0x53   : > { %s5056_s13 = smov 64   ;;  %s6679_s26 = sshll.u32 %s5142_s30, 3 }
  0x54   : > { %4782 = dma.hbm_to_vmem [thread:$0]  (!%p5144_p9), %s5210_s24, 131072, %s5212_s9, %s217_s14, %s5054_s16, %s5055_s18, %s5056_s13  }
  0x55   : > { %s262_s7 = scalar_lea.vmem [#allocation6], %s6679_s26  ;;  %s3440_s12 = sshll.u32 %s5142_s30, 10 }
  0x56   : > { %s271_s8 = sshll.u32 %s262_s7, 4  ;;  %s4932_s27 = scalar_lea.hbm %s5197_s10, 128  ;;  %s272_s8 = int_to_ptr.vmem [resolvable:$true] %s271_s8 }
  0x57   : > { %p4933_p2 = scmp.ne.s32.totalorder %s5197_s10, %s4932_s27  ;;  %s4937_s25 = scalar_lea.hbm %s6658_s3, 256 }
  0x58   : > { %p4938_p12 = scmp.lt.u32.totalorder %s5197_s10, %s6658_s3  ;;  %p4939_p0 = scmp.lt.u32.totalorder %s4937_s25, %s4932_s27 }
  0x59   : > { %p4935_p5 = pnand %p4933_p2, %p5168_p11  ;;  %p4941_p7 = scmp.lt.u32.totalorder %s4932_s27, %s5197_s10 }
  0x5a   : > { %p4940_p1 = por %p4939_p0, %p4938_p12 }
  0x5b   : > { %p4936_p10 = pneg %p4935_p5 }
  0x5c   : > { %p4942_p13 = por %p4941_p7, %p4940_p1 }
  0x5e   : > { %p4943_p3 = pnand %p4942_p13, %p4936_p10 }
  0x60   : > { %4946 = shalt.err (!%p4943_p3)
}
  0x61   : > { %s4947_s24 = scalar_lea.vmem %s272_s8, 128  ;;  %s5057_s9 = smov [#allocation6]  }
  0x62   : > { %p4948_p4 = scmp.ne.s32.totalorder %s272_s8, %s4947_s24  ;;  %s4952_s14 = sshll.u32 %s5057_s9, 4  ;;  %s4953_s14 = int_to_ptr.vmem [resolvable:$false] %s4952_s14 }
  0x63   : > { %s4954_s1 = scalar_lea.vmem %s4953_s14, 256  ;;  %p4955_p2 = scmp.lt.s32.totalorder %s272_s8, %s4953_s14 }
  0x64   : > { %p4950_p6 = pnand %p4948_p4, %p5168_p11  ;;  %p4956_p5 = scmp.lt.s32.totalorder %s4954_s1, %s4947_s24 }
  0x66   : > { %p4951_p8 = pneg %p4950_p6  ;;  %p4957_p9 = por %p4956_p5, %p4955_p2 }
  0x68   : > { %p4958_p0 = pnand %p4957_p9, %p4951_p8 }
  0x6a   : > { %4961 = shalt.err (!%p4958_p0)
}
  0x6b   : > { %p6680_p12 = scmp.ne.s32.totalorder %s6674_s6, 0  ;;  %s3454_s2 = sshll.u32 %s5046_s22, 14 }
  0x6c   : > { %s5263_s29 = scalar_lea.hbm %s6659_s4, %s3454_s2  ;;  %s282_s16 = scalar_lea.vmem [#allocation7], %s3440_s12 }
  0x6d   : > { %4788 = dma.hbm_to_vmem [thread:$0]  (!%p6680_p12), %s5197_s10, 128, %s272_s8, %s5162_s15  }
  0x6e   : > { %s290_s18 = sshll.u32 %s282_s16, 4  ;;  %s279_s13 = scalar_lea.sflag [#allocation8], %s5142_s30  ;;  %s5267_s18 = int_to_ptr.vmem [resolvable:$true] %s290_s18 }
  0x6f   : > { %s4962_s26 = scalar_lea.hbm %s5263_s29, 16384  ;;  %s4967_s7 = scalar_lea.hbm %s6659_s4, 32768 }
  0x70   : > { %p4963_p9 = scmp.ne.s32.totalorder %s5263_s29, %s4962_s26  ;;  %p4968_p7 = scmp.lt.u32.totalorder %s5263_s29, %s6659_s4 }
  0x71   : > { %p4969_p13 = scmp.lt.u32.totalorder %s4967_s7, %s4962_s26  ;;  %p4971_p4 = scmp.lt.u32.totalorder %s4962_s26, %s5263_s29 }
  0x72   : > { %p4965_p10 = pnand %p4963_p9, %p5168_p11 }
  0x73   : > { %p4970_p3 = por %p4969_p13, %p4968_p7 }
  0x74   : > { %p4966_p1 = pneg %p4965_p10 }
  0x75   : > { %p4972_p6 = por %p4971_p4, %p4970_p3 }
  0x77   : > { %p4973_p8 = pnand %p4972_p6, %p4966_p1 }
  0x79   : > { %4976 = shalt.err (!%p4973_p8)
}
  0x7a   : > { %s4977_s12 = scalar_lea.vmem %s5267_s18, 16384  ;;  %s5058_s24 = smov [#allocation7]  }
  0x7b   : > { %p4978_p2 = scmp.ne.s32.totalorder %s5267_s18, %s4977_s12  ;;  %s4982_s9 = sshll.u32 %s5058_s24, 4  ;;  %s4983_s9 = int_to_ptr.vmem [resolvable:$false] %s4982_s9 }
  0x7c   : > { %s4984_s14 = scalar_lea.vmem %s4983_s9, 32768  ;;  %p4985_p9 = scmp.lt.s32.totalorder %s5267_s18, %s4983_s9 }
  0x7d   : > { %p4980_p5 = pnand %p4978_p2, %p5168_p11  ;;  %p4986_p10 = scmp.lt.s32.totalorder %s4984_s14, %s4977_s12 }
  0x7f   : > { %p4981_p0 = pneg %p4980_p5  ;;  %p4987_p7 = por %p4986_p10, %p4985_p9 }
  0x81   : > { %p4988_p13 = pnand %p4987_p7, %p4981_p0 }
  0x83   : > { %4991 = shalt.err (!%p4988_p13)
}
  0x84   : > { %s5059_s1 = smov 128   ;;  %s5060_s2 = smov 8  }
  0x85   : > { %4791 = dma.hbm_to_vmem [thread:$0]  (!%p6680_p12), %s5263_s29, 16384, %s5267_s18, %s279_s13, %s5059_s1, %s5059_s1, %s5060_s2  }
  0x86   : > { %p6681_p11 = scmp.ne.s32.totalorder %s6677_s11, 0 }
  0x87   : > { %s304_s17 = sand.u32 (!%p6681_p11), 1, %s5034_s19   ;;  %p6682_p1 = scmp.ne.s32.totalorder (!%p6681_p11), %s6672_s28, 0 }
  0x88   : > { %302 = sbr.rel (%p6681_p11) target bundleno = 1200 (0x4b0), region = 40  ;;  %s3444_s20 = sshll.u32 (!%p6681_p11), %s304_s17, 13 }
  0x89   : > { %s305_s25 = scalar_lea.sflag (!%p6681_p11), [#allocation3], %s304_s17  ;;  %s5296_s16 = scalar_lea.vmem (!%p6681_p11), [#allocation2], %s3444_s20 }
  0x8f   : > { %5017 = dma.done.wait (%p6682_p1), %s305_s25, 131072  }
  0x90   : > { %5019 = vsyncadd (%p6682_p1), %s305_s25, 4294836224  ;;  %s6683_s26 = sadd.s32 4294967295, %s5050_s23   ;;  %s3445_s6 = sshll.u32 %s304_s17, 3 }
  0x91   : > { %s313_s30 = sand.u32 1, %s6683_s26   ;;  %s5304_s11 = scalar_lea.vmem [#allocation4], %s3445_s6 }
  0x92   : > { %s314_s29 = scalar_lea.sflag [#allocation5], %s313_s30 }
  0x93   : > { %5021 = dma.done.wait (%p6682_p1), %s314_s29, 256  }
  0x94   : > { %5023 = vsyncadd (%p6682_p1), %s314_s29, 4294967040  ;;  %s3447_s18 = sshll.u32 %s304_s17, 10  ;;  %s5310_s13 = scalar_lea.vmem [#allocation6], %s3445_s6 }
  0x95   : > { %s332_s15 = scalar_lea.sflag [#allocation8], %s304_s17  ;;  %s5312_s10 = scalar_lea.vmem [#allocation7], %s3447_s18 }
  0x96   : > { %5025 = dma.done.wait (%p6682_p1), %s332_s15, 16384  }
  0x97   : > { %5027 = vsyncadd (%p6682_p1), %s332_s15, 4294950912  ;;  %v402_v0 = vld [vmem:[%s5296_s16 + $0x8] sm:$0xff]  ;;  %v404_v2 = vld [vmem:[%s5296_s16 + $0x18] sm:$0xff]  ;;  %p384_p12 = scmp.lt.s32.totalorder %s5042_s21, 1 }
  0x98   : > { %v410_v1 = vld [vmem:[%s5296_s16 + $0x48] sm:$0xff]  ;;  %v412_v4 = vld [vmem:[%s5296_s16 + $0x58] sm:$0xff]  ;;  %v401_v5 = vld [vmem:[%s5296_s16] sm:$0xff] }
  0x99   : > { %v3595_v3 = vpack.c.bf16 %v410_v1, %v402_v0  ;;  %v409_v6 = vld [vmem:[%s5296_s16 + $0x40] sm:$0xff]  ;;  %v3851_v7 = vpack.c.bf16 %v412_v4, %v404_v2  ;;  %v403_v9 = vld [vmem:[%s5296_s16 + $0x10] sm:$0xff]  ;;  %v418_v11 = vld [vmem:[%s5296_s16 + $0x88] sm:$0xff]  ;;  %s6694_s21 = smov (!%p384_p12, %s5042_s21), 1 }
  0x9a   : > { %v3597_v8 = vpack.c.bf16 %v409_v6, %v401_v5  ;;  %v411_v10 = vld [vmem:[%s5296_s16 + $0x50] sm:$0xff]  ;;  %v426_v13 = vld [vmem:[%s5296_s16 + $0xc8] sm:$0xff]  ;;  %v420_v14 = vld [vmem:[%s5296_s16 + $0x98] sm:$0xff] }
  0x9b   : > { %3596 = vmatprep.subr.bf16.mxu0 %v3595_v3  ;;  %v3853_v12 = vpack.c.bf16 %v411_v10, %v403_v9  ;;  %v428_v15 = vld [vmem:[%s5296_s16 + $0xd8] sm:$0xff]  ;;  %3852 = vmatprep.subr.bf16.mxu1 %v3851_v7  ;;  %v3599_v16 = vpack.c.bf16 %v426_v13, %v418_v11  ;;  %v417_v18 = vld [vmem:[%s5296_s16 + $0x80] sm:$0xff]  ;;  %v419_v20 = vld [vmem:[%s5296_s16 + $0x90] sm:$0xff] }
  0x9c   : > { %3598 = vmatpush1.bf16.msra.mxu0 %v3597_v8  ;;  %v3855_v17 = vpack.c.bf16 %v428_v15, %v420_v14  ;;  %v425_v19 = vld [vmem:[%s5296_s16 + $0xc0] sm:$0xff]  ;;  %v427_v22 = vld [vmem:[%s5296_s16 + $0xd0] sm:$0xff]  ;;  %v434_v23 = vld [vmem:[%s5296_s16 + $0x108] sm:$0xff] }
  0x9d   : > { %3854 = vmatpush1.bf16.msra.mxu1 %v3853_v12  ;;  %v3601_v21 = vpack.c.bf16 %v425_v19, %v417_v18  ;;  %v442_v24 = vld [vmem:[%s5296_s16 + $0x148] sm:$0xff]  ;;  %3600 = vmatprep.subr.bf16.mxu0 %v3599_v16  ;;  %v3857_v25 = vpack.c.bf16 %v427_v22, %v419_v20  ;;  %v436_v27 = vld [vmem:[%s5296_s16 + $0x118] sm:$0xff]  ;;  %v433_v29 = vld [vmem:[%s5296_s16 + $0x100] sm:$0xff] }
  0x9e   : > { %3856 = vmatprep.subr.bf16.mxu1 %v3855_v17  ;;  %v3603_v26 = vpack.c.bf16 %v442_v24, %v434_v23  ;;  %v444_v28 = vld [vmem:[%s5296_s16 + $0x158] sm:$0xff]  ;;  %v441_v31 = vld [vmem:[%s5296_s16 + $0x140] sm:$0xff]  ;;  %v435_v32 = vld [vmem:[%s5296_s16 + $0x110] sm:$0xff] }
  0x9f   : > { %v3859_v30 = vpack.c.bf16 %v444_v28, %v436_v27  ;;  %v443_v33 = vld [vmem:[%s5296_s16 + $0x150] sm:$0xff]  ;;  %v3605_v34 = vpack.c.bf16 %v441_v31, %v433_v29  ;;  %v450_v35 = vld [vmem:[%s5296_s16 + $0x188] sm:$0xff]  ;;  %v452_v37 = vld [vmem:[%s5296_s16 + $0x198] sm:$0xff] }
  0xa0   : > { %3602 = vmatpush1.bf16.msra.mxu0 %v3601_v21  ;;  %v458_v36 = vld [vmem:[%s5296_s16 + $0x1c8] sm:$0xff]  ;;  %v3861_v38 = vpack.c.bf16 %v443_v33, %v435_v32  ;;  %v460_v40 = vld [vmem:[%s5296_s16 + $0x1d8] sm:$0xff]  ;;  %v449_v41 = vld [vmem:[%s5296_s16 + $0x180] sm:$0xff] }
  0xa1   : > { %3858 = vmatpush1.bf16.msra.mxu1 %v3857_v25  ;;  %3604 = vmatprep.subr.bf16.mxu0 %v3603_v26  ;;  %v3607_v39 = vpack.c.bf16 %v458_v36, %v450_v35  ;;  %v457_v42 = vld [vmem:[%s5296_s16 + $0x1c0] sm:$0xff]  ;;  %v3863_v43 = vpack.c.bf16 %v460_v40, %v452_v37  ;;  %v451_v44 = vld [vmem:[%s5296_s16 + $0x190] sm:$0xff]  ;;  %v466_v46 = vld [vmem:[%s5296_s16 + $0x208] sm:$0xff] }
  0xa2   : > { %3860 = vmatprep.subr.bf16.mxu1 %v3859_v30  ;;  %v459_v45 = vld [vmem:[%s5296_s16 + $0x1d0] sm:$0xff]  ;;  %v474_v47 = vld [vmem:[%s5296_s16 + $0x248] sm:$0xff]  ;;  %v468_v48 = vld [vmem:[%s5296_s16 + $0x218] sm:$0xff]  ;;  %v3609_v50 = vpack.c.bf16 %v457_v42, %v449_v41 }
  0xa3   : > { %v476_v49 = vld [vmem:[%s5296_s16 + $0x258] sm:$0xff]  ;;  %v3865_v51 = vpack.c.bf16 %v459_v45, %v451_v44  ;;  %v3611_v52 = vpack.c.bf16 %v474_v47, %v466_v46  ;;  %v465_v53 = vld [vmem:[%s5296_s16 + $0x200] sm:$0xff]  ;;  %v467_v55 = vld [vmem:[%s5296_s16 + $0x210] sm:$0xff] }
  0xa4   : > { %3606 = vmatpush1.bf16.msra.mxu0 %v3605_v34  ;;  %v473_v54 = vld [vmem:[%s5296_s16 + $0x240] sm:$0xff]  ;;  %v3867_v56 = vpack.c.bf16 %v476_v49, %v468_v48  ;;  %v475_v57 = vld [vmem:[%s5296_s16 + $0x250] sm:$0xff]  ;;  %v482_v58 = vld [vmem:[%s5296_s16 + $0x288] sm:$0xff] }
  0xa5   : > { %3862 = vmatpush1.bf16.msra.mxu1 %v3861_v38  ;;  %3608 = vmatprep.subr.bf16.mxu0 %v3607_v39  ;;  %v490_v59 = vld [vmem:[%s5296_s16 + $0x2c8] sm:$0xff]  ;;  %v484_v60 = vld [vmem:[%s5296_s16 + $0x298] sm:$0xff]  ;;  %v3613_v62 = vpack.c.bf16 %v473_v54, %v465_v53  ;;  %v3869_v63 = vpack.c.bf16 %v475_v57, %v467_v55  ;;  %v481_v1 = vld [vmem:[%s5296_s16 + $0x280] sm:$0xff] }
  0xa6   : > { %3864 = vmatprep.subr.bf16.mxu1 %v3863_v43  ;;  %v492_v61 = vld [vmem:[%s5296_s16 + $0x2d8] sm:$0xff]  ;;  %v3615_v0 = vpack.c.bf16 %v490_v59, %v482_v58  ;;  %v489_v2 = vld [vmem:[%s5296_s16 + $0x2c0] sm:$0xff]  ;;  %v483_v3 = vld [vmem:[%s5296_s16 + $0x290] sm:$0xff] }
  0xa7   : > { %v3871_v4 = vpack.c.bf16 %v492_v61, %v484_v60  ;;  %v491_v5 = vld [vmem:[%s5296_s16 + $0x2d0] sm:$0xff]  ;;  %v498_v6 = vld [vmem:[%s5296_s16 + $0x308] sm:$0xff]  ;;  %v500_v8 = vld [vmem:[%s5296_s16 + $0x318] sm:$0xff]  ;;  %v3617_v10 = vpack.c.bf16 %v489_v2, %v481_v1 }
  0xa8   : > { %3610 = vmatpush1.bf16.msra.mxu0 %v3609_v50  ;;  %v506_v7 = vld [vmem:[%s5296_s16 + $0x348] sm:$0xff]  ;;  %v508_v9 = vld [vmem:[%s5296_s16 + $0x358] sm:$0xff]  ;;  %v3873_v11 = vpack.c.bf16 %v491_v5, %v483_v3  ;;  %v497_v13 = vld [vmem:[%s5296_s16 + $0x300] sm:$0xff] }
  0xa9   : > { %3866 = vmatpush1.bf16.msra.mxu1 %v3865_v51  ;;  %3612 = vmatprep.subr.bf16.mxu0 %v3611_v52  ;;  %v3619_v12 = vpack.c.bf16 %v506_v7, %v498_v6  ;;  %v505_v14 = vld [vmem:[%s5296_s16 + $0x340] sm:$0xff]  ;;  %v499_v15 = vld [vmem:[%s5296_s16 + $0x310] sm:$0xff]  ;;  %v3875_v16 = vpack.c.bf16 %v508_v9, %v500_v8  ;;  %v514_v18 = vld [vmem:[%s5296_s16 + $0x388] sm:$0xff] }
  0xaa   : > { %3868 = vmatprep.subr.bf16.mxu1 %v3867_v56  ;;  %v507_v17 = vld [vmem:[%s5296_s16 + $0x350] sm:$0xff]  ;;  %v522_v19 = vld [vmem:[%s5296_s16 + $0x3c8] sm:$0xff]  ;;  %v516_v20 = vld [vmem:[%s5296_s16 + $0x398] sm:$0xff]  ;;  %v3621_v22 = vpack.c.bf16 %v505_v14, %v497_v13 }
  0xab   : > { %v524_v21 = vld [vmem:[%s5296_s16 + $0x3d8] sm:$0xff]  ;;  %v3877_v23 = vpack.c.bf16 %v507_v17, %v499_v15  ;;  %v3623_v24 = vpack.c.bf16 %v522_v19, %v514_v18  ;;  %v513_v25 = vld [vmem:[%s5296_s16 + $0x380] sm:$0xff]  ;;  %v515_v27 = vld [vmem:[%s5296_s16 + $0x390] sm:$0xff] }
  0xac   : > { %3614 = vmatpush1.bf16.msra.mxu0 %v3613_v62  ;;  %v521_v26 = vld [vmem:[%s5296_s16 + $0x3c0] sm:$0xff]  ;;  %v3879_v28 = vpack.c.bf16 %v524_v21, %v516_v20  ;;  %v523_v29 = vld [vmem:[%s5296_s16 + $0x3d0] sm:$0xff]  ;;  %v530_v30 = vld [vmem:[%s5296_s16 + $0x408] sm:$0xff] }
  0xad   : > { %3870 = vmatpush1.bf16.msra.mxu1 %v3869_v63  ;;  %3616 = vmatprep.subr.bf16.mxu0 %v3615_v0  ;;  %v538_v31 = vld [vmem:[%s5296_s16 + $0x448] sm:$0xff]  ;;  %v532_v32 = vld [vmem:[%s5296_s16 + $0x418] sm:$0xff]  ;;  %v3625_v34 = vpack.c.bf16 %v521_v26, %v513_v25  ;;  %v3881_v35 = vpack.c.bf16 %v523_v29, %v515_v27  ;;  %v529_v37 = vld [vmem:[%s5296_s16 + $0x400] sm:$0xff] }
  0xae   : > { %3872 = vmatprep.subr.bf16.mxu1 %v3871_v4  ;;  %v540_v33 = vld [vmem:[%s5296_s16 + $0x458] sm:$0xff]  ;;  %v3627_v36 = vpack.c.bf16 %v538_v31, %v530_v30  ;;  %v537_v38 = vld [vmem:[%s5296_s16 + $0x440] sm:$0xff]  ;;  %v531_v39 = vld [vmem:[%s5296_s16 + $0x410] sm:$0xff] }
  0xaf   : > { %v3883_v40 = vpack.c.bf16 %v540_v33, %v532_v32  ;;  %v539_v41 = vld [vmem:[%s5296_s16 + $0x450] sm:$0xff]  ;;  %v546_v42 = vld [vmem:[%s5296_s16 + $0x488] sm:$0xff]  ;;  %v548_v44 = vld [vmem:[%s5296_s16 + $0x498] sm:$0xff]  ;;  %v3629_v46 = vpack.c.bf16 %v537_v38, %v529_v37 }
  0xb0   : > { %3618 = vmatpush1.bf16.msra.mxu0 %v3617_v10  ;;  %v554_v43 = vld [vmem:[%s5296_s16 + $0x4c8] sm:$0xff]  ;;  %v556_v45 = vld [vmem:[%s5296_s16 + $0x4d8] sm:$0xff]  ;;  %v3885_v47 = vpack.c.bf16 %v539_v41, %v531_v39  ;;  %v545_v49 = vld [vmem:[%s5296_s16 + $0x480] sm:$0xff] }
  0xb1   : > { %3874 = vmatpush1.bf16.msra.mxu1 %v3873_v11  ;;  %3620 = vmatprep.subr.bf16.mxu0 %v3619_v12  ;;  %v3631_v48 = vpack.c.bf16 %v554_v43, %v546_v42  ;;  %v553_v50 = vld [vmem:[%s5296_s16 + $0x4c0] sm:$0xff]  ;;  %v547_v51 = vld [vmem:[%s5296_s16 + $0x490] sm:$0xff]  ;;  %v3887_v52 = vpack.c.bf16 %v556_v45, %v548_v44  ;;  %v562_v54 = vld [vmem:[%s5296_s16 + $0x508] sm:$0xff] }
  0xb2   : > { %3876 = vmatprep.subr.bf16.mxu1 %v3875_v16  ;;  %v555_v53 = vld [vmem:[%s5296_s16 + $0x4d0] sm:$0xff]  ;;  %v570_v55 = vld [vmem:[%s5296_s16 + $0x548] sm:$0xff]  ;;  %v564_v56 = vld [vmem:[%s5296_s16 + $0x518] sm:$0xff]  ;;  %v3633_v58 = vpack.c.bf16 %v553_v50, %v545_v49 }
  0xb3   : > { %v572_v57 = vld [vmem:[%s5296_s16 + $0x558] sm:$0xff]  ;;  %v3889_v59 = vpack.c.bf16 %v555_v53, %v547_v51  ;;  %v3635_v60 = vpack.c.bf16 %v570_v55, %v562_v54  ;;  %v561_v61 = vld [vmem:[%s5296_s16 + $0x500] sm:$0xff]  ;;  %v563_v63 = vld [vmem:[%s5296_s16 + $0x510] sm:$0xff] }
  0xb4   : > { %3622 = vmatpush1.bf16.msra.mxu0 %v3621_v22  ;;  %v569_v62 = vld [vmem:[%s5296_s16 + $0x540] sm:$0xff]  ;;  %v3891_v0 = vpack.c.bf16 %v572_v57, %v564_v56  ;;  %v571_v1 = vld [vmem:[%s5296_s16 + $0x550] sm:$0xff]  ;;  %v578_v2 = vld [vmem:[%s5296_s16 + $0x588] sm:$0xff] }
  0xb5   : > { %3878 = vmatpush1.bf16.msra.mxu1 %v3877_v23  ;;  %3624 = vmatprep.subr.bf16.mxu0 %v3623_v24  ;;  %v586_v3 = vld [vmem:[%s5296_s16 + $0x5c8] sm:$0xff]  ;;  %v580_v4 = vld [vmem:[%s5296_s16 + $0x598] sm:$0xff]  ;;  %v3637_v6 = vpack.c.bf16 %v569_v62, %v561_v61  ;;  %v577_v7 = vld [vmem:[%s5296_s16 + $0x580] sm:$0xff]  ;;  %v3893_v8 = vpack.c.bf16 %v571_v1, %v563_v63 }
  0xb6   : > { %3880 = vmatprep.subr.bf16.mxu1 %v3879_v28  ;;  %v588_v5 = vld [vmem:[%s5296_s16 + $0x5d8] sm:$0xff]  ;;  %v3639_v9 = vpack.c.bf16 %v586_v3, %v578_v2  ;;  %v585_v10 = vld [vmem:[%s5296_s16 + $0x5c0] sm:$0xff]  ;;  %v579_v11 = vld [vmem:[%s5296_s16 + $0x590] sm:$0xff] }
  0xb7   : > { %v587_v12 = vld [vmem:[%s5296_s16 + $0x5d0] sm:$0xff]  ;;  %v3895_v13 = vpack.c.bf16 %v588_v5, %v580_v4  ;;  %v594_v14 = vld [vmem:[%s5296_s16 + $0x608] sm:$0xff]  ;;  %v596_v17 = vld [vmem:[%s5296_s16 + $0x618] sm:$0xff]  ;;  %v3641_v19 = vpack.c.bf16 %v585_v10, %v577_v7 }
  0xb8   : > { %3626 = vmatpush1.bf16.msra.mxu0 %v3625_v34  ;;  %v602_v15 = vld [vmem:[%s5296_s16 + $0x648] sm:$0xff]  ;;  %v604_v18 = vld [vmem:[%s5296_s16 + $0x658] sm:$0xff]  ;;  %v3897_v20 = vpack.c.bf16 %v587_v12, %v579_v11  ;;  %v593_v22 = vld [vmem:[%s5296_s16 + $0x600] sm:$0xff] }
  0xb9   : > { %3882 = vmatpush1.bf16.msra.mxu1 %v3881_v35  ;;  %3628 = vmatprep.subr.bf16.mxu0 %v3627_v36  ;;  %v394_v16 = vld [vmem:[%s6655_s0 + $0x8] sm:$0xff]  ;;  %v3643_v21 = vpack.c.bf16 %v602_v15, %v594_v14  ;;  %v601_v23 = vld [vmem:[%s5296_s16 + $0x640] sm:$0xff]  ;;  %v595_v24 = vld [vmem:[%s5296_s16 + $0x610] sm:$0xff]  ;;  %v3899_v25 = vpack.c.bf16 %v604_v18, %v596_v17 }
  0xba   : > { %3884 = vmatprep.subr.bf16.mxu1 %v3883_v40  ;;  %1489 = vmatprep.mubr.f32.mxu0 %v394_v16  ;;  %v603_v26 = vld [vmem:[%s5296_s16 + $0x650] sm:$0xff]  ;;  %v610_v27 = vld [vmem:[%s5296_s16 + $0x688] sm:$0xff]  ;;  %v612_v29 = vld [vmem:[%s5296_s16 + $0x698] sm:$0xff]  ;;  %v3645_v31 = vpack.c.bf16 %v601_v23, %v593_v22 }
  0xbb   : > { %1773 = vmatprep.mubr.f32.mxu1 %v394_v16  ;;  %v618_v28 = vld [vmem:[%s5296_s16 + $0x6c8] sm:$0xff]  ;;  %v620_v30 = vld [vmem:[%s5296_s16 + $0x6d8] sm:$0xff]  ;;  %v3901_v32 = vpack.c.bf16 %v603_v26, %v595_v24  ;;  %v609_v34 = vld [vmem:[%s5296_s16 + $0x680] sm:$0xff] }
  0xbc   : > { %3630 = vmatpush1.bf16.msra.mxu0 %v3629_v46  ;;  %v3647_v33 = vpack.c.bf16 %v618_v28, %v610_v27  ;;  %v617_v35 = vld [vmem:[%s5296_s16 + $0x6c0] sm:$0xff]  ;;  %v611_v36 = vld [vmem:[%s5296_s16 + $0x690] sm:$0xff]  ;;  %v3903_v37 = vpack.c.bf16 %v620_v30, %v612_v29  ;;  %v626_v39 = vld [vmem:[%s5296_s16 + $0x708] sm:$0xff] }
  0xbd   : > { %3886 = vmatpush1.bf16.msra.mxu1 %v3885_v47  ;;  %3632 = vmatprep.subr.bf16.mxu0 %v3631_v48  ;;  %v619_v38 = vld [vmem:[%s5296_s16 + $0x6d0] sm:$0xff]  ;;  %v634_v40 = vld [vmem:[%s5296_s16 + $0x748] sm:$0xff]  ;;  %v628_v41 = vld [vmem:[%s5296_s16 + $0x718] sm:$0xff]  ;;  %v3649_v43 = vpack.c.bf16 %v617_v35, %v609_v34 }
  0xbe   : > { %3888 = vmatprep.subr.bf16.mxu1 %v3887_v52  ;;  %v636_v42 = vld [vmem:[%s5296_s16 + $0x758] sm:$0xff]  ;;  %v3905_v44 = vpack.c.bf16 %v619_v38, %v611_v36  ;;  %v3651_v45 = vpack.c.bf16 %v634_v40, %v626_v39  ;;  %v625_v46 = vld [vmem:[%s5296_s16 + $0x700] sm:$0xff]  ;;  %v627_v48 = vld [vmem:[%s5296_s16 + $0x710] sm:$0xff] }
  0xbf   : > { %v633_v47 = vld [vmem:[%s5296_s16 + $0x740] sm:$0xff]  ;;  %v3907_v49 = vpack.c.bf16 %v636_v42, %v628_v41  ;;  %v635_v50 = vld [vmem:[%s5296_s16 + $0x750] sm:$0xff]  ;;  %v642_v51 = vld [vmem:[%s5296_s16 + $0x788] sm:$0xff] }
  0xc0   : > { %3634 = vmatpush1.bf16.msra.mxu0 %v3633_v58  ;;  %v650_v52 = vld [vmem:[%s5296_s16 + $0x7c8] sm:$0xff]  ;;  %v644_v53 = vld [vmem:[%s5296_s16 + $0x798] sm:$0xff]  ;;  %v3653_v55 = vpack.c.bf16 %v633_v47, %v625_v46  ;;  %v3909_v56 = vpack.c.bf16 %v635_v50, %v627_v48  ;;  %v641_v58 = vld [vmem:[%s5296_s16 + $0x780] sm:$0xff] }
  0xc1   : > { %3890 = vmatpush1.bf16.msra.mxu1 %v3889_v59  ;;  %3636 = vmatprep.subr.bf16.mxu0 %v3635_v60  ;;  %v652_v54 = vld [vmem:[%s5296_s16 + $0x7d8] sm:$0xff]  ;;  %v3655_v57 = vpack.c.bf16 %v650_v52, %v642_v51  ;;  %v649_v59 = vld [vmem:[%s5296_s16 + $0x7c0] sm:$0xff]  ;;  %v643_v60 = vld [vmem:[%s5296_s16 + $0x790] sm:$0xff] }
  0xc2   : > { %3892 = vmatprep.subr.bf16.mxu1 %v3891_v0  ;;  %v3911_v61 = vpack.c.bf16 %v652_v54, %v644_v53  ;;  %v651_v62 = vld [vmem:[%s5296_s16 + $0x7d0] sm:$0xff]  ;;  %v658_v63 = vld [vmem:[%s5296_s16 + $0x808] sm:$0xff]  ;;  %v660_v1 = vld [vmem:[%s5296_s16 + $0x818] sm:$0xff]  ;;  %v3657_v3 = vpack.c.bf16 %v649_v59, %v641_v58 }
  0xc3   : > { %v666_v0 = vld [vmem:[%s5296_s16 + $0x848] sm:$0xff]  ;;  %v668_v2 = vld [vmem:[%s5296_s16 + $0x858] sm:$0xff]  ;;  %v3913_v4 = vpack.c.bf16 %v651_v62, %v643_v60  ;;  %v665_v7 = vld [vmem:[%s5296_s16 + $0x840] sm:$0xff] }
  0xc4   : > { %3638 = vmatpush1.bf16.msra.mxu0 %v3637_v6  ;;  %v3659_v5 = vpack.c.bf16 %v666_v0, %v658_v63  ;;  %v657_v6 = vld [vmem:[%s5296_s16 + $0x800] sm:$0xff]  ;;  %v667_v10 = vld [vmem:[%s5296_s16 + $0x850] sm:$0xff]  ;;  %v674_v11 = vld [vmem:[%s5296_s16 + $0x888] sm:$0xff] }
  0xc5   : > { %3894 = vmatpush1.bf16.msra.mxu1 %v3893_v8  ;;  %3640 = vmatprep.subr.bf16.mxu0 %v3639_v9  ;;  %v659_v8 = vld [vmem:[%s5296_s16 + $0x810] sm:$0xff]  ;;  %v3915_v9 = vpack.c.bf16 %v668_v2, %v660_v1  ;;  %v682_v12 = vld [vmem:[%s5296_s16 + $0x8c8] sm:$0xff]  ;;  %v684_v14 = vld [vmem:[%s5296_s16 + $0x8d8] sm:$0xff]  ;;  %v3661_v16 = vpack.c.bf16 %v665_v7, %v657_v6 }
  0xc6   : > { %3896 = vmatprep.subr.bf16.mxu1 %v3895_v13  ;;  %v676_v13 = vld [vmem:[%s5296_s16 + $0x898] sm:$0xff]  ;;  %v393_v15 = vld [vmem:[%s6655_s0] sm:$0xff]  ;;  %v3917_v17 = vpack.c.bf16 %v667_v10, %v659_v8  ;;  %v3663_v18 = vpack.c.bf16 %v682_v12, %v674_v11  ;;  %v683_v23 = vld [vmem:[%s5296_s16 + $0x8d0] sm:$0xff] }
  0xc7   : > { %v3919_v22 = vpack.c.bf16 %v684_v14, %v676_v13  ;;  %v690_v24 = vld [vmem:[%s5296_s16 + $0x908] sm:$0xff]  ;;  %v692_v26 = vld [vmem:[%s5296_s16 + $0x918] sm:$0xff]  ;;  %v699_v35 = vld [vmem:[%s5296_s16 + $0x950] sm:$0xff] }
  0xc8   : > { %3642 = vmatpush1.bf16.msra.mxu0 %v3641_v19  ;;  %v673_v19 = vld [vmem:[%s5296_s16 + $0x880] sm:$0xff]  ;;  %v700_v27 = vld [vmem:[%s5296_s16 + $0x958] sm:$0xff]  ;;  %v706_v36 = vld [vmem:[%s5296_s16 + $0x988] sm:$0xff] }
  0xc9   : > { %3898 = vmatpush1.bf16.msra.mxu1 %v3897_v20  ;;  %3644 = vmatprep.subr.bf16.mxu0 %v3643_v21  ;;  %v681_v20 = vld [vmem:[%s5296_s16 + $0x8c0] sm:$0xff]  ;;  %v675_v21 = vld [vmem:[%s5296_s16 + $0x890] sm:$0xff]  ;;  %v3923_v34 = vpack.c.bf16 %v700_v27, %v692_v26  ;;  %v708_v38 = vld [vmem:[%s5296_s16 + $0x998] sm:$0xff] }
  0xca   : > { %3900 = vmatprep.subr.bf16.mxu1 %v3899_v25  ;;  %v698_v25 = vld [vmem:[%s5296_s16 + $0x948] sm:$0xff]  ;;  %v3665_v28 = vpack.c.bf16 %v681_v20, %v673_v19  ;;  %v3921_v29 = vpack.c.bf16 %v683_v23, %v675_v21  ;;  %v716_v39 = vld [vmem:[%s5296_s16 + $0x9d8] sm:$0xff]  ;;  %v715_v47 = vld [vmem:[%s5296_s16 + $0x9d0] sm:$0xff] }
  0xcb   : > { %v3667_v30 = vpack.c.bf16 %v698_v25, %v690_v24  ;;  %v3927_v46 = vpack.c.bf16 %v716_v39, %v708_v38  ;;  %v722_v48 = vld [vmem:[%s5296_s16 + $0xa08] sm:$0xff]  ;;  %v724_v50 = vld [vmem:[%s5296_s16 + $0xa18] sm:$0xff]  ;;  %v731_v59 = vld [vmem:[%s5296_s16 + $0xa50] sm:$0xff] }
  0xcc   : > { %3646 = vmatpush1.bf16.msra.mxu0 %v3645_v31  ;;  %v689_v31 = vld [vmem:[%s5296_s16 + $0x900] sm:$0xff]  ;;  %v732_v51 = vld [vmem:[%s5296_s16 + $0xa58] sm:$0xff]  ;;  %v738_v60 = vld [vmem:[%s5296_s16 + $0xa88] sm:$0xff] }
  0xcd   : > { %3902 = vmatpush1.bf16.msra.mxu1 %v3901_v32  ;;  %3648 = vmatprep.subr.bf16.mxu0 %v3647_v33  ;;  %v697_v32 = vld [vmem:[%s5296_s16 + $0x940] sm:$0xff]  ;;  %v691_v33 = vld [vmem:[%s5296_s16 + $0x910] sm:$0xff]  ;;  %v3931_v58 = vpack.c.bf16 %v732_v51, %v724_v50  ;;  %v740_v62 = vld [vmem:[%s5296_s16 + $0xa98] sm:$0xff] }
  0xce   : > { %3904 = vmatprep.subr.bf16.mxu1 %v3903_v37  ;;  %v714_v37 = vld [vmem:[%s5296_s16 + $0x9c8] sm:$0xff]  ;;  %v3669_v40 = vpack.c.bf16 %v697_v32, %v689_v31  ;;  %v3925_v41 = vpack.c.bf16 %v699_v35, %v691_v33  ;;  %v748_v63 = vld [vmem:[%s5296_s16 + $0xad8] sm:$0xff]  ;;  %v747_v7 = vld [vmem:[%s5296_s16 + $0xad0] sm:$0xff] }
  0xcf   : > { %v3671_v42 = vpack.c.bf16 %v714_v37, %v706_v36  ;;  %v3935_v6 = vpack.c.bf16 %v748_v63, %v740_v62  ;;  %v754_v8 = vld [vmem:[%s5296_s16 + $0xb08] sm:$0xff]  ;;  %v756_v10 = vld [vmem:[%s5296_s16 + $0xb18] sm:$0xff]  ;;  %v753_v13 = vld [vmem:[%s5296_s16 + $0xb00] sm:$0xff] }
  0xd0   : > { %3650 = vmatpush1.bf16.msra.mxu0 %v3649_v43  ;;  %v705_v43 = vld [vmem:[%s5296_s16 + $0x980] sm:$0xff]  ;;  %v764_v11 = vld [vmem:[%s5296_s16 + $0xb58] sm:$0xff]  ;;  %v770_v20 = vld [vmem:[%s5296_s16 + $0xb88] sm:$0xff] }
  0xd1   : > { %3906 = vmatpush1.bf16.msra.mxu1 %v3905_v44  ;;  %3652 = vmatprep.subr.bf16.mxu0 %v3651_v45  ;;  %v713_v44 = vld [vmem:[%s5296_s16 + $0x9c0] sm:$0xff]  ;;  %v707_v45 = vld [vmem:[%s5296_s16 + $0x990] sm:$0xff]  ;;  %v3939_v19 = vpack.c.bf16 %v764_v11, %v756_v10  ;;  %v778_v21 = vld [vmem:[%s5296_s16 + $0xbc8] sm:$0xff] }
  0xd2   : > { %3908 = vmatprep.subr.bf16.mxu1 %v3907_v49  ;;  %v730_v49 = vld [vmem:[%s5296_s16 + $0xa48] sm:$0xff]  ;;  %v3673_v52 = vpack.c.bf16 %v713_v44, %v705_v43  ;;  %v3929_v53 = vpack.c.bf16 %v715_v47, %v707_v45  ;;  %v772_v23 = vld [vmem:[%s5296_s16 + $0xb98] sm:$0xff]  ;;  %v3687_v27 = vpack.c.bf16 %v778_v21, %v770_v20  ;;  %v779_v32 = vld [vmem:[%s5296_s16 + $0xbd0] sm:$0xff] }
  0xd3   : > { %v3675_v54 = vpack.c.bf16 %v730_v49, %v722_v48  ;;  %v780_v24 = vld [vmem:[%s5296_s16 + $0xbd8] sm:$0xff]  ;;  %v786_v33 = vld [vmem:[%s5296_s16 + $0xc08] sm:$0xff]  ;;  %v795_v44 = vld [vmem:[%s5296_s16 + $0xc50] sm:$0xff] }
  0xd4   : > { %3654 = vmatpush1.bf16.msra.mxu0 %v3653_v55  ;;  %v721_v55 = vld [vmem:[%s5296_s16 + $0xa00] sm:$0xff]  ;;  %v3943_v31 = vpack.c.bf16 %v780_v24, %v772_v23  ;;  %v788_v35 = vld [vmem:[%s5296_s16 + $0xc18] sm:$0xff]  ;;  %v802_v45 = vld [vmem:[%s5296_s16 + $0xc88] sm:$0xff] }
  0xd5   : > { %3910 = vmatpush1.bf16.msra.mxu1 %v3909_v56  ;;  %3656 = vmatprep.subr.bf16.mxu0 %v3655_v57  ;;  %v729_v56 = vld [vmem:[%s5296_s16 + $0xa40] sm:$0xff]  ;;  %v723_v57 = vld [vmem:[%s5296_s16 + $0xa10] sm:$0xff]  ;;  %v796_v36 = vld [vmem:[%s5296_s16 + $0xc58] sm:$0xff] }
  0xd6   : > { %3912 = vmatprep.subr.bf16.mxu1 %v3911_v61  ;;  %v746_v61 = vld [vmem:[%s5296_s16 + $0xac8] sm:$0xff]  ;;  %v3677_v0 = vpack.c.bf16 %v729_v56, %v721_v55  ;;  %v3933_v1 = vpack.c.bf16 %v731_v59, %v723_v57  ;;  %v3947_v43 = vpack.c.bf16 %v796_v36, %v788_v35  ;;  %v804_v47 = vld [vmem:[%s5296_s16 + $0xc98] sm:$0xff]  ;;  %v811_v56 = vld [vmem:[%s5296_s16 + $0xcd0] sm:$0xff] }
  0xd7   : > { %v3679_v2 = vpack.c.bf16 %v746_v61, %v738_v60  ;;  %v812_v48 = vld [vmem:[%s5296_s16 + $0xcd8] sm:$0xff]  ;;  %v818_v57 = vld [vmem:[%s5296_s16 + $0xd08] sm:$0xff]  ;;  %v849_v24 = vld [vmem:[%s5296_s16 + $0xe00] sm:$0xff] }
  0xd8   : > { %3658 = vmatpush1.bf16.msra.mxu0 %v3657_v3  ;;  %v737_v3 = vld [vmem:[%s5296_s16 + $0xa80] sm:$0xff]  ;;  %v3951_v55 = vpack.c.bf16 %v812_v48, %v804_v47  ;;  %v820_v59 = vld [vmem:[%s5296_s16 + $0xd18] sm:$0xff] }
  0xd9   : > { %3914 = vmatpush1.bf16.msra.mxu1 %v3913_v4  ;;  %3660 = vmatprep.subr.bf16.mxu0 %v3659_v5  ;;  %v745_v4 = vld [vmem:[%s5296_s16 + $0xac0] sm:$0xff]  ;;  %v739_v5 = vld [vmem:[%s5296_s16 + $0xa90] sm:$0xff]  ;;  %v828_v60 = vld [vmem:[%s5296_s16 + $0xd58] sm:$0xff] }
  0xda   : > { %3916 = vmatprep.subr.bf16.mxu1 %v3915_v9  ;;  %v762_v9 = vld [vmem:[%s5296_s16 + $0xb48] sm:$0xff]  ;;  %v3681_v12 = vpack.c.bf16 %v745_v4, %v737_v3  ;;  %v3937_v14 = vpack.c.bf16 %v747_v7, %v739_v5  ;;  %v3955_v3 = vpack.c.bf16 %v828_v60, %v820_v59  ;;  %v827_v4 = vld [vmem:[%s5296_s16 + $0xd50] sm:$0xff]  ;;  %v836_v7 = vld [vmem:[%s5296_s16 + $0xd98] sm:$0xff] }
  0xdb   : > { %1490 = vmatmul.mubr.f32.vlgmr.msra.gmra.mrb[0].mxu0 %v393_v15  ;;  %v834_v5 = vld [vmem:[%s5296_s16 + $0xd88] sm:$0xff]  ;;  %v860_v20 = vld [vmem:[%s5296_s16 + $0xe58] sm:$0xff]  ;;  %v865_v36 = vld [vmem:[%s5296_s16 + $0xe80] sm:$0xff] }
  0xdc   : > { %3662 = vmatpush1.bf16.msra.mxu0 %v3661_v16  ;;  %1774 = vmatmul.mubr.f32.vlgmr.msra.gmra.mrb[0].mxu1 %v393_v15  ;;  %v3683_v15 = vpack.c.bf16 %v762_v9, %v754_v8  ;;  %v761_v16 = vld [vmem:[%s5296_s16 + $0xb40] sm:$0xff]  ;;  %v844_v8 = vld [vmem:[%s5296_s16 + $0xdd8] sm:$0xff] }
  0xdd   : > { %3918 = vmatpush1.bf16.msra.mxu1 %v3917_v17  ;;  %3664 = vmatprep.subr.bf16.mxu0 %v3663_v18  ;;  %v755_v17 = vld [vmem:[%s5296_s16 + $0xb10] sm:$0xff]  ;;  %v3685_v25 = vpack.c.bf16 %v761_v16, %v753_v13  ;;  %v841_v13 = vld [vmem:[%s5296_s16 + $0xdc0] sm:$0xff] }
  0xde   : > { %3920 = vmatprep.subr.bf16.mxu1 %v3919_v22  ;;  %v763_v18 = vld [vmem:[%s5296_s16 + $0xb50] sm:$0xff]  ;;  %v396_v22 = vld [vmem:[%s6655_s0 + $0x18] sm:$0xff]  ;;  %v881_v48 = vld [vmem:[%s5296_s16 + $0xf00] sm:$0xff] }
  0xdf   : > { %1560 = vmatprep.mubr.f32.mxu0 %v396_v22  ;;  %1844 = vmatprep.mubr.f32.mxu1 %v396_v22  ;;  %v3941_v26 = vpack.c.bf16 %v763_v18, %v755_v17  ;;  %v843_v16 = vld [vmem:[%s5296_s16 + $0xdd0] sm:$0xff]  ;;  %v850_v17 = vld [vmem:[%s5296_s16 + $0xe08] sm:$0xff]  ;;  %v897_v60 = vld [vmem:[%s5296_s16 + $0xf80] sm:$0xff] }
  0xe0   : > { %3666 = vmatpush1.bf16.msra.mxu0 %v3665_v28  ;;  %v769_v28 = vld [vmem:[%s5296_s16 + $0xb80] sm:$0xff]  ;;  %v858_v18 = vld [vmem:[%s5296_s16 + $0xe48] sm:$0xff] }
  0xe1   : > { %3922 = vmatpush1.bf16.msra.mxu1 %v3921_v29  ;;  %3668 = vmatprep.subr.bf16.mxu0 %v3667_v30  ;;  %v777_v29 = vld [vmem:[%s5296_s16 + $0xbc0] sm:$0xff]  ;;  %v771_v30 = vld [vmem:[%s5296_s16 + $0xb90] sm:$0xff]  ;;  %v3707_v23 = vpack.c.bf16 %v858_v18, %v850_v17 }
  0xe2   : > { %3924 = vmatprep.subr.bf16.mxu1 %v3923_v34  ;;  %v794_v34 = vld [vmem:[%s5296_s16 + $0xc48] sm:$0xff]  ;;  %v3689_v37 = vpack.c.bf16 %v777_v29, %v769_v28  ;;  %v3945_v38 = vpack.c.bf16 %v779_v32, %v771_v30  ;;  %v859_v28 = vld [vmem:[%s5296_s16 + $0xe50] sm:$0xff]  ;;  %v876_v32 = vld [vmem:[%s5296_s16 + $0xed8] sm:$0xff] }
  0xe3   : > { %v3691_v39 = vpack.c.bf16 %v794_v34, %v786_v33  ;;  %v866_v29 = vld [vmem:[%s5296_s16 + $0xe88] sm:$0xff]  ;;  %v395_v17 = vld [vmem:[%s6655_s0 + $0x10] sm:$0xff] }
  0xe4   : > { %3670 = vmatpush1.bf16.msra.mxu0 %v3669_v40  ;;  %v785_v40 = vld [vmem:[%s5296_s16 + $0xc00] sm:$0xff]  ;;  %v874_v30 = vld [vmem:[%s5296_s16 + $0xec8] sm:$0xff] }
  0xe5   : > { %3926 = vmatpush1.bf16.msra.mxu1 %v3925_v41  ;;  %3672 = vmatprep.subr.bf16.mxu0 %v3671_v42  ;;  %v793_v41 = vld [vmem:[%s5296_s16 + $0xc40] sm:$0xff]  ;;  %v787_v42 = vld [vmem:[%s5296_s16 + $0xc10] sm:$0xff]  ;;  %v3711_v35 = vpack.c.bf16 %v874_v30, %v866_v29  ;;  %v956_v29 = vld [vmem:[%s5296_s16 + $0x1158] sm:$0xff] }
  0xe6   : > { %3928 = vmatprep.subr.bf16.mxu1 %v3927_v46  ;;  %v810_v46 = vld [vmem:[%s5296_s16 + $0xcc8] sm:$0xff]  ;;  %v3693_v49 = vpack.c.bf16 %v793_v41, %v785_v40  ;;  %v3949_v50 = vpack.c.bf16 %v795_v44, %v787_v42  ;;  %v875_v40 = vld [vmem:[%s5296_s16 + $0xed0] sm:$0xff]  ;;  %v892_v44 = vld [vmem:[%s5296_s16 + $0xf58] sm:$0xff] }
  0xe7   : > { %v3695_v51 = vpack.c.bf16 %v810_v46, %v802_v45  ;;  %v882_v41 = vld [vmem:[%s5296_s16 + $0xf08] sm:$0xff] }
  0xe8   : > { %3674 = vmatpush1.bf16.msra.mxu0 %v3673_v52  ;;  %v801_v52 = vld [vmem:[%s5296_s16 + $0xc80] sm:$0xff]  ;;  %v890_v42 = vld [vmem:[%s5296_s16 + $0xf48] sm:$0xff] }
  0xe9   : > { %3930 = vmatpush1.bf16.msra.mxu1 %v3929_v53  ;;  %3676 = vmatprep.subr.bf16.mxu0 %v3675_v54  ;;  %v809_v53 = vld [vmem:[%s5296_s16 + $0xcc0] sm:$0xff]  ;;  %v803_v54 = vld [vmem:[%s5296_s16 + $0xc90] sm:$0xff]  ;;  %v3715_v47 = vpack.c.bf16 %v890_v42, %v882_v41  ;;  %v398_v30 = vld [vmem:[%s6655_s0 + $0x28] sm:$0xff] }
  0xea   : > { %3932 = vmatprep.subr.bf16.mxu1 %v3931_v58  ;;  %v826_v58 = vld [vmem:[%s5296_s16 + $0xd48] sm:$0xff]  ;;  %v3697_v61 = vpack.c.bf16 %v809_v53, %v801_v52  ;;  %v3953_v62 = vpack.c.bf16 %v811_v56, %v803_v54  ;;  %v891_v52 = vld [vmem:[%s5296_s16 + $0xf50] sm:$0xff]  ;;  %v908_v56 = vld [vmem:[%s5296_s16 + $0xfd8] sm:$0xff] }
  0xeb   : > { %v3699_v63 = vpack.c.bf16 %v826_v58, %v818_v57  ;;  %v898_v53 = vld [vmem:[%s5296_s16 + $0xf88] sm:$0xff]  ;;  %v964_v41 = vld [vmem:[%s5296_s16 + $0x1198] sm:$0xff] }
  0xec   : > { %3678 = vmatpush1.bf16.msra.mxu0 %v3677_v0  ;;  %v817_v0 = vld [vmem:[%s5296_s16 + $0xd00] sm:$0xff]  ;;  %v906_v54 = vld [vmem:[%s5296_s16 + $0xfc8] sm:$0xff]  ;;  %v972_v42 = vld [vmem:[%s5296_s16 + $0x11d8] sm:$0xff] }
  0xed   : > { %3934 = vmatpush1.bf16.msra.mxu1 %v3933_v1  ;;  %3680 = vmatprep.subr.bf16.mxu0 %v3679_v2  ;;  %v825_v1 = vld [vmem:[%s5296_s16 + $0xd40] sm:$0xff]  ;;  %v819_v2 = vld [vmem:[%s5296_s16 + $0xd10] sm:$0xff]  ;;  %v3719_v59 = vpack.c.bf16 %v906_v54, %v898_v53  ;;  %v980_v53 = vld [vmem:[%s5296_s16 + $0x1218] sm:$0xff] }
  0xee   : > { %3936 = vmatprep.subr.bf16.mxu1 %v3935_v6  ;;  %v842_v6 = vld [vmem:[%s5296_s16 + $0xdc8] sm:$0xff]  ;;  %v3701_v9 = vpack.c.bf16 %v825_v1, %v817_v0  ;;  %v3957_v10 = vpack.c.bf16 %v827_v4, %v819_v2  ;;  %v907_v0 = vld [vmem:[%s5296_s16 + $0xfd0] sm:$0xff]  ;;  %v924_v4 = vld [vmem:[%s5296_s16 + $0x1058] sm:$0xff] }
  0xef   : > { %v3703_v11 = vpack.c.bf16 %v842_v6, %v834_v5  ;;  %v914_v1 = vld [vmem:[%s5296_s16 + $0x1008] sm:$0xff]  ;;  %v988_v54 = vld [vmem:[%s5296_s16 + $0x1258] sm:$0xff] }
  0xf0   : > { %3682 = vmatpush1.bf16.msra.mxu0 %v3681_v12  ;;  %v833_v12 = vld [vmem:[%s5296_s16 + $0xd80] sm:$0xff]  ;;  %v922_v2 = vld [vmem:[%s5296_s16 + $0x1048] sm:$0xff] }
  0xf1   : > { %3938 = vmatpush1.bf16.msra.mxu1 %v3937_v14  ;;  %3684 = vmatprep.subr.bf16.mxu0 %v3683_v15  ;;  %v835_v14 = vld [vmem:[%s5296_s16 + $0xd90] sm:$0xff]  ;;  %v3959_v15 = vpack.c.bf16 %v844_v8, %v836_v7  ;;  %v3705_v21 = vpack.c.bf16 %v841_v13, %v833_v12  ;;  %v3723_v7 = vpack.c.bf16 %v922_v2, %v914_v1  ;;  %v913_v8 = vld [vmem:[%s5296_s16 + $0x1000] sm:$0xff]  ;;  %v930_v13 = vld [vmem:[%s5296_s16 + $0x1088] sm:$0xff] }
  0xf2   : > { %3940 = vmatprep.subr.bf16.mxu1 %v3939_v19  ;;  %v852_v19 = vld [vmem:[%s5296_s16 + $0xe18] sm:$0xff]  ;;  %v3961_v22 = vpack.c.bf16 %v843_v16, %v835_v14  ;;  %v923_v12 = vld [vmem:[%s5296_s16 + $0x1050] sm:$0xff]  ;;  %v938_v14 = vld [vmem:[%s5296_s16 + $0x10c8] sm:$0xff] }
  0xf3   : > { %v940_v16 = vld [vmem:[%s5296_s16 + $0x10d8] sm:$0xff] }
  0xf4   : > { %3686 = vmatpush1.bf16.msra.mxu0 %v3685_v25  ;;  %v857_v25 = vld [vmem:[%s5296_s16 + $0xe40] sm:$0xff]  ;;  %v996_v1 = vld [vmem:[%s5296_s16 + $0x1298] sm:$0xff] }
  0xf5   : > { %3942 = vmatpush1.bf16.msra.mxu1 %v3941_v26  ;;  %3688 = vmatprep.subr.bf16.mxu0 %v3687_v27  ;;  %v851_v26 = vld [vmem:[%s5296_s16 + $0xe10] sm:$0xff]  ;;  %v3963_v27 = vpack.c.bf16 %v860_v20, %v852_v19  ;;  %v3709_v33 = vpack.c.bf16 %v857_v25, %v849_v24  ;;  %v3727_v20 = vpack.c.bf16 %v938_v14, %v930_v13  ;;  %v1004_v2 = vld [vmem:[%s5296_s16 + $0x12d8] sm:$0xff] }
  0xf6   : > { %3944 = vmatprep.subr.bf16.mxu1 %v3943_v31  ;;  %v868_v31 = vld [vmem:[%s5296_s16 + $0xe98] sm:$0xff]  ;;  %v3965_v34 = vpack.c.bf16 %v859_v28, %v851_v26  ;;  %v939_v25 = vld [vmem:[%s5296_s16 + $0x10d0] sm:$0xff]  ;;  %v946_v26 = vld [vmem:[%s5296_s16 + $0x1108] sm:$0xff] }
  0xf7   : > { %v948_v28 = vld [vmem:[%s5296_s16 + $0x1118] sm:$0xff] }
  0xf8   : > { %3690 = vmatpush1.bf16.msra.mxu0 %v3689_v37  ;;  %v873_v37 = vld [vmem:[%s5296_s16 + $0xec0] sm:$0xff]  ;;  %v1012_v13 = vld [vmem:[%s5296_s16 + $0x1318] sm:$0xff] }
  0xf9   : > { %3946 = vmatpush1.bf16.msra.mxu1 %v3945_v38  ;;  %3692 = vmatprep.subr.bf16.mxu0 %v3691_v39  ;;  %v867_v38 = vld [vmem:[%s5296_s16 + $0xe90] sm:$0xff]  ;;  %v3967_v39 = vpack.c.bf16 %v876_v32, %v868_v31  ;;  %v3713_v45 = vpack.c.bf16 %v873_v37, %v865_v36  ;;  %v3987_v37 = vpack.c.bf16 %v956_v29, %v948_v28  ;;  %v1020_v14 = vld [vmem:[%s5296_s16 + $0x1358] sm:$0xff] }
  0xfa   : > { %3948 = vmatprep.subr.bf16.mxu1 %v3947_v43  ;;  %v884_v43 = vld [vmem:[%s5296_s16 + $0xf18] sm:$0xff]  ;;  %v3969_v46 = vpack.c.bf16 %v875_v40, %v867_v38  ;;  %v947_v36 = vld [vmem:[%s5296_s16 + $0x1110] sm:$0xff]  ;;  %v970_v40 = vld [vmem:[%s5296_s16 + $0x11c8] sm:$0xff] }
  0xfb   : > { %v955_v38 = vld [vmem:[%s5296_s16 + $0x1150] sm:$0xff] }
  0xfc   : > { %3694 = vmatpush1.bf16.msra.mxu0 %v3693_v49  ;;  %v889_v49 = vld [vmem:[%s5296_s16 + $0xf40] sm:$0xff] }
  0xfd   : > { %3950 = vmatpush1.bf16.msra.mxu1 %v3949_v50  ;;  %3696 = vmatprep.subr.bf16.mxu0 %v3695_v51  ;;  %v883_v50 = vld [vmem:[%s5296_s16 + $0xf10] sm:$0xff]  ;;  %v3971_v51 = vpack.c.bf16 %v892_v44, %v884_v43  ;;  %v3717_v57 = vpack.c.bf16 %v889_v49, %v881_v48  ;;  %v3989_v44 = vpack.c.bf16 %v955_v38, %v947_v36  ;;  %v1050_v36 = vld [vmem:[%s5296_s16 + $0x1448] sm:$0xff]  ;;  %v1052_v38 = vld [vmem:[%s5296_s16 + $0x1458] sm:$0xff] }
  0xfe   : > { %3952 = vmatprep.subr.bf16.mxu1 %v3951_v55  ;;  %v900_v55 = vld [vmem:[%s5296_s16 + $0xf98] sm:$0xff]  ;;  %v3973_v58 = vpack.c.bf16 %v891_v52, %v883_v50  ;;  %v963_v48 = vld [vmem:[%s5296_s16 + $0x1190] sm:$0xff]  ;;  %v3991_v49 = vpack.c.bf16 %v972_v42, %v964_v41  ;;  %v986_v52 = vld [vmem:[%s5296_s16 + $0x1248] sm:$0xff] }
  0xff   : > { %v971_v50 = vld [vmem:[%s5296_s16 + $0x11d0] sm:$0xff]  ;;  %v1041_v42 = vld [vmem:[%s5296_s16 + $0x1400] sm:$0xff] }
 0x100   : > { %3698 = vmatpush1.bf16.msra.mxu0 %v3697_v61  ;;  %v905_v61 = vld [vmem:[%s5296_s16 + $0xfc0] sm:$0xff] }
 0x101   : > { %3954 = vmatpush1.bf16.msra.mxu1 %v3953_v62  ;;  %3700 = vmatprep.subr.bf16.mxu0 %v3699_v63  ;;  %v899_v62 = vld [vmem:[%s5296_s16 + $0xf90] sm:$0xff]  ;;  %v3975_v63 = vpack.c.bf16 %v908_v56, %v900_v55  ;;  %v3721_v5 = vpack.c.bf16 %v905_v61, %v897_v60  ;;  %v3993_v56 = vpack.c.bf16 %v971_v50, %v963_v48  ;;  %v1066_v48 = vld [vmem:[%s5296_s16 + $0x14c8] sm:$0xff]  ;;  %v1068_v50 = vld [vmem:[%s5296_s16 + $0x14d8] sm:$0xff] }
 0x102   : > { %3956 = vmatprep.subr.bf16.mxu1 %v3955_v3  ;;  %v916_v3 = vld [vmem:[%s5296_s16 + $0x1018] sm:$0xff]  ;;  %v3977_v6 = vpack.c.bf16 %v907_v0, %v899_v62  ;;  %v979_v60 = vld [vmem:[%s5296_s16 + $0x1210] sm:$0xff]  ;;  %v3995_v61 = vpack.c.bf16 %v988_v54, %v980_v53  ;;  %v1002_v0 = vld [vmem:[%s5296_s16 + $0x12c8] sm:$0xff] }
 0x103   : > { %v987_v62 = vld [vmem:[%s5296_s16 + $0x1250] sm:$0xff]  ;;  %v1057_v54 = vld [vmem:[%s5296_s16 + $0x1480] sm:$0xff] }
 0x104   : > { %3702 = vmatpush1.bf16.msra.mxu0 %v3701_v9  ;;  %v921_v9 = vld [vmem:[%s5296_s16 + $0x1040] sm:$0xff] }
 0x105   : > { %3958 = vmatpush1.bf16.msra.mxu1 %v3957_v10  ;;  %3704 = vmatprep.subr.bf16.mxu0 %v3703_v11  ;;  %v915_v10 = vld [vmem:[%s5296_s16 + $0x1010] sm:$0xff]  ;;  %v3979_v11 = vpack.c.bf16 %v924_v4, %v916_v3  ;;  %v3725_v18 = vpack.c.bf16 %v921_v9, %v913_v8  ;;  %v3997_v4 = vpack.c.bf16 %v987_v62, %v979_v60  ;;  %v1082_v60 = vld [vmem:[%s5296_s16 + $0x1548] sm:$0xff]  ;;  %v1084_v62 = vld [vmem:[%s5296_s16 + $0x1558] sm:$0xff] }
 0x106   : > { %3960 = vmatprep.subr.bf16.mxu1 %v3959_v15  ;;  %v932_v15 = vld [vmem:[%s5296_s16 + $0x1098] sm:$0xff]  ;;  %v3981_v19 = vpack.c.bf16 %v923_v12, %v915_v10  ;;  %v995_v8 = vld [vmem:[%s5296_s16 + $0x1290] sm:$0xff]  ;;  %v3999_v9 = vpack.c.bf16 %v1004_v2, %v996_v1  ;;  %v1018_v12 = vld [vmem:[%s5296_s16 + $0x1348] sm:$0xff] }
 0x107   : > { %v3983_v24 = vpack.c.bf16 %v940_v16, %v932_v15  ;;  %v1003_v10 = vld [vmem:[%s5296_s16 + $0x12d0] sm:$0xff]  ;;  %v1073_v2 = vld [vmem:[%s5296_s16 + $0x1500] sm:$0xff] }
 0x108   : > { %3706 = vmatpush1.bf16.msra.mxu0 %v3705_v21  ;;  %v929_v21 = vld [vmem:[%s5296_s16 + $0x1080] sm:$0xff]  ;;  %v4001_v16 = vpack.c.bf16 %v1003_v10, %v995_v8  ;;  %v1098_v8 = vld [vmem:[%s5296_s16 + $0x15c8] sm:$0xff]  ;;  %v1100_v10 = vld [vmem:[%s5296_s16 + $0x15d8] sm:$0xff] }
 0x109   : > { %3962 = vmatpush1.bf16.msra.mxu1 %v3961_v22  ;;  %3708 = vmatprep.subr.bf16.mxu0 %v3707_v23  ;;  %v937_v22 = vld [vmem:[%s5296_s16 + $0x10c0] sm:$0xff]  ;;  %v931_v23 = vld [vmem:[%s5296_s16 + $0x1090] sm:$0xff] }
 0x10a   : > { %3964 = vmatprep.subr.bf16.mxu1 %v3963_v27  ;;  %v954_v27 = vld [vmem:[%s5296_s16 + $0x1148] sm:$0xff]  ;;  %v3729_v31 = vpack.c.bf16 %v937_v22, %v929_v21  ;;  %v3985_v32 = vpack.c.bf16 %v939_v25, %v931_v23  ;;  %v4003_v21 = vpack.c.bf16 %v1020_v14, %v1012_v13  ;;  %v1019_v22 = vld [vmem:[%s5296_s16 + $0x1350] sm:$0xff]  ;;  %v1028_v25 = vld [vmem:[%s5296_s16 + $0x1398] sm:$0xff] }
 0x10b   : > { %v1026_v23 = vld [vmem:[%s5296_s16 + $0x1388] sm:$0xff]  ;;  %v1089_v14 = vld [vmem:[%s5296_s16 + $0x1580] sm:$0xff] }
 0x10c   : > { %3710 = vmatpush1.bf16.msra.mxu0 %v3709_v33  ;;  %v3731_v33 = vpack.c.bf16 %v954_v27, %v946_v26  ;;  %v1036_v26 = vld [vmem:[%s5296_s16 + $0x13d8] sm:$0xff] }
 0x10d   : > { %3966 = vmatpush1.bf16.msra.mxu1 %v3965_v34  ;;  %3712 = vmatprep.subr.bf16.mxu0 %v3711_v35  ;;  %v945_v34 = vld [vmem:[%s5296_s16 + $0x1100] sm:$0xff] }
 0x10e   : > { %3968 = vmatprep.subr.bf16.mxu1 %v3967_v39  ;;  %v953_v35 = vld [vmem:[%s5296_s16 + $0x1140] sm:$0xff]  ;;  %v962_v39 = vld [vmem:[%s5296_s16 + $0x1188] sm:$0xff] }
 0x10f   : > { %v3733_v43 = vpack.c.bf16 %v953_v35, %v945_v34  ;;  %v1035_v34 = vld [vmem:[%s5296_s16 + $0x13d0] sm:$0xff]  ;;  %v1042_v35 = vld [vmem:[%s5296_s16 + $0x1408] sm:$0xff] }
 0x110   : > { %3714 = vmatpush1.bf16.msra.mxu0 %v3713_v45  ;;  %v3735_v45 = vpack.c.bf16 %v970_v40, %v962_v39  ;;  %v3755_v41 = vpack.c.bf16 %v1050_v36, %v1042_v35 }
 0x111   : > { %3970 = vmatpush1.bf16.msra.mxu1 %v3969_v46  ;;  %3716 = vmatprep.subr.bf16.mxu0 %v3715_v47  ;;  %v961_v46 = vld [vmem:[%s5296_s16 + $0x1180] sm:$0xff] }
 0x112   : > { %3972 = vmatprep.subr.bf16.mxu1 %v3971_v51  ;;  %v969_v47 = vld [vmem:[%s5296_s16 + $0x11c0] sm:$0xff]  ;;  %v978_v51 = vld [vmem:[%s5296_s16 + $0x1208] sm:$0xff] }
 0x113   : > { %v3737_v55 = vpack.c.bf16 %v969_v47, %v961_v46  ;;  %v1051_v46 = vld [vmem:[%s5296_s16 + $0x1450] sm:$0xff]  ;;  %v1058_v47 = vld [vmem:[%s5296_s16 + $0x1488] sm:$0xff] }
 0x114   : > { %3718 = vmatpush1.bf16.msra.mxu0 %v3717_v57  ;;  %v3739_v57 = vpack.c.bf16 %v986_v52, %v978_v51  ;;  %v3759_v53 = vpack.c.bf16 %v1066_v48, %v1058_v47 }
 0x115   : > { %3974 = vmatpush1.bf16.msra.mxu1 %v3973_v58  ;;  %3720 = vmatprep.subr.bf16.mxu0 %v3719_v59  ;;  %v977_v58 = vld [vmem:[%s5296_s16 + $0x1200] sm:$0xff] }
 0x116   : > { %3976 = vmatprep.subr.bf16.mxu1 %v3975_v63  ;;  %v985_v59 = vld [vmem:[%s5296_s16 + $0x1240] sm:$0xff]  ;;  %v994_v63 = vld [vmem:[%s5296_s16 + $0x1288] sm:$0xff] }
 0x117   : > { %v3741_v3 = vpack.c.bf16 %v985_v59, %v977_v58  ;;  %v1067_v58 = vld [vmem:[%s5296_s16 + $0x14d0] sm:$0xff]  ;;  %v1074_v59 = vld [vmem:[%s5296_s16 + $0x1508] sm:$0xff] }
 0x118   : > { %3722 = vmatpush1.bf16.msra.mxu0 %v3721_v5  ;;  %v3743_v5 = vpack.c.bf16 %v1002_v0, %v994_v63  ;;  %v3763_v1 = vpack.c.bf16 %v1082_v60, %v1074_v59 }
 0x119   : > { %3978 = vmatpush1.bf16.msra.mxu1 %v3977_v6  ;;  %3724 = vmatprep.subr.bf16.mxu0 %v3723_v7  ;;  %v993_v6 = vld [vmem:[%s5296_s16 + $0x1280] sm:$0xff] }
 0x11a   : > { %3980 = vmatprep.subr.bf16.mxu1 %v3979_v11  ;;  %v1001_v7 = vld [vmem:[%s5296_s16 + $0x12c0] sm:$0xff]  ;;  %v1010_v11 = vld [vmem:[%s5296_s16 + $0x1308] sm:$0xff] }
 0x11b   : > { %1561 = vmatmul.mubr.f32.vlgmr.msra.gmra.mrb[0].mxu0 %v395_v17  ;;  %v3745_v15 = vpack.c.bf16 %v1001_v7, %v993_v6  ;;  %v1083_v6 = vld [vmem:[%s5296_s16 + $0x1550] sm:$0xff]  ;;  %v1090_v7 = vld [vmem:[%s5296_s16 + $0x1588] sm:$0xff] }
 0x11c   : > { %3726 = vmatpush1.bf16.msra.mxu0 %v3725_v18  ;;  %1845 = vmatmul.mubr.f32.vlgmr.msra.gmra.mrb[0].mxu1 %v395_v17  ;;  %v3747_v17 = vpack.c.bf16 %v1018_v12, %v1010_v11  ;;  %v1009_v18 = vld [vmem:[%s5296_s16 + $0x1300] sm:$0xff]  ;;  %v3767_v13 = vpack.c.bf16 %v1098_v8, %v1090_v7 }
 0x11d   : > { %3982 = vmatpush1.bf16.msra.mxu1 %v3981_v19  ;;  %3728 = vmatprep.subr.bf16.mxu0 %v3727_v20  ;;  %v1017_v19 = vld [vmem:[%s5296_s16 + $0x1340] sm:$0xff]  ;;  %v1011_v20 = vld [vmem:[%s5296_s16 + $0x1310] sm:$0xff] }
 0x11e   : > { %3984 = vmatprep.subr.bf16.mxu1 %v3983_v24  ;;  %1631 = vmatprep.mubr.f32.mxu0 %v398_v30  ;;  %v1034_v24 = vld [vmem:[%s5296_s16 + $0x13c8] sm:$0xff]  ;;  %v3749_v27 = vpack.c.bf16 %v1017_v19, %v1009_v18  ;;  %v4005_v28 = vpack.c.bf16 %v1019_v22, %v1011_v20  ;;  %v1099_v18 = vld [vmem:[%s5296_s16 + $0x15d0] sm:$0xff]  ;;  %v1116_v22 = vld [vmem:[%s5296_s16 + $0x1658] sm:$0xff] }
 0x11f   : > { %1915 = vmatprep.mubr.f32.mxu1 %v398_v30  ;;  %v3751_v29 = vpack.c.bf16 %v1034_v24, %v1026_v23  ;;  %v1025_v30 = vld [vmem:[%s5296_s16 + $0x1380] sm:$0xff]  ;;  %v1106_v19 = vld [vmem:[%s5296_s16 + $0x1608] sm:$0xff] }
 0x120   : > { %3730 = vmatpush1.bf16.msra.mxu0 %v3729_v31  ;;  %v1033_v31 = vld [vmem:[%s5296_s16 + $0x13c0] sm:$0xff]  ;;  %v1114_v20 = vld [vmem:[%s5296_s16 + $0x1648] sm:$0xff] }
 0x121   : > { %3986 = vmatpush1.bf16.msra.mxu1 %v3985_v32  ;;  %3732 = vmatprep.subr.bf16.mxu0 %v3731_v33  ;;  %v1027_v32 = vld [vmem:[%s5296_s16 + $0x1390] sm:$0xff]  ;;  %v4007_v33 = vpack.c.bf16 %v1036_v26, %v1028_v25  ;;  %v3753_v39 = vpack.c.bf16 %v1033_v31, %v1025_v30  ;;  %v3771_v25 = vpack.c.bf16 %v1114_v20, %v1106_v19  ;;  %v1105_v26 = vld [vmem:[%s5296_s16 + $0x1600] sm:$0xff]  ;;  %v1122_v31 = vld [vmem:[%s5296_s16 + $0x1688] sm:$0xff] }
 0x122   : > { %3988 = vmatprep.subr.bf16.mxu1 %v3987_v37  ;;  %v1044_v37 = vld [vmem:[%s5296_s16 + $0x1418] sm:$0xff]  ;;  %v4009_v40 = vpack.c.bf16 %v1035_v34, %v1027_v32  ;;  %v1115_v30 = vld [vmem:[%s5296_s16 + $0x1650] sm:$0xff]  ;;  %v1130_v32 = vld [vmem:[%s5296_s16 + $0x16c8] sm:$0xff] }
 0x123   : > { %v1132_v34 = vld [vmem:[%s5296_s16 + $0x16d8] sm:$0xff]  ;;  %v397_v19 = vld [vmem:[%s6655_s0 + $0x20] sm:$0xff] }
 0x124   : > { %3734 = vmatpush1.bf16.msra.mxu0 %v3733_v43  ;;  %v1049_v43 = vld [vmem:[%s5296_s16 + $0x1440] sm:$0xff] }
 0x125   : > { %3990 = vmatpush1.bf16.msra.mxu1 %v3989_v44  ;;  %3736 = vmatprep.subr.bf16.mxu0 %v3735_v45  ;;  %v1043_v44 = vld [vmem:[%s5296_s16 + $0x1410] sm:$0xff]  ;;  %v4011_v45 = vpack.c.bf16 %v1052_v38, %v1044_v37  ;;  %v3757_v51 = vpack.c.bf16 %v1049_v43, %v1041_v42  ;;  %v3775_v37 = vpack.c.bf16 %v1130_v32, %v1122_v31  ;;  %v1121_v38 = vld [vmem:[%s5296_s16 + $0x1680] sm:$0xff]  ;;  %v1138_v43 = vld [vmem:[%s5296_s16 + $0x1708] sm:$0xff] }
 0x126   : > { %3992 = vmatprep.subr.bf16.mxu1 %v3991_v49  ;;  %v1060_v49 = vld [vmem:[%s5296_s16 + $0x1498] sm:$0xff]  ;;  %v4013_v52 = vpack.c.bf16 %v1051_v46, %v1043_v44  ;;  %v1131_v42 = vld [vmem:[%s5296_s16 + $0x16d0] sm:$0xff]  ;;  %v1146_v44 = vld [vmem:[%s5296_s16 + $0x1748] sm:$0xff] }
 0x127   : > { %v1148_v46 = vld [vmem:[%s5296_s16 + $0x1758] sm:$0xff] }
 0x128   : > { %3738 = vmatpush1.bf16.msra.mxu0 %v3737_v55  ;;  %v1065_v55 = vld [vmem:[%s5296_s16 + $0x14c0] sm:$0xff]  ;;  %v1212_v31 = vld [vmem:[%s5296_s16 + $0x1958] sm:$0xff] }
 0x129   : > { %3994 = vmatpush1.bf16.msra.mxu1 %v3993_v56  ;;  %3740 = vmatprep.subr.bf16.mxu0 %v3739_v57  ;;  %v1059_v56 = vld [vmem:[%s5296_s16 + $0x1490] sm:$0xff]  ;;  %v4015_v57 = vpack.c.bf16 %v1068_v50, %v1060_v49  ;;  %v3761_v63 = vpack.c.bf16 %v1065_v55, %v1057_v54  ;;  %v3779_v49 = vpack.c.bf16 %v1146_v44, %v1138_v43  ;;  %v1137_v50 = vld [vmem:[%s5296_s16 + $0x1700] sm:$0xff]  ;;  %v1154_v55 = vld [vmem:[%s5296_s16 + $0x1788] sm:$0xff] }
 0x12a   : > { %3996 = vmatprep.subr.bf16.mxu1 %v3995_v61  ;;  %v1076_v61 = vld [vmem:[%s5296_s16 + $0x1518] sm:$0xff]  ;;  %v4017_v0 = vpack.c.bf16 %v1067_v58, %v1059_v56  ;;  %v1147_v54 = vld [vmem:[%s5296_s16 + $0x1750] sm:$0xff]  ;;  %v1162_v56 = vld [vmem:[%s5296_s16 + $0x17c8] sm:$0xff] }
 0x12b   : > { %v1164_v58 = vld [vmem:[%s5296_s16 + $0x17d8] sm:$0xff] }
 0x12c   : > { %3742 = vmatpush1.bf16.msra.mxu0 %v3741_v3  ;;  %v1081_v3 = vld [vmem:[%s5296_s16 + $0x1540] sm:$0xff]  ;;  %v400_v32 = vld [vmem:[%s6655_s0 + $0x38] sm:$0xff] }
 0x12d   : > { %3998 = vmatpush1.bf16.msra.mxu1 %v3997_v4  ;;  %3744 = vmatprep.subr.bf16.mxu0 %v3743_v5  ;;  %v1075_v4 = vld [vmem:[%s5296_s16 + $0x1510] sm:$0xff]  ;;  %v4019_v5 = vpack.c.bf16 %v1084_v62, %v1076_v61  ;;  %v3765_v11 = vpack.c.bf16 %v1081_v3, %v1073_v2  ;;  %v3783_v61 = vpack.c.bf16 %v1162_v56, %v1154_v55  ;;  %v1153_v62 = vld [vmem:[%s5296_s16 + $0x1780] sm:$0xff]  ;;  %v1170_v3 = vld [vmem:[%s5296_s16 + $0x1808] sm:$0xff] }
 0x12e   : > { %4000 = vmatprep.subr.bf16.mxu1 %v3999_v9  ;;  %v1092_v9 = vld [vmem:[%s5296_s16 + $0x1598] sm:$0xff]  ;;  %v4021_v12 = vpack.c.bf16 %v1083_v6, %v1075_v4  ;;  %v1163_v2 = vld [vmem:[%s5296_s16 + $0x17d0] sm:$0xff]  ;;  %v1178_v4 = vld [vmem:[%s5296_s16 + $0x1848] sm:$0xff] }
 0x12f   : > { %v1180_v6 = vld [vmem:[%s5296_s16 + $0x1858] sm:$0xff] }
 0x130   : > { %3746 = vmatpush1.bf16.msra.mxu0 %v3745_v15  ;;  %v1097_v15 = vld [vmem:[%s5296_s16 + $0x15c0] sm:$0xff]  ;;  %v1220_v43 = vld [vmem:[%s5296_s16 + $0x1998] sm:$0xff] }
 0x131   : > { %4002 = vmatpush1.bf16.msra.mxu1 %v4001_v16  ;;  %3748 = vmatprep.subr.bf16.mxu0 %v3747_v17  ;;  %v1091_v16 = vld [vmem:[%s5296_s16 + $0x1590] sm:$0xff]  ;;  %v4023_v17 = vpack.c.bf16 %v1100_v10, %v1092_v9  ;;  %v3769_v23 = vpack.c.bf16 %v1097_v15, %v1089_v14  ;;  %v3787_v9 = vpack.c.bf16 %v1178_v4, %v1170_v3  ;;  %v1169_v10 = vld [vmem:[%s5296_s16 + $0x1800] sm:$0xff]  ;;  %v1186_v15 = vld [vmem:[%s5296_s16 + $0x1888] sm:$0xff] }
 0x132   : > { %4004 = vmatprep.subr.bf16.mxu1 %v4003_v21  ;;  %v1108_v21 = vld [vmem:[%s5296_s16 + $0x1618] sm:$0xff]  ;;  %v4025_v24 = vpack.c.bf16 %v1099_v18, %v1091_v16  ;;  %v1179_v14 = vld [vmem:[%s5296_s16 + $0x1850] sm:$0xff]  ;;  %v1194_v16 = vld [vmem:[%s5296_s16 + $0x18c8] sm:$0xff] }
 0x133   : > { %v1196_v18 = vld [vmem:[%s5296_s16 + $0x18d8] sm:$0xff] }
 0x134   : > { %3750 = vmatpush1.bf16.msra.mxu0 %v3749_v27  ;;  %v1113_v27 = vld [vmem:[%s5296_s16 + $0x1640] sm:$0xff]  ;;  %v1228_v44 = vld [vmem:[%s5296_s16 + $0x19d8] sm:$0xff] }
 0x135   : > { %4006 = vmatpush1.bf16.msra.mxu1 %v4005_v28  ;;  %3752 = vmatprep.subr.bf16.mxu0 %v3751_v29  ;;  %v1107_v28 = vld [vmem:[%s5296_s16 + $0x1610] sm:$0xff]  ;;  %v4027_v29 = vpack.c.bf16 %v1116_v22, %v1108_v21  ;;  %v3773_v35 = vpack.c.bf16 %v1113_v27, %v1105_v26  ;;  %v3791_v22 = vpack.c.bf16 %v1194_v16, %v1186_v15  ;;  %v1236_v55 = vld [vmem:[%s5296_s16 + $0x1a18] sm:$0xff] }
 0x136   : > { %4008 = vmatprep.subr.bf16.mxu1 %v4007_v33  ;;  %v1124_v33 = vld [vmem:[%s5296_s16 + $0x1698] sm:$0xff]  ;;  %v4029_v36 = vpack.c.bf16 %v1115_v30, %v1107_v28  ;;  %v1195_v27 = vld [vmem:[%s5296_s16 + $0x18d0] sm:$0xff]  ;;  %v1202_v28 = vld [vmem:[%s5296_s16 + $0x1908] sm:$0xff] }
 0x137   : > { %v1204_v30 = vld [vmem:[%s5296_s16 + $0x1918] sm:$0xff] }
 0x138   : > { %3754 = vmatpush1.bf16.msra.mxu0 %v3753_v39  ;;  %v1129_v39 = vld [vmem:[%s5296_s16 + $0x16c0] sm:$0xff]  ;;  %v1244_v56 = vld [vmem:[%s5296_s16 + $0x1a58] sm:$0xff] }
 0x139   : > { %4010 = vmatpush1.bf16.msra.mxu1 %v4009_v40  ;;  %3756 = vmatprep.subr.bf16.mxu0 %v3755_v41  ;;  %v1123_v40 = vld [vmem:[%s5296_s16 + $0x1690] sm:$0xff]  ;;  %v4031_v41 = vpack.c.bf16 %v1132_v34, %v1124_v33  ;;  %v3777_v47 = vpack.c.bf16 %v1129_v39, %v1121_v38  ;;  %v4051_v39 = vpack.c.bf16 %v1212_v31, %v1204_v30  ;;  %v1252_v3 = vld [vmem:[%s5296_s16 + $0x1a98] sm:$0xff] }
 0x13a   : > { %4012 = vmatprep.subr.bf16.mxu1 %v4011_v45  ;;  %v1140_v45 = vld [vmem:[%s5296_s16 + $0x1718] sm:$0xff]  ;;  %v4033_v48 = vpack.c.bf16 %v1131_v42, %v1123_v40  ;;  %v1203_v38 = vld [vmem:[%s5296_s16 + $0x1910] sm:$0xff]  ;;  %v1226_v42 = vld [vmem:[%s5296_s16 + $0x19c8] sm:$0xff] }
 0x13b   : > { %v1211_v40 = vld [vmem:[%s5296_s16 + $0x1950] sm:$0xff]  ;;  %v1260_v4 = vld [vmem:[%s5296_s16 + $0x1ad8] sm:$0xff] }
 0x13c   : > { %3758 = vmatpush1.bf16.msra.mxu0 %v3757_v51  ;;  %v1145_v51 = vld [vmem:[%s5296_s16 + $0x1740] sm:$0xff]  ;;  %v1268_v15 = vld [vmem:[%s5296_s16 + $0x1b18] sm:$0xff] }
 0x13d   : > { %4014 = vmatpush1.bf16.msra.mxu1 %v4013_v52  ;;  %3760 = vmatprep.subr.bf16.mxu0 %v3759_v53  ;;  %v1139_v52 = vld [vmem:[%s5296_s16 + $0x1710] sm:$0xff]  ;;  %v4035_v53 = vpack.c.bf16 %v1148_v46, %v1140_v45  ;;  %v3781_v59 = vpack.c.bf16 %v1145_v51, %v1137_v50  ;;  %v4053_v46 = vpack.c.bf16 %v1211_v40, %v1203_v38  ;;  %v1276_v16 = vld [vmem:[%s5296_s16 + $0x1b58] sm:$0xff]  ;;  %v1306_v38 = vld [vmem:[%s5296_s16 + $0x1c48] sm:$0xff] }
 0x13e   : > { %4016 = vmatprep.subr.bf16.mxu1 %v4015_v57  ;;  %v1156_v57 = vld [vmem:[%s5296_s16 + $0x1798] sm:$0xff]  ;;  %v4037_v60 = vpack.c.bf16 %v1147_v54, %v1139_v52  ;;  %v1219_v50 = vld [vmem:[%s5296_s16 + $0x1990] sm:$0xff]  ;;  %v4055_v51 = vpack.c.bf16 %v1228_v44, %v1220_v43  ;;  %v1242_v54 = vld [vmem:[%s5296_s16 + $0x1a48] sm:$0xff] }
 0x13f   : > { %v1227_v52 = vld [vmem:[%s5296_s16 + $0x19d0] sm:$0xff]  ;;  %v1308_v40 = vld [vmem:[%s5296_s16 + $0x1c58] sm:$0xff]  ;;  %v1297_v44 = vld [vmem:[%s5296_s16 + $0x1c00] sm:$0xff] }
 0x140   : > { %3762 = vmatpush1.bf16.msra.mxu0 %v3761_v63  ;;  %v1161_v63 = vld [vmem:[%s5296_s16 + $0x17c0] sm:$0xff] }
 0x141   : > { %4018 = vmatpush1.bf16.msra.mxu1 %v4017_v0  ;;  %3764 = vmatprep.subr.bf16.mxu0 %v3763_v1  ;;  %v1155_v0 = vld [vmem:[%s5296_s16 + $0x1790] sm:$0xff]  ;;  %v4039_v1 = vpack.c.bf16 %v1164_v58, %v1156_v57  ;;  %v3785_v7 = vpack.c.bf16 %v1161_v63, %v1153_v62  ;;  %v4057_v58 = vpack.c.bf16 %v1227_v52, %v1219_v50  ;;  %v1322_v50 = vld [vmem:[%s5296_s16 + $0x1cc8] sm:$0xff]  ;;  %v1324_v52 = vld [vmem:[%s5296_s16 + $0x1cd8] sm:$0xff] }
 0x142   : > { %4020 = vmatprep.subr.bf16.mxu1 %v4019_v5  ;;  %v1172_v5 = vld [vmem:[%s5296_s16 + $0x1818] sm:$0xff]  ;;  %v4041_v8 = vpack.c.bf16 %v1163_v2, %v1155_v0  ;;  %v1235_v62 = vld [vmem:[%s5296_s16 + $0x1a10] sm:$0xff]  ;;  %v4059_v63 = vpack.c.bf16 %v1244_v56, %v1236_v55  ;;  %v1258_v2 = vld [vmem:[%s5296_s16 + $0x1ac8] sm:$0xff] }
 0x143   : > { %v1243_v0 = vld [vmem:[%s5296_s16 + $0x1a50] sm:$0xff]  ;;  %v1313_v56 = vld [vmem:[%s5296_s16 + $0x1c80] sm:$0xff] }
 0x144   : > { %3766 = vmatpush1.bf16.msra.mxu0 %v3765_v11  ;;  %v1177_v11 = vld [vmem:[%s5296_s16 + $0x1840] sm:$0xff] }
 0x145   : > { %4022 = vmatpush1.bf16.msra.mxu1 %v4021_v12  ;;  %3768 = vmatprep.subr.bf16.mxu0 %v3767_v13  ;;  %v1171_v12 = vld [vmem:[%s5296_s16 + $0x1810] sm:$0xff]  ;;  %v4043_v13 = vpack.c.bf16 %v1180_v6, %v1172_v5  ;;  %v3789_v20 = vpack.c.bf16 %v1177_v11, %v1169_v10  ;;  %v4061_v6 = vpack.c.bf16 %v1243_v0, %v1235_v62  ;;  %v1338_v62 = vld [vmem:[%s5296_s16 + $0x1d48] sm:$0xff]  ;;  %v1340_v0 = vld [vmem:[%s5296_s16 + $0x1d58] sm:$0xff] }
 0x146   : > { %4024 = vmatprep.subr.bf16.mxu1 %v4023_v17  ;;  %v1188_v17 = vld [vmem:[%s5296_s16 + $0x1898] sm:$0xff]  ;;  %v4045_v21 = vpack.c.bf16 %v1179_v14, %v1171_v12  ;;  %v1251_v10 = vld [vmem:[%s5296_s16 + $0x1a90] sm:$0xff]  ;;  %v4063_v11 = vpack.c.bf16 %v1260_v4, %v1252_v3  ;;  %v1274_v14 = vld [vmem:[%s5296_s16 + $0x1b48] sm:$0xff] }
 0x147   : > { %v4047_v26 = vpack.c.bf16 %v1196_v18, %v1188_v17  ;;  %v1259_v12 = vld [vmem:[%s5296_s16 + $0x1ad0] sm:$0xff]  ;;  %v1329_v4 = vld [vmem:[%s5296_s16 + $0x1d00] sm:$0xff] }
 0x148   : > { %3770 = vmatpush1.bf16.msra.mxu0 %v3769_v23  ;;  %v1185_v23 = vld [vmem:[%s5296_s16 + $0x1880] sm:$0xff]  ;;  %v4065_v18 = vpack.c.bf16 %v1259_v12, %v1251_v10  ;;  %v1354_v10 = vld [vmem:[%s5296_s16 + $0x1dc8] sm:$0xff]  ;;  %v1356_v12 = vld [vmem:[%s5296_s16 + $0x1dd8] sm:$0xff] }
 0x149   : > { %4026 = vmatpush1.bf16.msra.mxu1 %v4025_v24  ;;  %3772 = vmatprep.subr.bf16.mxu0 %v3771_v25  ;;  %v1193_v24 = vld [vmem:[%s5296_s16 + $0x18c0] sm:$0xff]  ;;  %v1187_v25 = vld [vmem:[%s5296_s16 + $0x1890] sm:$0xff] }
 0x14a   : > { %4028 = vmatprep.subr.bf16.mxu1 %v4027_v29  ;;  %v1210_v29 = vld [vmem:[%s5296_s16 + $0x1948] sm:$0xff]  ;;  %v3793_v33 = vpack.c.bf16 %v1193_v24, %v1185_v23  ;;  %v4049_v34 = vpack.c.bf16 %v1195_v27, %v1187_v25  ;;  %v4067_v23 = vpack.c.bf16 %v1276_v16, %v1268_v15  ;;  %v1275_v24 = vld [vmem:[%s5296_s16 + $0x1b50] sm:$0xff]  ;;  %v1284_v27 = vld [vmem:[%s5296_s16 + $0x1b98] sm:$0xff] }
 0x14b   : > { %v1282_v25 = vld [vmem:[%s5296_s16 + $0x1b88] sm:$0xff]  ;;  %v1345_v16 = vld [vmem:[%s5296_s16 + $0x1d80] sm:$0xff] }
 0x14c   : > { %3774 = vmatpush1.bf16.msra.mxu0 %v3773_v35  ;;  %v3795_v35 = vpack.c.bf16 %v1210_v29, %v1202_v28  ;;  %v1292_v28 = vld [vmem:[%s5296_s16 + $0x1bd8] sm:$0xff] }
 0x14d   : > { %4030 = vmatpush1.bf16.msra.mxu1 %v4029_v36  ;;  %3776 = vmatprep.subr.bf16.mxu0 %v3775_v37  ;;  %v1201_v36 = vld [vmem:[%s5296_s16 + $0x1900] sm:$0xff] }
 0x14e   : > { %4032 = vmatprep.subr.bf16.mxu1 %v4031_v41  ;;  %v1209_v37 = vld [vmem:[%s5296_s16 + $0x1940] sm:$0xff]  ;;  %v1218_v41 = vld [vmem:[%s5296_s16 + $0x1988] sm:$0xff] }
 0x14f   : > { %v3797_v45 = vpack.c.bf16 %v1209_v37, %v1201_v36  ;;  %v1291_v36 = vld [vmem:[%s5296_s16 + $0x1bd0] sm:$0xff]  ;;  %v1298_v37 = vld [vmem:[%s5296_s16 + $0x1c08] sm:$0xff] }
 0x150   : > { %3778 = vmatpush1.bf16.msra.mxu0 %v3777_v47  ;;  %v3799_v47 = vpack.c.bf16 %v1226_v42, %v1218_v41  ;;  %v3819_v43 = vpack.c.bf16 %v1306_v38, %v1298_v37 }
 0x151   : > { %4034 = vmatpush1.bf16.msra.mxu1 %v4033_v48  ;;  %3780 = vmatprep.subr.bf16.mxu0 %v3779_v49  ;;  %v1217_v48 = vld [vmem:[%s5296_s16 + $0x1980] sm:$0xff] }
 0x152   : > { %4036 = vmatprep.subr.bf16.mxu1 %v4035_v53  ;;  %v1225_v49 = vld [vmem:[%s5296_s16 + $0x19c0] sm:$0xff]  ;;  %v1234_v53 = vld [vmem:[%s5296_s16 + $0x1a08] sm:$0xff] }
 0x153   : > { %v3801_v57 = vpack.c.bf16 %v1225_v49, %v1217_v48  ;;  %v1307_v48 = vld [vmem:[%s5296_s16 + $0x1c50] sm:$0xff]  ;;  %v1314_v49 = vld [vmem:[%s5296_s16 + $0x1c88] sm:$0xff] }
 0x154   : > { %3782 = vmatpush1.bf16.msra.mxu0 %v3781_v59  ;;  %v3803_v59 = vpack.c.bf16 %v1242_v54, %v1234_v53  ;;  %v3823_v55 = vpack.c.bf16 %v1322_v50, %v1314_v49 }
 0x155   : > { %4038 = vmatpush1.bf16.msra.mxu1 %v4037_v60  ;;  %3784 = vmatprep.subr.bf16.mxu0 %v3783_v61  ;;  %v1233_v60 = vld [vmem:[%s5296_s16 + $0x1a00] sm:$0xff] }
 0x156   : > { %4040 = vmatprep.subr.bf16.mxu1 %v4039_v1  ;;  %v1241_v61 = vld [vmem:[%s5296_s16 + $0x1a40] sm:$0xff]  ;;  %v1250_v1 = vld [vmem:[%s5296_s16 + $0x1a88] sm:$0xff] }
 0x157   : > { %v3805_v5 = vpack.c.bf16 %v1241_v61, %v1233_v60  ;;  %v1323_v60 = vld [vmem:[%s5296_s16 + $0x1cd0] sm:$0xff]  ;;  %v1330_v61 = vld [vmem:[%s5296_s16 + $0x1d08] sm:$0xff] }
 0x158   : > { %3786 = vmatpush1.bf16.msra.mxu0 %v3785_v7  ;;  %v3807_v7 = vpack.c.bf16 %v1258_v2, %v1250_v1  ;;  %v3827_v3 = vpack.c.bf16 %v1338_v62, %v1330_v61 }
 0x159   : > { %4042 = vmatpush1.bf16.msra.mxu1 %v4041_v8  ;;  %3788 = vmatprep.subr.bf16.mxu0 %v3787_v9  ;;  %v1249_v8 = vld [vmem:[%s5296_s16 + $0x1a80] sm:$0xff] }
 0x15a   : > { %4044 = vmatprep.subr.bf16.mxu1 %v4043_v13  ;;  %v1257_v9 = vld [vmem:[%s5296_s16 + $0x1ac0] sm:$0xff]  ;;  %v1266_v13 = vld [vmem:[%s5296_s16 + $0x1b08] sm:$0xff] }
 0x15b   : > { %1632 = vmatmul.mubr.f32.vlgmr.msra.gmra.mrb[0].mxu0 %v397_v19  ;;  %v3809_v17 = vpack.c.bf16 %v1257_v9, %v1249_v8  ;;  %v1339_v8 = vld [vmem:[%s5296_s16 + $0x1d50] sm:$0xff]  ;;  %v1346_v9 = vld [vmem:[%s5296_s16 + $0x1d88] sm:$0xff] }
 0x15c   : > { %3790 = vmatpush1.bf16.msra.mxu0 %v3789_v20  ;;  %1916 = vmatmul.mubr.f32.vlgmr.msra.gmra.mrb[0].mxu1 %v397_v19  ;;  %v3811_v19 = vpack.c.bf16 %v1274_v14, %v1266_v13  ;;  %v1265_v20 = vld [vmem:[%s5296_s16 + $0x1b00] sm:$0xff]  ;;  %v3831_v15 = vpack.c.bf16 %v1354_v10, %v1346_v9 }
 0x15d   : > { %4046 = vmatpush1.bf16.msra.mxu1 %v4045_v21  ;;  %3792 = vmatprep.subr.bf16.mxu0 %v3791_v22  ;;  %v1273_v21 = vld [vmem:[%s5296_s16 + $0x1b40] sm:$0xff]  ;;  %v1267_v22 = vld [vmem:[%s5296_s16 + $0x1b10] sm:$0xff] }
 0x15e   : > { %4048 = vmatprep.subr.bf16.mxu1 %v4047_v26  ;;  %1702 = vmatprep.mubr.f32.mxu0 %v400_v32  ;;  %v1290_v26 = vld [vmem:[%s5296_s16 + $0x1bc8] sm:$0xff]  ;;  %v3813_v29 = vpack.c.bf16 %v1273_v21, %v1265_v20  ;;  %v4069_v30 = vpack.c.bf16 %v1275_v24, %v1267_v22  ;;  %v1355_v20 = vld [vmem:[%s5296_s16 + $0x1dd0] sm:$0xff]  ;;  %v1372_v24 = vld [vmem:[%s5296_s16 + $0x1e58] sm:$0xff] }
 0x15f   : > { %1986 = vmatprep.mubr.f32.mxu1 %v400_v32  ;;  %v3815_v31 = vpack.c.bf16 %v1290_v26, %v1282_v25  ;;  %v1281_v32 = vld [vmem:[%s5296_s16 + $0x1b80] sm:$0xff]  ;;  %v1362_v21 = vld [vmem:[%s5296_s16 + $0x1e08] sm:$0xff] }
 0x160   : > { %3794 = vmatpush1.bf16.msra.mxu0 %v3793_v33  ;;  %v1289_v33 = vld [vmem:[%s5296_s16 + $0x1bc0] sm:$0xff]  ;;  %v1370_v22 = vld [vmem:[%s5296_s16 + $0x1e48] sm:$0xff] }
 0x161   : > { %4050 = vmatpush1.bf16.msra.mxu1 %v4049_v34  ;;  %3796 = vmatprep.subr.bf16.mxu0 %v3795_v35  ;;  %v1283_v34 = vld [vmem:[%s5296_s16 + $0x1b90] sm:$0xff]  ;;  %v4071_v35 = vpack.c.bf16 %v1292_v28, %v1284_v27  ;;  %v3817_v41 = vpack.c.bf16 %v1289_v33, %v1281_v32  ;;  %v3835_v27 = vpack.c.bf16 %v1370_v22, %v1362_v21  ;;  %v1361_v28 = vld [vmem:[%s5296_s16 + $0x1e00] sm:$0xff]  ;;  %v1378_v33 = vld [vmem:[%s5296_s16 + $0x1e88] sm:$0xff] }
 0x162   : > { %4052 = vmatprep.subr.bf16.mxu1 %v4051_v39  ;;  %v1300_v39 = vld [vmem:[%s5296_s16 + $0x1c18] sm:$0xff]  ;;  %v4073_v42 = vpack.c.bf16 %v1291_v36, %v1283_v34  ;;  %v1371_v32 = vld [vmem:[%s5296_s16 + $0x1e50] sm:$0xff]  ;;  %v1386_v34 = vld [vmem:[%s5296_s16 + $0x1ec8] sm:$0xff] }
 0x163   : > { %v1388_v36 = vld [vmem:[%s5296_s16 + $0x1ed8] sm:$0xff]  ;;  %v399_v21 = vld [vmem:[%s6655_s0 + $0x30] sm:$0xff] }
 0x164   : > { %3798 = vmatpush1.bf16.msra.mxu0 %v3797_v45  ;;  %v1305_v45 = vld [vmem:[%s5296_s16 + $0x1c40] sm:$0xff] }
 0x165   : > { %4054 = vmatpush1.bf16.msra.mxu1 %v4053_v46  ;;  %3800 = vmatprep.subr.bf16.mxu0 %v3799_v47  ;;  %v1299_v46 = vld [vmem:[%s5296_s16 + $0x1c10] sm:$0xff]  ;;  %v4075_v47 = vpack.c.bf16 %v1308_v40, %v1300_v39  ;;  %v3821_v53 = vpack.c.bf16 %v1305_v45, %v1297_v44  ;;  %v3839_v39 = vpack.c.bf16 %v1386_v34, %v1378_v33  ;;  %v1377_v40 = vld [vmem:[%s5296_s16 + $0x1e80] sm:$0xff]  ;;  %v1394_v45 = vld [vmem:[%s5296_s16 + $0x1f08] sm:$0xff] }
 0x166   : > { %4056 = vmatprep.subr.bf16.mxu1 %v4055_v51  ;;  %v1316_v51 = vld [vmem:[%s5296_s16 + $0x1c98] sm:$0xff]  ;;  %v4077_v54 = vpack.c.bf16 %v1307_v48, %v1299_v46  ;;  %v1387_v44 = vld [vmem:[%s5296_s16 + $0x1ed0] sm:$0xff]  ;;  %v1402_v46 = vld [vmem:[%s5296_s16 + $0x1f48] sm:$0xff] }
 0x167   : > { %v1404_v48 = vld [vmem:[%s5296_s16 + $0x1f58] sm:$0xff] }
 0x168   : > { %3802 = vmatpush1.bf16.msra.mxu0 %v3801_v57  ;;  %v1321_v57 = vld [vmem:[%s5296_s16 + $0x1cc0] sm:$0xff]  ;;  %v448_v33 = vld [vmem:[%s5296_s16 + $0x178] sm:$0xff] }
 0x169   : > { %4058 = vmatpush1.bf16.msra.mxu1 %v4057_v58  ;;  %3804 = vmatprep.subr.bf16.mxu0 %v3803_v59  ;;  %v1315_v58 = vld [vmem:[%s5296_s16 + $0x1c90] sm:$0xff]  ;;  %v4079_v59 = vpack.c.bf16 %v1324_v52, %v1316_v51  ;;  %v3825_v1 = vpack.c.bf16 %v1321_v57, %v1313_v56  ;;  %v3843_v51 = vpack.c.bf16 %v1402_v46, %v1394_v45  ;;  %v1393_v52 = vld [vmem:[%s5296_s16 + $0x1f00] sm:$0xff]  ;;  %v1410_v57 = vld [vmem:[%s5296_s16 + $0x1f88] sm:$0xff] }
 0x16a   : > { %4060 = vmatprep.subr.bf16.mxu1 %v4059_v63  ;;  %v1332_v63 = vld [vmem:[%s5296_s16 + $0x1d18] sm:$0xff]  ;;  %v4081_v2 = vpack.c.bf16 %v1323_v60, %v1315_v58  ;;  %v1403_v56 = vld [vmem:[%s5296_s16 + $0x1f50] sm:$0xff]  ;;  %v1418_v58 = vld [vmem:[%s5296_s16 + $0x1fc8] sm:$0xff] }
 0x16b   : > { %v1420_v60 = vld [vmem:[%s5296_s16 + $0x1fd8] sm:$0xff] }
 0x16c   : > { %3806 = vmatpush1.bf16.msra.mxu0 %v3805_v5  ;;  %v1337_v5 = vld [vmem:[%s5296_s16 + $0x1d40] sm:$0xff]  ;;  %v456_v45 = vld [vmem:[%s5296_s16 + $0x1b8] sm:$0xff] }
 0x16d   : > { %4062 = vmatpush1.bf16.msra.mxu1 %v4061_v6  ;;  %3808 = vmatprep.subr.bf16.mxu0 %v3807_v7  ;;  %v1331_v6 = vld [vmem:[%s5296_s16 + $0x1d10] sm:$0xff]  ;;  %v4083_v7 = vpack.c.bf16 %v1340_v0, %v1332_v63  ;;  %v3829_v13 = vpack.c.bf16 %v1337_v5, %v1329_v4  ;;  %v3847_v63 = vpack.c.bf16 %v1418_v58, %v1410_v57  ;;  %v1409_v0 = vld [vmem:[%s5296_s16 + $0x1f80] sm:$0xff]  ;;  %v406_v5 = vld [vmem:[%s5296_s16 + $0x28] sm:$0xff] }
 0x16e   : > { %4064 = vmatprep.subr.bf16.mxu1 %v4063_v11  ;;  %v1348_v11 = vld [vmem:[%s5296_s16 + $0x1d98] sm:$0xff]  ;;  %v4085_v14 = vpack.c.bf16 %v1339_v8, %v1331_v6  ;;  %v1419_v4 = vld [vmem:[%s5296_s16 + $0x1fd0] sm:$0xff]  ;;  %v414_v6 = vld [vmem:[%s5296_s16 + $0x68] sm:$0xff] }
 0x16f   : > { %v416_v8 = vld [vmem:[%s5296_s16 + $0x78] sm:$0xff] }
 0x170   : > { %3810 = vmatpush1.bf16.msra.mxu0 %v3809_v17  ;;  %v1353_v17 = vld [vmem:[%s5296_s16 + $0x1dc0] sm:$0xff]  ;;  %v464_v46 = vld [vmem:[%s5296_s16 + $0x1f8] sm:$0xff] }
 0x171   : > { %4066 = vmatpush1.bf16.msra.mxu1 %v4065_v18  ;;  %3812 = vmatprep.subr.bf16.mxu0 %v3811_v19  ;;  %v1347_v18 = vld [vmem:[%s5296_s16 + $0x1d90] sm:$0xff]  ;;  %v4087_v19 = vpack.c.bf16 %v1356_v12, %v1348_v11  ;;  %v3833_v25 = vpack.c.bf16 %v1353_v17, %v1345_v16  ;;  %v4107_v11 = vpack.c.bf16 %v414_v6, %v406_v5  ;;  %v405_v12 = vld [vmem:[%s5296_s16 + $0x20] sm:$0xff]  ;;  %v422_v17 = vld [vmem:[%s5296_s16 + $0xa8] sm:$0xff] }
 0x172   : > { %4068 = vmatprep.subr.bf16.mxu1 %v4067_v23  ;;  %v1364_v23 = vld [vmem:[%s5296_s16 + $0x1e18] sm:$0xff]  ;;  %v4089_v26 = vpack.c.bf16 %v1355_v20, %v1347_v18  ;;  %v415_v16 = vld [vmem:[%s5296_s16 + $0x70] sm:$0xff]  ;;  %v430_v18 = vld [vmem:[%s5296_s16 + $0xe8] sm:$0xff] }
 0x173   : > { %v432_v20 = vld [vmem:[%s5296_s16 + $0xf8] sm:$0xff] }
 0x174   : > { %3814 = vmatpush1.bf16.msra.mxu0 %v3813_v29  ;;  %v1369_v29 = vld [vmem:[%s5296_s16 + $0x1e40] sm:$0xff]  ;;  %v472_v57 = vld [vmem:[%s5296_s16 + $0x238] sm:$0xff] }
 0x175   : > { %4070 = vmatpush1.bf16.msra.mxu1 %v4069_v30  ;;  %3816 = vmatprep.subr.bf16.mxu0 %v3815_v31  ;;  %v1363_v30 = vld [vmem:[%s5296_s16 + $0x1e10] sm:$0xff]  ;;  %v4091_v31 = vpack.c.bf16 %v1372_v24, %v1364_v23  ;;  %v3837_v37 = vpack.c.bf16 %v1369_v29, %v1361_v28  ;;  %v4111_v24 = vpack.c.bf16 %v430_v18, %v422_v17  ;;  %v480_v58 = vld [vmem:[%s5296_s16 + $0x278] sm:$0xff] }
 0x176   : > { %4072 = vmatprep.subr.bf16.mxu1 %v4071_v35  ;;  %v1380_v35 = vld [vmem:[%s5296_s16 + $0x1e98] sm:$0xff]  ;;  %v4093_v38 = vpack.c.bf16 %v1371_v32, %v1363_v30  ;;  %v431_v29 = vld [vmem:[%s5296_s16 + $0xf0] sm:$0xff]  ;;  %v438_v30 = vld [vmem:[%s5296_s16 + $0x128] sm:$0xff] }
 0x177   : > { %v440_v32 = vld [vmem:[%s5296_s16 + $0x138] sm:$0xff] }
 0x178   : > { %3818 = vmatpush1.bf16.msra.mxu0 %v3817_v41  ;;  %v1385_v41 = vld [vmem:[%s5296_s16 + $0x1ec0] sm:$0xff]  ;;  %v488_v5 = vld [vmem:[%s5296_s16 + $0x2b8] sm:$0xff] }
 0x179   : > { %4074 = vmatpush1.bf16.msra.mxu1 %v4073_v42  ;;  %3820 = vmatprep.subr.bf16.mxu0 %v3819_v43  ;;  %v1379_v42 = vld [vmem:[%s5296_s16 + $0x1e90] sm:$0xff]  ;;  %v4095_v43 = vpack.c.bf16 %v1388_v36, %v1380_v35  ;;  %v3841_v49 = vpack.c.bf16 %v1385_v41, %v1377_v40  ;;  %v4371_v40 = vpack.c.bf16 %v448_v33, %v440_v32  ;;  %v496_v6 = vld [vmem:[%s5296_s16 + $0x2f8] sm:$0xff] }
 0x17a   : > { %4076 = vmatprep.subr.bf16.mxu1 %v4075_v47  ;;  %v1396_v47 = vld [vmem:[%s5296_s16 + $0x1f18] sm:$0xff]  ;;  %v4097_v50 = vpack.c.bf16 %v1387_v44, %v1379_v42  ;;  %v447_v41 = vld [vmem:[%s5296_s16 + $0x170] sm:$0xff]  ;;  %v454_v42 = vld [vmem:[%s5296_s16 + $0x1a8] sm:$0xff] }
 0x17b   : > { %v4864_v44 = vld [vmem:[%s6655_s0 + $0x8] sm:$0xff]  ;;  %v504_v17 = vld [vmem:[%s5296_s16 + $0x338] sm:$0xff] }
 0x17c   : > { %3822 = vmatpush1.bf16.msra.mxu0 %v3821_v53  ;;  %v1401_v53 = vld [vmem:[%s5296_s16 + $0x1f40] sm:$0xff]  ;;  %v512_v18 = vld [vmem:[%s5296_s16 + $0x378] sm:$0xff] }
 0x17d   : > { %4078 = vmatpush1.bf16.msra.mxu1 %v4077_v54  ;;  %3824 = vmatprep.subr.bf16.mxu0 %v3823_v55  ;;  %v1395_v54 = vld [vmem:[%s5296_s16 + $0x1f10] sm:$0xff]  ;;  %v4099_v55 = vpack.c.bf16 %v1404_v48, %v1396_v47  ;;  %v3845_v61 = vpack.c.bf16 %v1401_v53, %v1393_v52  ;;  %v4375_v53 = vpack.c.bf16 %v464_v46, %v456_v45  ;;  %v533_v46 = vld [vmem:[%s5296_s16 + $0x420] sm:$0xff] }
 0x17e   : > { %4080 = vmatprep.subr.bf16.mxu1 %v4079_v59  ;;  %v1412_v59 = vld [vmem:[%s5296_s16 + $0x1f98] sm:$0xff]  ;;  %v4101_v62 = vpack.c.bf16 %v1403_v56, %v1395_v54  ;;  %v455_v52 = vld [vmem:[%s5296_s16 + $0x1b0] sm:$0xff]  ;;  %v478_v56 = vld [vmem:[%s5296_s16 + $0x268] sm:$0xff] }
 0x17f   : > { %v463_v54 = vld [vmem:[%s5296_s16 + $0x1f0] sm:$0xff] }
 0x180   : > { %3826 = vmatpush1.bf16.msra.mxu0 %v3825_v1  ;;  %v1417_v1 = vld [vmem:[%s5296_s16 + $0x1fc0] sm:$0xff] }
 0x181   : > { %4082 = vmatpush1.bf16.msra.mxu1 %v4081_v2  ;;  %3828 = vmatprep.subr.bf16.mxu0 %v3827_v3  ;;  %v1411_v2 = vld [vmem:[%s5296_s16 + $0x1f90] sm:$0xff]  ;;  %v4103_v3 = vpack.c.bf16 %v1420_v60, %v1412_v59  ;;  %v3849_v9 = vpack.c.bf16 %v1417_v1, %v1409_v0  ;;  %v4377_v60 = vpack.c.bf16 %v463_v54, %v455_v52  ;;  %v558_v52 = vld [vmem:[%s5296_s16 + $0x4e8] sm:$0xff]  ;;  %v560_v54 = vld [vmem:[%s5296_s16 + $0x4f8] sm:$0xff] }
 0x182   : > { %4084 = vmatprep.subr.bf16.mxu1 %v4083_v7  ;;  %v408_v7 = vld [vmem:[%s5296_s16 + $0x38] sm:$0xff]  ;;  %v4105_v10 = vpack.c.bf16 %v1419_v4, %v1411_v2  ;;  %v471_v0 = vld [vmem:[%s5296_s16 + $0x230] sm:$0xff]  ;;  %v4379_v1 = vpack.c.bf16 %v480_v58, %v472_v57  ;;  %v494_v4 = vld [vmem:[%s5296_s16 + $0x2e8] sm:$0xff] }
 0x183   : > { %v479_v2 = vld [vmem:[%s5296_s16 + $0x270] sm:$0xff]  ;;  %v549_v58 = vld [vmem:[%s5296_s16 + $0x4a0] sm:$0xff] }
 0x184   : > { %3830 = vmatpush1.bf16.msra.mxu0 %v3829_v13  ;;  %v413_v13 = vld [vmem:[%s5296_s16 + $0x60] sm:$0xff] }
 0x185   : > { %4086 = vmatpush1.bf16.msra.mxu1 %v4085_v14  ;;  %3832 = vmatprep.subr.bf16.mxu0 %v3831_v15  ;;  %v407_v14 = vld [vmem:[%s5296_s16 + $0x30] sm:$0xff]  ;;  %v4363_v15 = vpack.c.bf16 %v416_v8, %v408_v7  ;;  %v4109_v22 = vpack.c.bf16 %v413_v13, %v405_v12  ;;  %v4381_v8 = vpack.c.bf16 %v479_v2, %v471_v0  ;;  %v574_v0 = vld [vmem:[%s5296_s16 + $0x568] sm:$0xff]  ;;  %v576_v2 = vld [vmem:[%s5296_s16 + $0x578] sm:$0xff] }
 0x186   : > { %4088 = vmatprep.subr.bf16.mxu1 %v4087_v19  ;;  %v424_v19 = vld [vmem:[%s5296_s16 + $0xb8] sm:$0xff]  ;;  %v4365_v23 = vpack.c.bf16 %v415_v16, %v407_v14  ;;  %v487_v12 = vld [vmem:[%s5296_s16 + $0x2b0] sm:$0xff]  ;;  %v4383_v13 = vpack.c.bf16 %v496_v6, %v488_v5  ;;  %v510_v16 = vld [vmem:[%s5296_s16 + $0x368] sm:$0xff] }
 0x187   : > { %v4367_v28 = vpack.c.bf16 %v432_v20, %v424_v19  ;;  %v495_v14 = vld [vmem:[%s5296_s16 + $0x2f0] sm:$0xff]  ;;  %v565_v6 = vld [vmem:[%s5296_s16 + $0x520] sm:$0xff] }
 0x188   : > { %3834 = vmatpush1.bf16.msra.mxu0 %v3833_v25  ;;  %v421_v25 = vld [vmem:[%s5296_s16 + $0xa0] sm:$0xff]  ;;  %v4385_v20 = vpack.c.bf16 %v495_v14, %v487_v12  ;;  %v590_v12 = vld [vmem:[%s5296_s16 + $0x5e8] sm:$0xff]  ;;  %v592_v14 = vld [vmem:[%s5296_s16 + $0x5f8] sm:$0xff] }
 0x189   : > { %4090 = vmatpush1.bf16.msra.mxu1 %v4089_v26  ;;  %3836 = vmatprep.subr.bf16.mxu0 %v3835_v27  ;;  %v429_v26 = vld [vmem:[%s5296_s16 + $0xe0] sm:$0xff]  ;;  %v423_v27 = vld [vmem:[%s5296_s16 + $0xb0] sm:$0xff] }
 0x18a   : > { %4092 = vmatprep.subr.bf16.mxu1 %v4091_v31  ;;  %v446_v31 = vld [vmem:[%s5296_s16 + $0x168] sm:$0xff]  ;;  %v4113_v34 = vpack.c.bf16 %v429_v26, %v421_v25  ;;  %v4369_v35 = vpack.c.bf16 %v431_v29, %v423_v27  ;;  %v4387_v25 = vpack.c.bf16 %v512_v18, %v504_v17  ;;  %v511_v26 = vld [vmem:[%s5296_s16 + $0x370] sm:$0xff]  ;;  %v520_v29 = vld [vmem:[%s5296_s16 + $0x3b8] sm:$0xff] }
 0x18b   : > { %v4115_v36 = vpack.c.bf16 %v446_v31, %v438_v30  ;;  %v518_v27 = vld [vmem:[%s5296_s16 + $0x3a8] sm:$0xff]  ;;  %v528_v30 = vld [vmem:[%s5296_s16 + $0x3f8] sm:$0xff]  ;;  %v581_v18 = vld [vmem:[%s5296_s16 + $0x5a0] sm:$0xff] }
 0x18c   : > { %3838 = vmatpush1.bf16.msra.mxu0 %v3837_v37  ;;  %v437_v37 = vld [vmem:[%s5296_s16 + $0x120] sm:$0xff] }
 0x18d   : > { %4094 = vmatpush1.bf16.msra.mxu1 %v4093_v38  ;;  %3840 = vmatprep.subr.bf16.mxu0 %v3839_v39  ;;  %v445_v38 = vld [vmem:[%s5296_s16 + $0x160] sm:$0xff]  ;;  %v439_v39 = vld [vmem:[%s5296_s16 + $0x130] sm:$0xff] }
 0x18e   : > { %4096 = vmatprep.subr.bf16.mxu1 %v4095_v43  ;;  %v462_v43 = vld [vmem:[%s5296_s16 + $0x1e8] sm:$0xff]  ;;  %v4117_v47 = vpack.c.bf16 %v445_v38, %v437_v37  ;;  %v4373_v48 = vpack.c.bf16 %v447_v41, %v439_v39  ;;  %v4391_v37 = vpack.c.bf16 %v528_v30, %v520_v29  ;;  %v527_v38 = vld [vmem:[%s5296_s16 + $0x3f0] sm:$0xff]  ;;  %v536_v41 = vld [vmem:[%s5296_s16 + $0x438] sm:$0xff] }
 0x18f   : > { %v534_v39 = vld [vmem:[%s5296_s16 + $0x428] sm:$0xff]  ;;  %v597_v30 = vld [vmem:[%s5296_s16 + $0x620] sm:$0xff] }
 0x190   : > { %3842 = vmatpush1.bf16.msra.mxu0 %v3841_v49  ;;  %v4119_v49 = vpack.c.bf16 %v462_v43, %v454_v42  ;;  %v544_v42 = vld [vmem:[%s5296_s16 + $0x478] sm:$0xff] }
 0x191   : > { %4098 = vmatpush1.bf16.msra.mxu1 %v4097_v50  ;;  %3844 = vmatprep.subr.bf16.mxu0 %v3843_v51  ;;  %v453_v50 = vld [vmem:[%s5296_s16 + $0x1a0] sm:$0xff] }
 0x192   : > { %4100 = vmatprep.subr.bf16.mxu1 %v4099_v55  ;;  %v461_v51 = vld [vmem:[%s5296_s16 + $0x1e0] sm:$0xff]  ;;  %v470_v55 = vld [vmem:[%s5296_s16 + $0x228] sm:$0xff] }
 0x193   : > { %v4121_v59 = vpack.c.bf16 %v461_v51, %v453_v50  ;;  %v543_v50 = vld [vmem:[%s5296_s16 + $0x470] sm:$0xff]  ;;  %v550_v51 = vld [vmem:[%s5296_s16 + $0x4a8] sm:$0xff] }
 0x194   : > { %3846 = vmatpush1.bf16.msra.mxu0 %v3845_v61  ;;  %v4123_v61 = vpack.c.bf16 %v478_v56, %v470_v55  ;;  %v4143_v57 = vpack.c.bf16 %v558_v52, %v550_v51 }
 0x195   : > { %4102 = vmatpush1.bf16.msra.mxu1 %v4101_v62  ;;  %3848 = vmatprep.subr.bf16.mxu0 %v3847_v63  ;;  %v469_v62 = vld [vmem:[%s5296_s16 + $0x220] sm:$0xff] }
 0x196   : > { %4104 = vmatprep.subr.bf16.mxu1 %v4103_v3  ;;  %v477_v63 = vld [vmem:[%s5296_s16 + $0x260] sm:$0xff]  ;;  %v486_v3 = vld [vmem:[%s5296_s16 + $0x2a8] sm:$0xff] }
 0x197   : > { %v4125_v7 = vpack.c.bf16 %v477_v63, %v469_v62  ;;  %v559_v62 = vld [vmem:[%s5296_s16 + $0x4f0] sm:$0xff]  ;;  %v566_v63 = vld [vmem:[%s5296_s16 + $0x528] sm:$0xff] }
 0x198   : > { %3850 = vmatpush1.bf16.msra.mxu0 %v3849_v9  ;;  %v4127_v9 = vpack.c.bf16 %v494_v4, %v486_v3  ;;  %v4147_v5 = vpack.c.bf16 %v574_v0, %v566_v63 }
 0x199   : > { %4106 = vmatpush1.bf16.msra.mxu1 %v4105_v10  ;;  %4108 = vmatprep.subr.bf16.mxu0 %v4107_v11  ;;  %v485_v10 = vld [vmem:[%s5296_s16 + $0x2a0] sm:$0xff] }
 0x19a   : > { %4364 = vmatprep.subr.bf16.mxu1 %v4363_v15  ;;  %v493_v11 = vld [vmem:[%s5296_s16 + $0x2e0] sm:$0xff]  ;;  %v502_v15 = vld [vmem:[%s5296_s16 + $0x328] sm:$0xff] }
 0x19b   : > { %1703 = vmatmul.mubr.f32.vlgmr.msra.gmra.mrb[0].mxu0 %v399_v21  ;;  %v4129_v19 = vpack.c.bf16 %v493_v11, %v485_v10  ;;  %v575_v10 = vld [vmem:[%s5296_s16 + $0x570] sm:$0xff]  ;;  %v582_v11 = vld [vmem:[%s5296_s16 + $0x5a8] sm:$0xff] }
 0x19c   : > { %1987 = vmatmul.mubr.f32.vlgmr.msra.gmra.mrb[0].mxu1 %v399_v21  ;;  %4110 = vmatpush1.bf16.msra.mxu0 %v4109_v22  ;;  %v4131_v21 = vpack.c.bf16 %v510_v16, %v502_v15  ;;  %v501_v22 = vld [vmem:[%s5296_s16 + $0x320] sm:$0xff]  ;;  %v4151_v17 = vpack.c.bf16 %v590_v12, %v582_v11 }
 0x19d   : > { %4366 = vmatpush1.bf16.msra.mxu1 %v4365_v23  ;;  %4112 = vmatprep.subr.bf16.mxu0 %v4111_v24  ;;  %v509_v23 = vld [vmem:[%s5296_s16 + $0x360] sm:$0xff]  ;;  %v503_v24 = vld [vmem:[%s5296_s16 + $0x330] sm:$0xff] }
 0x19e   : > { %4368 = vmatprep.subr.bf16.mxu1 %v4367_v28  ;;  %2057 = vmatprep.mubr.f32.mxu0 %v4864_v44  ;;  %v526_v28 = vld [vmem:[%s5296_s16 + $0x3e8] sm:$0xff]  ;;  %v4133_v31 = vpack.c.bf16 %v509_v23, %v501_v22  ;;  %v4389_v32 = vpack.c.bf16 %v511_v26, %v503_v24  ;;  %v591_v22 = vld [vmem:[%s5296_s16 + $0x5f0] sm:$0xff]  ;;  %v608_v26 = vld [vmem:[%s5296_s16 + $0x678] sm:$0xff] }
 0x19f   : > { %2341 = vmatprep.mubr.f32.mxu1 %v4864_v44  ;;  %v4135_v33 = vpack.c.bf16 %v526_v28, %v518_v27  ;;  %v598_v23 = vld [vmem:[%s5296_s16 + $0x628] sm:$0xff] }
 0x1a0   : > { %4114 = vmatpush1.bf16.msra.mxu0 %v4113_v34  ;;  %v517_v34 = vld [vmem:[%s5296_s16 + $0x3a0] sm:$0xff]  ;;  %v606_v24 = vld [vmem:[%s5296_s16 + $0x668] sm:$0xff] }
 0x1a1   : > { %4370 = vmatpush1.bf16.msra.mxu1 %v4369_v35  ;;  %4116 = vmatprep.subr.bf16.mxu0 %v4115_v36  ;;  %v525_v35 = vld [vmem:[%s5296_s16 + $0x3e0] sm:$0xff]  ;;  %v519_v36 = vld [vmem:[%s5296_s16 + $0x3b0] sm:$0xff]  ;;  %v4155_v29 = vpack.c.bf16 %v606_v24, %v598_v23 }
 0x1a2   : > { %4372 = vmatprep.subr.bf16.mxu1 %v4371_v40  ;;  %v542_v40 = vld [vmem:[%s5296_s16 + $0x468] sm:$0xff]  ;;  %v4137_v43 = vpack.c.bf16 %v525_v35, %v517_v34  ;;  %v4393_v44 = vpack.c.bf16 %v527_v38, %v519_v36  ;;  %v607_v34 = vld [vmem:[%s5296_s16 + $0x670] sm:$0xff]  ;;  %v624_v38 = vld [vmem:[%s5296_s16 + $0x6f8] sm:$0xff] }
 0x1a3   : > { %v4139_v45 = vpack.c.bf16 %v542_v40, %v534_v39  ;;  %v614_v35 = vld [vmem:[%s5296_s16 + $0x6a8] sm:$0xff] }
 0x1a4   : > { %4118 = vmatpush1.bf16.msra.mxu0 %v4117_v47  ;;  %v541_v47 = vld [vmem:[%s5296_s16 + $0x460] sm:$0xff]  ;;  %v622_v36 = vld [vmem:[%s5296_s16 + $0x6e8] sm:$0xff] }
 0x1a5   : > { %4374 = vmatpush1.bf16.msra.mxu1 %v4373_v48  ;;  %4120 = vmatprep.subr.bf16.mxu0 %v4119_v49  ;;  %v535_v48 = vld [vmem:[%s5296_s16 + $0x430] sm:$0xff]  ;;  %v4395_v49 = vpack.c.bf16 %v544_v42, %v536_v41  ;;  %v4141_v55 = vpack.c.bf16 %v541_v47, %v533_v46  ;;  %v4159_v41 = vpack.c.bf16 %v622_v36, %v614_v35  ;;  %v613_v42 = vld [vmem:[%s5296_s16 + $0x6a0] sm:$0xff]  ;;  %v630_v47 = vld [vmem:[%s5296_s16 + $0x728] sm:$0xff] }
 0x1a6   : > { %4376 = vmatprep.subr.bf16.mxu1 %v4375_v53  ;;  %v552_v53 = vld [vmem:[%s5296_s16 + $0x4b8] sm:$0xff]  ;;  %v4397_v56 = vpack.c.bf16 %v543_v50, %v535_v48  ;;  %v623_v46 = vld [vmem:[%s5296_s16 + $0x6f0] sm:$0xff]  ;;  %v638_v48 = vld [vmem:[%s5296_s16 + $0x768] sm:$0xff] }
 0x1a7   : > { %v640_v50 = vld [vmem:[%s5296_s16 + $0x778] sm:$0xff] }
 0x1a8   : > { %4122 = vmatpush1.bf16.msra.mxu0 %v4121_v59  ;;  %v557_v59 = vld [vmem:[%s5296_s16 + $0x4e0] sm:$0xff]  ;;  %v704_v35 = vld [vmem:[%s5296_s16 + $0x978] sm:$0xff] }
 0x1a9   : > { %4378 = vmatpush1.bf16.msra.mxu1 %v4377_v60  ;;  %4124 = vmatprep.subr.bf16.mxu0 %v4123_v61  ;;  %v551_v60 = vld [vmem:[%s5296_s16 + $0x4b0] sm:$0xff]  ;;  %v4399_v61 = vpack.c.bf16 %v560_v54, %v552_v53  ;;  %v4145_v3 = vpack.c.bf16 %v557_v59, %v549_v58  ;;  %v4163_v53 = vpack.c.bf16 %v638_v48, %v630_v47  ;;  %v629_v54 = vld [vmem:[%s5296_s16 + $0x720] sm:$0xff]  ;;  %v646_v59 = vld [vmem:[%s5296_s16 + $0x7a8] sm:$0xff] }
 0x1aa   : > { %4380 = vmatprep.subr.bf16.mxu1 %v4379_v1  ;;  %v568_v1 = vld [vmem:[%s5296_s16 + $0x538] sm:$0xff]  ;;  %v4401_v4 = vpack.c.bf16 %v559_v62, %v551_v60  ;;  %v639_v58 = vld [vmem:[%s5296_s16 + $0x770] sm:$0xff]  ;;  %v654_v60 = vld [vmem:[%s5296_s16 + $0x7e8] sm:$0xff] }
 0x1ab   : > { %v656_v62 = vld [vmem:[%s5296_s16 + $0x7f8] sm:$0xff] }
 0x1ac   : > { %4126 = vmatpush1.bf16.msra.mxu0 %v4125_v7  ;;  %v573_v7 = vld [vmem:[%s5296_s16 + $0x560] sm:$0xff]  ;;  %v712_v47 = vld [vmem:[%s5296_s16 + $0x9b8] sm:$0xff] }
 0x1ad   : > { %4382 = vmatpush1.bf16.msra.mxu1 %v4381_v8  ;;  %4128 = vmatprep.subr.bf16.mxu0 %v4127_v9  ;;  %v567_v8 = vld [vmem:[%s5296_s16 + $0x530] sm:$0xff]  ;;  %v4403_v9 = vpack.c.bf16 %v576_v2, %v568_v1  ;;  %v4149_v15 = vpack.c.bf16 %v573_v7, %v565_v6  ;;  %v4167_v1 = vpack.c.bf16 %v654_v60, %v646_v59  ;;  %v645_v2 = vld [vmem:[%s5296_s16 + $0x7a0] sm:$0xff]  ;;  %v662_v7 = vld [vmem:[%s5296_s16 + $0x828] sm:$0xff] }
 0x1ae   : > { %4384 = vmatprep.subr.bf16.mxu1 %v4383_v13  ;;  %v584_v13 = vld [vmem:[%s5296_s16 + $0x5b8] sm:$0xff]  ;;  %v4405_v16 = vpack.c.bf16 %v575_v10, %v567_v8  ;;  %v655_v6 = vld [vmem:[%s5296_s16 + $0x7f0] sm:$0xff]  ;;  %v670_v8 = vld [vmem:[%s5296_s16 + $0x868] sm:$0xff] }
 0x1af   : > { %v672_v10 = vld [vmem:[%s5296_s16 + $0x878] sm:$0xff] }
 0x1b0   : > { %4130 = vmatpush1.bf16.msra.mxu0 %v4129_v19  ;;  %v589_v19 = vld [vmem:[%s5296_s16 + $0x5e0] sm:$0xff]  ;;  %v720_v48 = vld [vmem:[%s5296_s16 + $0x9f8] sm:$0xff] }
 0x1b1   : > { %4386 = vmatpush1.bf16.msra.mxu1 %v4385_v20  ;;  %4132 = vmatprep.subr.bf16.mxu0 %v4131_v21  ;;  %v583_v20 = vld [vmem:[%s5296_s16 + $0x5b0] sm:$0xff]  ;;  %v4407_v21 = vpack.c.bf16 %v592_v14, %v584_v13  ;;  %v4153_v27 = vpack.c.bf16 %v589_v19, %v581_v18  ;;  %v4171_v13 = vpack.c.bf16 %v670_v8, %v662_v7  ;;  %v661_v14 = vld [vmem:[%s5296_s16 + $0x820] sm:$0xff]  ;;  %v678_v19 = vld [vmem:[%s5296_s16 + $0x8a8] sm:$0xff] }
 0x1b2   : > { %4388 = vmatprep.subr.bf16.mxu1 %v4387_v25  ;;  %v600_v25 = vld [vmem:[%s5296_s16 + $0x638] sm:$0xff]  ;;  %v4409_v28 = vpack.c.bf16 %v591_v22, %v583_v20  ;;  %v671_v18 = vld [vmem:[%s5296_s16 + $0x870] sm:$0xff]  ;;  %v686_v20 = vld [vmem:[%s5296_s16 + $0x8e8] sm:$0xff] }
 0x1b3   : > { %v688_v22 = vld [vmem:[%s5296_s16 + $0x8f8] sm:$0xff] }
 0x1b4   : > { %4134 = vmatpush1.bf16.msra.mxu0 %v4133_v31  ;;  %v605_v31 = vld [vmem:[%s5296_s16 + $0x660] sm:$0xff]  ;;  %v728_v59 = vld [vmem:[%s5296_s16 + $0xa38] sm:$0xff] }
 0x1b5   : > { %4390 = vmatpush1.bf16.msra.mxu1 %v4389_v32  ;;  %4136 = vmatprep.subr.bf16.mxu0 %v4135_v33  ;;  %v599_v32 = vld [vmem:[%s5296_s16 + $0x630] sm:$0xff]  ;;  %v4411_v33 = vpack.c.bf16 %v608_v26, %v600_v25  ;;  %v4157_v39 = vpack.c.bf16 %v605_v31, %v597_v30  ;;  %v4175_v25 = vpack.c.bf16 %v686_v20, %v678_v19  ;;  %v677_v26 = vld [vmem:[%s5296_s16 + $0x8a0] sm:$0xff]  ;;  %v694_v31 = vld [vmem:[%s5296_s16 + $0x928] sm:$0xff] }
 0x1b6   : > { %4392 = vmatprep.subr.bf16.mxu1 %v4391_v37  ;;  %v616_v37 = vld [vmem:[%s5296_s16 + $0x6b8] sm:$0xff]  ;;  %v4413_v40 = vpack.c.bf16 %v607_v34, %v599_v32  ;;  %v687_v30 = vld [vmem:[%s5296_s16 + $0x8f0] sm:$0xff]  ;;  %v702_v32 = vld [vmem:[%s5296_s16 + $0x968] sm:$0xff] }
 0x1b7   : > { %v696_v34 = vld [vmem:[%s5296_s16 + $0x938] sm:$0xff] }
 0x1b8   : > { %4138 = vmatpush1.bf16.msra.mxu0 %v4137_v43  ;;  %v621_v43 = vld [vmem:[%s5296_s16 + $0x6e0] sm:$0xff]  ;;  %v736_v60 = vld [vmem:[%s5296_s16 + $0xa78] sm:$0xff] }
 0x1b9   : > { %4394 = vmatpush1.bf16.msra.mxu1 %v4393_v44  ;;  %4140 = vmatprep.subr.bf16.mxu0 %v4139_v45  ;;  %v615_v44 = vld [vmem:[%s5296_s16 + $0x6b0] sm:$0xff]  ;;  %v4415_v45 = vpack.c.bf16 %v624_v38, %v616_v37  ;;  %v4161_v51 = vpack.c.bf16 %v621_v43, %v613_v42  ;;  %v4179_v38 = vpack.c.bf16 %v702_v32, %v694_v31  ;;  %v744_v7 = vld [vmem:[%s5296_s16 + $0xab8] sm:$0xff] }
 0x1ba   : > { %4396 = vmatprep.subr.bf16.mxu1 %v4395_v49  ;;  %v632_v49 = vld [vmem:[%s5296_s16 + $0x738] sm:$0xff]  ;;  %v4417_v52 = vpack.c.bf16 %v623_v46, %v615_v44  ;;  %v4435_v42 = vpack.c.bf16 %v704_v35, %v696_v34  ;;  %v703_v43 = vld [vmem:[%s5296_s16 + $0x970] sm:$0xff]  ;;  %v710_v44 = vld [vmem:[%s5296_s16 + $0x9a8] sm:$0xff] }
 0x1bb   : > { %v4866_v46 = vld [vmem:[%s6655_s0 + $0x18] sm:$0xff] }
 0x1bc   : > { %4142 = vmatpush1.bf16.msra.mxu0 %v4141_v55  ;;  %v637_v55 = vld [vmem:[%s5296_s16 + $0x760] sm:$0xff]  ;;  %v752_v8 = vld [vmem:[%s5296_s16 + $0xaf8] sm:$0xff] }
 0x1bd   : > { %4398 = vmatpush1.bf16.msra.mxu1 %v4397_v56  ;;  %4144 = vmatprep.subr.bf16.mxu0 %v4143_v57  ;;  %v631_v56 = vld [vmem:[%s5296_s16 + $0x730] sm:$0xff]  ;;  %v4419_v57 = vpack.c.bf16 %v640_v50, %v632_v49  ;;  %v4165_v63 = vpack.c.bf16 %v637_v55, %v629_v54  ;;  %v4439_v55 = vpack.c.bf16 %v720_v48, %v712_v47  ;;  %v760_v19 = vld [vmem:[%s5296_s16 + $0xb38] sm:$0xff]  ;;  %v789_v48 = vld [vmem:[%s5296_s16 + $0xc20] sm:$0xff] }
 0x1be   : > { %4400 = vmatprep.subr.bf16.mxu1 %v4399_v61  ;;  %v648_v61 = vld [vmem:[%s5296_s16 + $0x7b8] sm:$0xff]  ;;  %v4421_v0 = vpack.c.bf16 %v639_v58, %v631_v56  ;;  %v711_v54 = vld [vmem:[%s5296_s16 + $0x9b0] sm:$0xff]  ;;  %v734_v58 = vld [vmem:[%s5296_s16 + $0xa68] sm:$0xff] }
 0x1bf   : > { %v719_v56 = vld [vmem:[%s5296_s16 + $0x9f0] sm:$0xff]  ;;  %v768_v20 = vld [vmem:[%s5296_s16 + $0xb78] sm:$0xff] }
 0x1c0   : > { %4146 = vmatpush1.bf16.msra.mxu0 %v4145_v3  ;;  %v653_v3 = vld [vmem:[%s5296_s16 + $0x7e0] sm:$0xff]  ;;  %v776_v31 = vld [vmem:[%s5296_s16 + $0xbb8] sm:$0xff] }
 0x1c1   : > { %4402 = vmatpush1.bf16.msra.mxu1 %v4401_v4  ;;  %4148 = vmatprep.subr.bf16.mxu0 %v4147_v5  ;;  %v647_v4 = vld [vmem:[%s5296_s16 + $0x7b0] sm:$0xff]  ;;  %v4423_v5 = vpack.c.bf16 %v656_v62, %v648_v61  ;;  %v4169_v11 = vpack.c.bf16 %v653_v3, %v645_v2  ;;  %v4441_v62 = vpack.c.bf16 %v719_v56, %v711_v54  ;;  %v784_v32 = vld [vmem:[%s5296_s16 + $0xbf8] sm:$0xff]  ;;  %v814_v54 = vld [vmem:[%s5296_s16 + $0xce8] sm:$0xff] }
 0x1c2   : > { %4404 = vmatprep.subr.bf16.mxu1 %v4403_v9  ;;  %v664_v9 = vld [vmem:[%s5296_s16 + $0x838] sm:$0xff]  ;;  %v4425_v12 = vpack.c.bf16 %v655_v6, %v647_v4  ;;  %v727_v2 = vld [vmem:[%s5296_s16 + $0xa30] sm:$0xff]  ;;  %v4443_v3 = vpack.c.bf16 %v736_v60, %v728_v59  ;;  %v750_v6 = vld [vmem:[%s5296_s16 + $0xae8] sm:$0xff] }
 0x1c3   : > { %v735_v4 = vld [vmem:[%s5296_s16 + $0xa70] sm:$0xff]  ;;  %v816_v56 = vld [vmem:[%s5296_s16 + $0xcf8] sm:$0xff]  ;;  %v805_v60 = vld [vmem:[%s5296_s16 + $0xca0] sm:$0xff] }
 0x1c4   : > { %4150 = vmatpush1.bf16.msra.mxu0 %v4149_v15  ;;  %v669_v15 = vld [vmem:[%s5296_s16 + $0x860] sm:$0xff] }
 0x1c5   : > { %4406 = vmatpush1.bf16.msra.mxu1 %v4405_v16  ;;  %4152 = vmatprep.subr.bf16.mxu0 %v4151_v17  ;;  %v663_v16 = vld [vmem:[%s5296_s16 + $0x830] sm:$0xff]  ;;  %v4427_v17 = vpack.c.bf16 %v672_v10, %v664_v9  ;;  %v4173_v23 = vpack.c.bf16 %v669_v15, %v661_v14  ;;  %v4445_v10 = vpack.c.bf16 %v735_v4, %v727_v2  ;;  %v830_v2 = vld [vmem:[%s5296_s16 + $0xd68] sm:$0xff]  ;;  %v832_v4 = vld [vmem:[%s5296_s16 + $0xd78] sm:$0xff] }
 0x1c6   : > { %4408 = vmatprep.subr.bf16.mxu1 %v4407_v21  ;;  %v680_v21 = vld [vmem:[%s5296_s16 + $0x8b8] sm:$0xff]  ;;  %v4429_v24 = vpack.c.bf16 %v671_v18, %v663_v16  ;;  %v743_v14 = vld [vmem:[%s5296_s16 + $0xab0] sm:$0xff]  ;;  %v4447_v15 = vpack.c.bf16 %v752_v8, %v744_v7  ;;  %v766_v18 = vld [vmem:[%s5296_s16 + $0xb68] sm:$0xff] }
 0x1c7   : > { %v751_v16 = vld [vmem:[%s5296_s16 + $0xaf0] sm:$0xff]  ;;  %v821_v8 = vld [vmem:[%s5296_s16 + $0xd20] sm:$0xff] }
 0x1c8   : > { %4154 = vmatpush1.bf16.msra.mxu0 %v4153_v27  ;;  %v685_v27 = vld [vmem:[%s5296_s16 + $0x8e0] sm:$0xff] }
 0x1c9   : > { %4410 = vmatpush1.bf16.msra.mxu1 %v4409_v28  ;;  %4156 = vmatprep.subr.bf16.mxu0 %v4155_v29  ;;  %v679_v28 = vld [vmem:[%s5296_s16 + $0x8b0] sm:$0xff]  ;;  %v4431_v29 = vpack.c.bf16 %v688_v22, %v680_v21  ;;  %v4177_v36 = vpack.c.bf16 %v685_v27, %v677_v26  ;;  %v4449_v22 = vpack.c.bf16 %v751_v16, %v743_v14  ;;  %v846_v14 = vld [vmem:[%s5296_s16 + $0xde8] sm:$0xff]  ;;  %v848_v16 = vld [vmem:[%s5296_s16 + $0xdf8] sm:$0xff] }
 0x1ca   : > { %4412 = vmatprep.subr.bf16.mxu1 %v4411_v33  ;;  %v4865_v33 = vld [vmem:[%s6655_s0] sm:$0xff]  ;;  %v4433_v37 = vpack.c.bf16 %v687_v30, %v679_v28  ;;  %v759_v26 = vld [vmem:[%s5296_s16 + $0xb30] sm:$0xff]  ;;  %v4451_v27 = vpack.c.bf16 %v768_v20, %v760_v19  ;;  %v782_v30 = vld [vmem:[%s5296_s16 + $0xbe8] sm:$0xff] }
 0x1cb   : > { %v767_v28 = vld [vmem:[%s5296_s16 + $0xb70] sm:$0xff]  ;;  %v837_v20 = vld [vmem:[%s5296_s16 + $0xda0] sm:$0xff] }
 0x1cc   : > { %4158 = vmatpush1.bf16.msra.mxu0 %v4157_v39  ;;  %v693_v39 = vld [vmem:[%s5296_s16 + $0x920] sm:$0xff]  ;;  %v4453_v34 = vpack.c.bf16 %v767_v28, %v759_v26  ;;  %v862_v26 = vld [vmem:[%s5296_s16 + $0xe68] sm:$0xff]  ;;  %v864_v28 = vld [vmem:[%s5296_s16 + $0xe78] sm:$0xff] }
 0x1cd   : > { %4414 = vmatpush1.bf16.msra.mxu1 %v4413_v40  ;;  %4160 = vmatprep.subr.bf16.mxu0 %v4159_v41  ;;  %v701_v40 = vld [vmem:[%s5296_s16 + $0x960] sm:$0xff]  ;;  %v695_v41 = vld [vmem:[%s5296_s16 + $0x930] sm:$0xff] }
 0x1ce   : > { %4416 = vmatprep.subr.bf16.mxu1 %v4415_v45  ;;  %v718_v45 = vld [vmem:[%s5296_s16 + $0x9e8] sm:$0xff]  ;;  %v4181_v49 = vpack.c.bf16 %v701_v40, %v693_v39  ;;  %v4437_v50 = vpack.c.bf16 %v703_v43, %v695_v41  ;;  %v4455_v39 = vpack.c.bf16 %v784_v32, %v776_v31  ;;  %v783_v40 = vld [vmem:[%s5296_s16 + $0xbf0] sm:$0xff]  ;;  %v792_v43 = vld [vmem:[%s5296_s16 + $0xc38] sm:$0xff] }
 0x1cf   : > { %v790_v41 = vld [vmem:[%s5296_s16 + $0xc28] sm:$0xff]  ;;  %v853_v32 = vld [vmem:[%s5296_s16 + $0xe20] sm:$0xff] }
 0x1d0   : > { %4162 = vmatpush1.bf16.msra.mxu0 %v4161_v51  ;;  %v4183_v51 = vpack.c.bf16 %v718_v45, %v710_v44  ;;  %v800_v44 = vld [vmem:[%s5296_s16 + $0xc78] sm:$0xff] }
 0x1d1   : > { %4418 = vmatpush1.bf16.msra.mxu1 %v4417_v52  ;;  %4164 = vmatprep.subr.bf16.mxu0 %v4163_v53  ;;  %v709_v52 = vld [vmem:[%s5296_s16 + $0x9a0] sm:$0xff] }
 0x1d2   : > { %4420 = vmatprep.subr.bf16.mxu1 %v4419_v57  ;;  %v717_v53 = vld [vmem:[%s5296_s16 + $0x9e0] sm:$0xff]  ;;  %v726_v57 = vld [vmem:[%s5296_s16 + $0xa28] sm:$0xff] }
 0x1d3   : > { %v4185_v61 = vpack.c.bf16 %v717_v53, %v709_v52  ;;  %v799_v52 = vld [vmem:[%s5296_s16 + $0xc70] sm:$0xff]  ;;  %v806_v53 = vld [vmem:[%s5296_s16 + $0xca8] sm:$0xff] }
 0x1d4   : > { %4166 = vmatpush1.bf16.msra.mxu0 %v4165_v63  ;;  %v4187_v63 = vpack.c.bf16 %v734_v58, %v726_v57  ;;  %v4207_v59 = vpack.c.bf16 %v814_v54, %v806_v53 }
 0x1d5   : > { %4422 = vmatpush1.bf16.msra.mxu1 %v4421_v0  ;;  %4168 = vmatprep.subr.bf16.mxu0 %v4167_v1  ;;  %v725_v0 = vld [vmem:[%s5296_s16 + $0xa20] sm:$0xff] }
 0x1d6   : > { %4424 = vmatprep.subr.bf16.mxu1 %v4423_v5  ;;  %v733_v1 = vld [vmem:[%s5296_s16 + $0xa60] sm:$0xff]  ;;  %v742_v5 = vld [vmem:[%s5296_s16 + $0xaa8] sm:$0xff] }
 0x1d7   : > { %v4189_v9 = vpack.c.bf16 %v733_v1, %v725_v0  ;;  %v815_v0 = vld [vmem:[%s5296_s16 + $0xcf0] sm:$0xff]  ;;  %v822_v1 = vld [vmem:[%s5296_s16 + $0xd28] sm:$0xff] }
 0x1d8   : > { %4170 = vmatpush1.bf16.msra.mxu0 %v4169_v11  ;;  %v4191_v11 = vpack.c.bf16 %v750_v6, %v742_v5  ;;  %v4211_v7 = vpack.c.bf16 %v830_v2, %v822_v1 }
 0x1d9   : > { %4426 = vmatpush1.bf16.msra.mxu1 %v4425_v12  ;;  %4172 = vmatprep.subr.bf16.mxu0 %v4171_v13  ;;  %v741_v12 = vld [vmem:[%s5296_s16 + $0xaa0] sm:$0xff] }
 0x1da   : > { %4428 = vmatprep.subr.bf16.mxu1 %v4427_v17  ;;  %v749_v13 = vld [vmem:[%s5296_s16 + $0xae0] sm:$0xff]  ;;  %v758_v17 = vld [vmem:[%s5296_s16 + $0xb28] sm:$0xff] }
 0x1db   : > { %2058 = vmatmul.mubr.f32.vlgmr.msra.gmra.mrb[2].mxu0 %v4865_v33  ;;  %v4193_v21 = vpack.c.bf16 %v749_v13, %v741_v12  ;;  %v831_v12 = vld [vmem:[%s5296_s16 + $0xd70] sm:$0xff]  ;;  %v838_v13 = vld [vmem:[%s5296_s16 + $0xda8] sm:$0xff] }
 0x1dc   : > { %4174 = vmatpush1.bf16.msra.mxu0 %v4173_v23  ;;  %2342 = vmatmul.mubr.f32.vlgmr.msra.gmra.mrb[2].mxu1 %v4865_v33  ;;  %v4195_v23 = vpack.c.bf16 %v766_v18, %v758_v17  ;;  %v4215_v19 = vpack.c.bf16 %v846_v14, %v838_v13 }
 0x1dd   : > { %4430 = vmatpush1.bf16.msra.mxu1 %v4429_v24  ;;  %4176 = vmatprep.subr.bf16.mxu0 %v4175_v25  ;;  %v757_v24 = vld [vmem:[%s5296_s16 + $0xb20] sm:$0xff] }
 0x1de   : > { %4432 = vmatprep.subr.bf16.mxu1 %v4431_v29  ;;  %2128 = vmatprep.mubr.f32.mxu0 %v4866_v46  ;;  %v765_v25 = vld [vmem:[%s5296_s16 + $0xb60] sm:$0xff]  ;;  %v774_v29 = vld [vmem:[%s5296_s16 + $0xba8] sm:$0xff] }
 0x1df   : > { %2412 = vmatprep.mubr.f32.mxu1 %v4866_v46  ;;  %v4197_v33 = vpack.c.bf16 %v765_v25, %v757_v24  ;;  %v4199_v35 = vpack.c.bf16 %v782_v30, %v774_v29  ;;  %v847_v24 = vld [vmem:[%s5296_s16 + $0xdf0] sm:$0xff]  ;;  %v854_v25 = vld [vmem:[%s5296_s16 + $0xe28] sm:$0xff] }
 0x1e0   : > { %4178 = vmatpush1.bf16.msra.mxu0 %v4177_v36  ;;  %v773_v36 = vld [vmem:[%s5296_s16 + $0xba0] sm:$0xff]  ;;  %v4219_v31 = vpack.c.bf16 %v862_v26, %v854_v25 }
 0x1e1   : > { %4434 = vmatpush1.bf16.msra.mxu1 %v4433_v37  ;;  %4180 = vmatprep.subr.bf16.mxu0 %v4179_v38  ;;  %v781_v37 = vld [vmem:[%s5296_s16 + $0xbe0] sm:$0xff]  ;;  %v775_v38 = vld [vmem:[%s5296_s16 + $0xbb0] sm:$0xff] }
 0x1e2   : > { %4436 = vmatprep.subr.bf16.mxu1 %v4435_v42  ;;  %v798_v42 = vld [vmem:[%s5296_s16 + $0xc68] sm:$0xff]  ;;  %v4201_v45 = vpack.c.bf16 %v781_v37, %v773_v36  ;;  %v4457_v46 = vpack.c.bf16 %v783_v40, %v775_v38  ;;  %v863_v36 = vld [vmem:[%s5296_s16 + $0xe70] sm:$0xff]  ;;  %v880_v40 = vld [vmem:[%s5296_s16 + $0xef8] sm:$0xff] }
 0x1e3   : > { %v4203_v47 = vpack.c.bf16 %v798_v42, %v790_v41  ;;  %v870_v37 = vld [vmem:[%s5296_s16 + $0xea8] sm:$0xff] }
 0x1e4   : > { %4182 = vmatpush1.bf16.msra.mxu0 %v4181_v49  ;;  %v797_v49 = vld [vmem:[%s5296_s16 + $0xc60] sm:$0xff]  ;;  %v878_v38 = vld [vmem:[%s5296_s16 + $0xee8] sm:$0xff] }
 0x1e5   : > { %4438 = vmatpush1.bf16.msra.mxu1 %v4437_v50  ;;  %4184 = vmatprep.subr.bf16.mxu0 %v4183_v51  ;;  %v791_v50 = vld [vmem:[%s5296_s16 + $0xc30] sm:$0xff]  ;;  %v4459_v51 = vpack.c.bf16 %v800_v44, %v792_v43  ;;  %v4205_v57 = vpack.c.bf16 %v797_v49, %v789_v48  ;;  %v4223_v43 = vpack.c.bf16 %v878_v38, %v870_v37  ;;  %v869_v44 = vld [vmem:[%s5296_s16 + $0xea0] sm:$0xff]  ;;  %v886_v49 = vld [vmem:[%s5296_s16 + $0xf28] sm:$0xff] }
 0x1e6   : > { %4440 = vmatprep.subr.bf16.mxu1 %v4439_v55  ;;  %v808_v55 = vld [vmem:[%s5296_s16 + $0xcb8] sm:$0xff]  ;;  %v4461_v58 = vpack.c.bf16 %v799_v52, %v791_v50  ;;  %v879_v48 = vld [vmem:[%s5296_s16 + $0xef0] sm:$0xff]  ;;  %v894_v50 = vld [vmem:[%s5296_s16 + $0xf68] sm:$0xff] }
 0x1e7   : > { %v896_v52 = vld [vmem:[%s5296_s16 + $0xf78] sm:$0xff] }
 0x1e8   : > { %4186 = vmatpush1.bf16.msra.mxu0 %v4185_v61  ;;  %v813_v61 = vld [vmem:[%s5296_s16 + $0xce0] sm:$0xff]  ;;  %v960_v37 = vld [vmem:[%s5296_s16 + $0x1178] sm:$0xff] }
 0x1e9   : > { %4442 = vmatpush1.bf16.msra.mxu1 %v4441_v62  ;;  %4188 = vmatprep.subr.bf16.mxu0 %v4187_v63  ;;  %v807_v62 = vld [vmem:[%s5296_s16 + $0xcb0] sm:$0xff]  ;;  %v4463_v63 = vpack.c.bf16 %v816_v56, %v808_v55  ;;  %v4209_v5 = vpack.c.bf16 %v813_v61, %v805_v60  ;;  %v4227_v55 = vpack.c.bf16 %v894_v50, %v886_v49  ;;  %v885_v56 = vld [vmem:[%s5296_s16 + $0xf20] sm:$0xff]  ;;  %v902_v61 = vld [vmem:[%s5296_s16 + $0xfa8] sm:$0xff] }
 0x1ea   : > { %4444 = vmatprep.subr.bf16.mxu1 %v4443_v3  ;;  %v824_v3 = vld [vmem:[%s5296_s16 + $0xd38] sm:$0xff]  ;;  %v4465_v6 = vpack.c.bf16 %v815_v0, %v807_v62  ;;  %v895_v60 = vld [vmem:[%s5296_s16 + $0xf70] sm:$0xff]  ;;  %v910_v62 = vld [vmem:[%s5296_s16 + $0xfe8] sm:$0xff] }
 0x1eb   : > { %v912_v0 = vld [vmem:[%s5296_s16 + $0xff8] sm:$0xff] }
 0x1ec   : > { %4190 = vmatpush1.bf16.msra.mxu0 %v4189_v9  ;;  %v829_v9 = vld [vmem:[%s5296_s16 + $0xd60] sm:$0xff]  ;;  %v968_v49 = vld [vmem:[%s5296_s16 + $0x11b8] sm:$0xff] }
 0x1ed   : > { %4446 = vmatpush1.bf16.msra.mxu1 %v4445_v10  ;;  %4192 = vmatprep.subr.bf16.mxu0 %v4191_v11  ;;  %v823_v10 = vld [vmem:[%s5296_s16 + $0xd30] sm:$0xff]  ;;  %v4467_v11 = vpack.c.bf16 %v832_v4, %v824_v3  ;;  %v4213_v17 = vpack.c.bf16 %v829_v9, %v821_v8  ;;  %v4231_v3 = vpack.c.bf16 %v910_v62, %v902_v61  ;;  %v901_v4 = vld [vmem:[%s5296_s16 + $0xfa0] sm:$0xff]  ;;  %v918_v9 = vld [vmem:[%s5296_s16 + $0x1028] sm:$0xff] }
 0x1ee   : > { %4448 = vmatprep.subr.bf16.mxu1 %v4447_v15  ;;  %v840_v15 = vld [vmem:[%s5296_s16 + $0xdb8] sm:$0xff]  ;;  %v4469_v18 = vpack.c.bf16 %v831_v12, %v823_v10  ;;  %v911_v8 = vld [vmem:[%s5296_s16 + $0xff0] sm:$0xff]  ;;  %v926_v10 = vld [vmem:[%s5296_s16 + $0x1068] sm:$0xff] }
 0x1ef   : > { %v928_v12 = vld [vmem:[%s5296_s16 + $0x1078] sm:$0xff] }
 0x1f0   : > { %4194 = vmatpush1.bf16.msra.mxu0 %v4193_v21  ;;  %v845_v21 = vld [vmem:[%s5296_s16 + $0xde0] sm:$0xff]  ;;  %v976_v50 = vld [vmem:[%s5296_s16 + $0x11f8] sm:$0xff] }
 0x1f1   : > { %4450 = vmatpush1.bf16.msra.mxu1 %v4449_v22  ;;  %4196 = vmatprep.subr.bf16.mxu0 %v4195_v23  ;;  %v839_v22 = vld [vmem:[%s5296_s16 + $0xdb0] sm:$0xff]  ;;  %v4471_v23 = vpack.c.bf16 %v848_v16, %v840_v15  ;;  %v4217_v29 = vpack.c.bf16 %v845_v21, %v837_v20  ;;  %v4235_v15 = vpack.c.bf16 %v926_v10, %v918_v9  ;;  %v917_v16 = vld [vmem:[%s5296_s16 + $0x1020] sm:$0xff]  ;;  %v934_v21 = vld [vmem:[%s5296_s16 + $0x10a8] sm:$0xff] }
 0x1f2   : > { %4452 = vmatprep.subr.bf16.mxu1 %v4451_v27  ;;  %v856_v27 = vld [vmem:[%s5296_s16 + $0xe38] sm:$0xff]  ;;  %v4473_v30 = vpack.c.bf16 %v847_v24, %v839_v22  ;;  %v927_v20 = vld [vmem:[%s5296_s16 + $0x1070] sm:$0xff]  ;;  %v942_v22 = vld [vmem:[%s5296_s16 + $0x10e8] sm:$0xff] }
 0x1f3   : > { %v944_v24 = vld [vmem:[%s5296_s16 + $0x10f8] sm:$0xff] }
 0x1f4   : > { %4198 = vmatpush1.bf16.msra.mxu0 %v4197_v33  ;;  %v861_v33 = vld [vmem:[%s5296_s16 + $0xe60] sm:$0xff]  ;;  %v984_v61 = vld [vmem:[%s5296_s16 + $0x1238] sm:$0xff] }
 0x1f5   : > { %4454 = vmatpush1.bf16.msra.mxu1 %v4453_v34  ;;  %4200 = vmatprep.subr.bf16.mxu0 %v4199_v35  ;;  %v855_v34 = vld [vmem:[%s5296_s16 + $0xe30] sm:$0xff]  ;;  %v4475_v35 = vpack.c.bf16 %v864_v28, %v856_v27  ;;  %v4221_v41 = vpack.c.bf16 %v861_v33, %v853_v32  ;;  %v4239_v27 = vpack.c.bf16 %v942_v22, %v934_v21  ;;  %v933_v28 = vld [vmem:[%s5296_s16 + $0x10a0] sm:$0xff]  ;;  %v950_v33 = vld [vmem:[%s5296_s16 + $0x1128] sm:$0xff] }
 0x1f6   : > { %4456 = vmatprep.subr.bf16.mxu1 %v4455_v39  ;;  %v872_v39 = vld [vmem:[%s5296_s16 + $0xeb8] sm:$0xff]  ;;  %v4477_v42 = vpack.c.bf16 %v863_v36, %v855_v34  ;;  %v943_v32 = vld [vmem:[%s5296_s16 + $0x10f0] sm:$0xff]  ;;  %v958_v34 = vld [vmem:[%s5296_s16 + $0x1168] sm:$0xff] }
 0x1f7   : > { %v952_v36 = vld [vmem:[%s5296_s16 + $0x1138] sm:$0xff] }
 0x1f8   : > { %4202 = vmatpush1.bf16.msra.mxu0 %v4201_v45  ;;  %v877_v45 = vld [vmem:[%s5296_s16 + $0xee0] sm:$0xff]  ;;  %v992_v62 = vld [vmem:[%s5296_s16 + $0x1278] sm:$0xff] }
 0x1f9   : > { %4458 = vmatpush1.bf16.msra.mxu1 %v4457_v46  ;;  %4204 = vmatprep.subr.bf16.mxu0 %v4203_v47  ;;  %v871_v46 = vld [vmem:[%s5296_s16 + $0xeb0] sm:$0xff]  ;;  %v4479_v47 = vpack.c.bf16 %v880_v40, %v872_v39  ;;  %v4225_v53 = vpack.c.bf16 %v877_v45, %v869_v44  ;;  %v4243_v40 = vpack.c.bf16 %v958_v34, %v950_v33  ;;  %v1000_v9 = vld [vmem:[%s5296_s16 + $0x12b8] sm:$0xff] }
 0x1fa   : > { %4460 = vmatprep.subr.bf16.mxu1 %v4459_v51  ;;  %v888_v51 = vld [vmem:[%s5296_s16 + $0xf38] sm:$0xff]  ;;  %v4481_v54 = vpack.c.bf16 %v879_v48, %v871_v46  ;;  %v4499_v44 = vpack.c.bf16 %v960_v37, %v952_v36  ;;  %v959_v45 = vld [vmem:[%s5296_s16 + $0x1170] sm:$0xff]  ;;  %v966_v46 = vld [vmem:[%s5296_s16 + $0x11a8] sm:$0xff] }
 0x1fb   : > { %v4868_v48 = vld [vmem:[%s6655_s0 + $0x28] sm:$0xff]  ;;  %v1008_v10 = vld [vmem:[%s5296_s16 + $0x12f8] sm:$0xff] }
 0x1fc   : > { %4206 = vmatpush1.bf16.msra.mxu0 %v4205_v57  ;;  %v893_v57 = vld [vmem:[%s5296_s16 + $0xf60] sm:$0xff]  ;;  %v1016_v21 = vld [vmem:[%s5296_s16 + $0x1338] sm:$0xff] }
 0x1fd   : > { %4462 = vmatpush1.bf16.msra.mxu1 %v4461_v58  ;;  %4208 = vmatprep.subr.bf16.mxu0 %v4207_v59  ;;  %v887_v58 = vld [vmem:[%s5296_s16 + $0xf30] sm:$0xff]  ;;  %v4483_v59 = vpack.c.bf16 %v896_v52, %v888_v51  ;;  %v4229_v1 = vpack.c.bf16 %v893_v57, %v885_v56  ;;  %v4503_v57 = vpack.c.bf16 %v976_v50, %v968_v49  ;;  %v1024_v22 = vld [vmem:[%s5296_s16 + $0x1378] sm:$0xff]  ;;  %v1045_v50 = vld [vmem:[%s5296_s16 + $0x1420] sm:$0xff] }
 0x1fe   : > { %4464 = vmatprep.subr.bf16.mxu1 %v4463_v63  ;;  %v904_v63 = vld [vmem:[%s5296_s16 + $0xfb8] sm:$0xff]  ;;  %v4485_v2 = vpack.c.bf16 %v895_v60, %v887_v58  ;;  %v967_v56 = vld [vmem:[%s5296_s16 + $0x11b0] sm:$0xff]  ;;  %v990_v60 = vld [vmem:[%s5296_s16 + $0x1268] sm:$0xff] }
 0x1ff   : > { %v975_v58 = vld [vmem:[%s5296_s16 + $0x11f0] sm:$0xff]  ;;  %v1032_v33 = vld [vmem:[%s5296_s16 + $0x13b8] sm:$0xff] }
 0x200   : > { %4210 = vmatpush1.bf16.msra.mxu0 %v4209_v5  ;;  %v909_v5 = vld [vmem:[%s5296_s16 + $0xfe0] sm:$0xff]  ;;  %v1040_v34 = vld [vmem:[%s5296_s16 + $0x13f8] sm:$0xff] }
 0x201   : > { %4466 = vmatpush1.bf16.msra.mxu1 %v4465_v6  ;;  %4212 = vmatprep.subr.bf16.mxu0 %v4211_v7  ;;  %v903_v6 = vld [vmem:[%s5296_s16 + $0xfb0] sm:$0xff]  ;;  %v4487_v7 = vpack.c.bf16 %v912_v0, %v904_v63  ;;  %v4233_v13 = vpack.c.bf16 %v909_v5, %v901_v4  ;;  %v4505_v0 = vpack.c.bf16 %v975_v58, %v967_v56  ;;  %v1070_v56 = vld [vmem:[%s5296_s16 + $0x14e8] sm:$0xff]  ;;  %v1072_v58 = vld [vmem:[%s5296_s16 + $0x14f8] sm:$0xff] }
 0x202   : > { %4468 = vmatprep.subr.bf16.mxu1 %v4467_v11  ;;  %v920_v11 = vld [vmem:[%s5296_s16 + $0x1038] sm:$0xff]  ;;  %v4489_v14 = vpack.c.bf16 %v911_v8, %v903_v6  ;;  %v983_v4 = vld [vmem:[%s5296_s16 + $0x1230] sm:$0xff]  ;;  %v4507_v5 = vpack.c.bf16 %v992_v62, %v984_v61  ;;  %v1006_v8 = vld [vmem:[%s5296_s16 + $0x12e8] sm:$0xff] }
 0x203   : > { %v991_v6 = vld [vmem:[%s5296_s16 + $0x1270] sm:$0xff]  ;;  %v1061_v62 = vld [vmem:[%s5296_s16 + $0x14a0] sm:$0xff] }
 0x204   : > { %4214 = vmatpush1.bf16.msra.mxu0 %v4213_v17  ;;  %v925_v17 = vld [vmem:[%s5296_s16 + $0x1060] sm:$0xff] }
 0x205   : > { %4470 = vmatpush1.bf16.msra.mxu1 %v4469_v18  ;;  %4216 = vmatprep.subr.bf16.mxu0 %v4215_v19  ;;  %v919_v18 = vld [vmem:[%s5296_s16 + $0x1030] sm:$0xff]  ;;  %v4491_v19 = vpack.c.bf16 %v928_v12, %v920_v11  ;;  %v4237_v25 = vpack.c.bf16 %v925_v17, %v917_v16  ;;  %v4509_v12 = vpack.c.bf16 %v991_v6, %v983_v4  ;;  %v1086_v4 = vld [vmem:[%s5296_s16 + $0x1568] sm:$0xff]  ;;  %v1088_v6 = vld [vmem:[%s5296_s16 + $0x1578] sm:$0xff] }
 0x206   : > { %4472 = vmatprep.subr.bf16.mxu1 %v4471_v23  ;;  %v936_v23 = vld [vmem:[%s5296_s16 + $0x10b8] sm:$0xff]  ;;  %v4493_v26 = vpack.c.bf16 %v927_v20, %v919_v18  ;;  %v999_v16 = vld [vmem:[%s5296_s16 + $0x12b0] sm:$0xff]  ;;  %v4511_v17 = vpack.c.bf16 %v1008_v10, %v1000_v9  ;;  %v1022_v20 = vld [vmem:[%s5296_s16 + $0x1368] sm:$0xff] }
 0x207   : > { %v1007_v18 = vld [vmem:[%s5296_s16 + $0x12f0] sm:$0xff]  ;;  %v1077_v10 = vld [vmem:[%s5296_s16 + $0x1520] sm:$0xff] }
 0x208   : > { %4218 = vmatpush1.bf16.msra.mxu0 %v4217_v29  ;;  %v941_v29 = vld [vmem:[%s5296_s16 + $0x10e0] sm:$0xff] }
 0x209   : > { %4474 = vmatpush1.bf16.msra.mxu1 %v4473_v30  ;;  %4220 = vmatprep.subr.bf16.mxu0 %v4219_v31  ;;  %v935_v30 = vld [vmem:[%s5296_s16 + $0x10b0] sm:$0xff]  ;;  %v4495_v31 = vpack.c.bf16 %v944_v24, %v936_v23  ;;  %v4241_v38 = vpack.c.bf16 %v941_v29, %v933_v28  ;;  %v4513_v24 = vpack.c.bf16 %v1007_v18, %v999_v16  ;;  %v1102_v16 = vld [vmem:[%s5296_s16 + $0x15e8] sm:$0xff]  ;;  %v1104_v18 = vld [vmem:[%s5296_s16 + $0x15f8] sm:$0xff] }
 0x20a   : > { %4476 = vmatprep.subr.bf16.mxu1 %v4475_v35  ;;  %v4867_v35 = vld [vmem:[%s6655_s0 + $0x10] sm:$0xff]  ;;  %v4497_v39 = vpack.c.bf16 %v943_v32, %v935_v30  ;;  %v4515_v29 = vpack.c.bf16 %v1024_v22, %v1016_v21  ;;  %v1038_v32 = vld [vmem:[%s5296_s16 + $0x13e8] sm:$0xff]  ;;  %v1093_v22 = vld [vmem:[%s5296_s16 + $0x15a0] sm:$0xff] }
 0x20b   : > { %v1015_v28 = vld [vmem:[%s5296_s16 + $0x1330] sm:$0xff] }
 0x20c   : > { %4222 = vmatpush1.bf16.msra.mxu0 %v4221_v41  ;;  %v949_v41 = vld [vmem:[%s5296_s16 + $0x1120] sm:$0xff]  ;;  %v1023_v30 = vld [vmem:[%s5296_s16 + $0x1370] sm:$0xff] }
 0x20d   : > { %4478 = vmatpush1.bf16.msra.mxu1 %v4477_v42  ;;  %4224 = vmatprep.subr.bf16.mxu0 %v4223_v43  ;;  %v957_v42 = vld [vmem:[%s5296_s16 + $0x1160] sm:$0xff]  ;;  %v951_v43 = vld [vmem:[%s5296_s16 + $0x1130] sm:$0xff]  ;;  %v4517_v36 = vpack.c.bf16 %v1023_v30, %v1015_v28  ;;  %v1118_v28 = vld [vmem:[%s5296_s16 + $0x1668] sm:$0xff] }
 0x20e   : > { %4480 = vmatprep.subr.bf16.mxu1 %v4479_v47  ;;  %v974_v47 = vld [vmem:[%s5296_s16 + $0x11e8] sm:$0xff]  ;;  %v4245_v51 = vpack.c.bf16 %v957_v42, %v949_v41  ;;  %v4501_v52 = vpack.c.bf16 %v959_v45, %v951_v43  ;;  %v4519_v41 = vpack.c.bf16 %v1040_v34, %v1032_v33  ;;  %v1039_v42 = vld [vmem:[%s5296_s16 + $0x13f0] sm:$0xff]  ;;  %v1048_v45 = vld [vmem:[%s5296_s16 + $0x1438] sm:$0xff] }
 0x20f   : > { %v1046_v43 = vld [vmem:[%s5296_s16 + $0x1428] sm:$0xff]  ;;  %v1120_v30 = vld [vmem:[%s5296_s16 + $0x1678] sm:$0xff]  ;;  %v1109_v34 = vld [vmem:[%s5296_s16 + $0x1620] sm:$0xff] }
 0x210   : > { %4226 = vmatpush1.bf16.msra.mxu0 %v4225_v53  ;;  %v4247_v53 = vpack.c.bf16 %v974_v47, %v966_v46  ;;  %v1056_v46 = vld [vmem:[%s5296_s16 + $0x1478] sm:$0xff] }
 0x211   : > { %4482 = vmatpush1.bf16.msra.mxu1 %v4481_v54  ;;  %4228 = vmatprep.subr.bf16.mxu0 %v4227_v55  ;;  %v965_v54 = vld [vmem:[%s5296_s16 + $0x11a0] sm:$0xff] }
 0x212   : > { %4484 = vmatprep.subr.bf16.mxu1 %v4483_v59  ;;  %v973_v55 = vld [vmem:[%s5296_s16 + $0x11e0] sm:$0xff]  ;;  %v982_v59 = vld [vmem:[%s5296_s16 + $0x1228] sm:$0xff] }
 0x213   : > { %v4249_v63 = vpack.c.bf16 %v973_v55, %v965_v54  ;;  %v1055_v54 = vld [vmem:[%s5296_s16 + $0x1470] sm:$0xff]  ;;  %v1062_v55 = vld [vmem:[%s5296_s16 + $0x14a8] sm:$0xff] }
 0x214   : > { %4230 = vmatpush1.bf16.msra.mxu0 %v4229_v1  ;;  %v4251_v1 = vpack.c.bf16 %v990_v60, %v982_v59  ;;  %v4271_v61 = vpack.c.bf16 %v1070_v56, %v1062_v55 }
 0x215   : > { %4486 = vmatpush1.bf16.msra.mxu1 %v4485_v2  ;;  %4232 = vmatprep.subr.bf16.mxu0 %v4231_v3  ;;  %v981_v2 = vld [vmem:[%s5296_s16 + $0x1220] sm:$0xff] }
 0x216   : > { %4488 = vmatprep.subr.bf16.mxu1 %v4487_v7  ;;  %v989_v3 = vld [vmem:[%s5296_s16 + $0x1260] sm:$0xff]  ;;  %v998_v7 = vld [vmem:[%s5296_s16 + $0x12a8] sm:$0xff] }
 0x217   : > { %v4253_v11 = vpack.c.bf16 %v989_v3, %v981_v2  ;;  %v1071_v2 = vld [vmem:[%s5296_s16 + $0x14f0] sm:$0xff]  ;;  %v1078_v3 = vld [vmem:[%s5296_s16 + $0x1528] sm:$0xff] }
 0x218   : > { %4234 = vmatpush1.bf16.msra.mxu0 %v4233_v13  ;;  %v4255_v13 = vpack.c.bf16 %v1006_v8, %v998_v7  ;;  %v4275_v9 = vpack.c.bf16 %v1086_v4, %v1078_v3 }
 0x219   : > { %4490 = vmatpush1.bf16.msra.mxu1 %v4489_v14  ;;  %4236 = vmatprep.subr.bf16.mxu0 %v4235_v15  ;;  %v997_v14 = vld [vmem:[%s5296_s16 + $0x12a0] sm:$0xff] }
 0x21a   : > { %4492 = vmatprep.subr.bf16.mxu1 %v4491_v19  ;;  %v1005_v15 = vld [vmem:[%s5296_s16 + $0x12e0] sm:$0xff]  ;;  %v1014_v19 = vld [vmem:[%s5296_s16 + $0x1328] sm:$0xff] }
 0x21b   : > { %2129 = vmatmul.mubr.f32.vlgmr.msra.gmra.mrb[2].mxu0 %v4867_v35  ;;  %v4257_v23 = vpack.c.bf16 %v1005_v15, %v997_v14  ;;  %v1087_v14 = vld [vmem:[%s5296_s16 + $0x1570] sm:$0xff]  ;;  %v1094_v15 = vld [vmem:[%s5296_s16 + $0x15a8] sm:$0xff] }
 0x21c   : > { %4238 = vmatpush1.bf16.msra.mxu0 %v4237_v25  ;;  %2413 = vmatmul.mubr.f32.vlgmr.msra.gmra.mrb[2].mxu1 %v4867_v35  ;;  %v4259_v25 = vpack.c.bf16 %v1022_v20, %v1014_v19  ;;  %v4279_v21 = vpack.c.bf16 %v1102_v16, %v1094_v15 }
 0x21d   : > { %4494 = vmatpush1.bf16.msra.mxu1 %v4493_v26  ;;  %4240 = vmatprep.subr.bf16.mxu0 %v4239_v27  ;;  %v1013_v26 = vld [vmem:[%s5296_s16 + $0x1320] sm:$0xff] }
 0x21e   : > { %4496 = vmatprep.subr.bf16.mxu1 %v4495_v31  ;;  %2199 = vmatprep.mubr.f32.mxu0 %v4868_v48  ;;  %v1021_v27 = vld [vmem:[%s5296_s16 + $0x1360] sm:$0xff]  ;;  %v1030_v31 = vld [vmem:[%s5296_s16 + $0x13a8] sm:$0xff] }
 0x21f   : > { %2483 = vmatprep.mubr.f32.mxu1 %v4868_v48  ;;  %v4261_v35 = vpack.c.bf16 %v1021_v27, %v1013_v26  ;;  %v4263_v37 = vpack.c.bf16 %v1038_v32, %v1030_v31  ;;  %v1103_v26 = vld [vmem:[%s5296_s16 + $0x15f0] sm:$0xff]  ;;  %v1110_v27 = vld [vmem:[%s5296_s16 + $0x1628] sm:$0xff] }
 0x220   : > { %4242 = vmatpush1.bf16.msra.mxu0 %v4241_v38  ;;  %v1029_v38 = vld [vmem:[%s5296_s16 + $0x13a0] sm:$0xff]  ;;  %v4283_v33 = vpack.c.bf16 %v1118_v28, %v1110_v27 }
 0x221   : > { %4498 = vmatpush1.bf16.msra.mxu1 %v4497_v39  ;;  %4244 = vmatprep.subr.bf16.mxu0 %v4243_v40  ;;  %v1037_v39 = vld [vmem:[%s5296_s16 + $0x13e0] sm:$0xff]  ;;  %v1031_v40 = vld [vmem:[%s5296_s16 + $0x13b0] sm:$0xff] }
 0x222   : > { %4500 = vmatprep.subr.bf16.mxu1 %v4499_v44  ;;  %v1054_v44 = vld [vmem:[%s5296_s16 + $0x1468] sm:$0xff]  ;;  %v4265_v47 = vpack.c.bf16 %v1037_v39, %v1029_v38  ;;  %v4521_v48 = vpack.c.bf16 %v1039_v42, %v1031_v40  ;;  %v1119_v38 = vld [vmem:[%s5296_s16 + $0x1670] sm:$0xff]  ;;  %v1136_v42 = vld [vmem:[%s5296_s16 + $0x16f8] sm:$0xff] }
 0x223   : > { %v4267_v49 = vpack.c.bf16 %v1054_v44, %v1046_v43  ;;  %v1126_v39 = vld [vmem:[%s5296_s16 + $0x16a8] sm:$0xff] }
 0x224   : > { %4246 = vmatpush1.bf16.msra.mxu0 %v4245_v51  ;;  %v1053_v51 = vld [vmem:[%s5296_s16 + $0x1460] sm:$0xff]  ;;  %v1134_v40 = vld [vmem:[%s5296_s16 + $0x16e8] sm:$0xff] }
 0x225   : > { %4502 = vmatpush1.bf16.msra.mxu1 %v4501_v52  ;;  %4248 = vmatprep.subr.bf16.mxu0 %v4247_v53  ;;  %v1047_v52 = vld [vmem:[%s5296_s16 + $0x1430] sm:$0xff]  ;;  %v4523_v53 = vpack.c.bf16 %v1056_v46, %v1048_v45  ;;  %v4269_v59 = vpack.c.bf16 %v1053_v51, %v1045_v50  ;;  %v4287_v45 = vpack.c.bf16 %v1134_v40, %v1126_v39  ;;  %v1125_v46 = vld [vmem:[%s5296_s16 + $0x16a0] sm:$0xff]  ;;  %v1142_v51 = vld [vmem:[%s5296_s16 + $0x1728] sm:$0xff] }
 0x226   : > { %4504 = vmatprep.subr.bf16.mxu1 %v4503_v57  ;;  %v1064_v57 = vld [vmem:[%s5296_s16 + $0x14b8] sm:$0xff]  ;;  %v4525_v60 = vpack.c.bf16 %v1055_v54, %v1047_v52  ;;  %v1135_v50 = vld [vmem:[%s5296_s16 + $0x16f0] sm:$0xff]  ;;  %v1150_v52 = vld [vmem:[%s5296_s16 + $0x1768] sm:$0xff] }
 0x227   : > { %v1152_v54 = vld [vmem:[%s5296_s16 + $0x1778] sm:$0xff] }
 0x228   : > { %4250 = vmatpush1.bf16.msra.mxu0 %v4249_v63  ;;  %v1069_v63 = vld [vmem:[%s5296_s16 + $0x14e0] sm:$0xff]  ;;  %v1216_v39 = vld [vmem:[%s5296_s16 + $0x1978] sm:$0xff] }
 0x229   : > { %4506 = vmatpush1.bf16.msra.mxu1 %v4505_v0  ;;  %4252 = vmatprep.subr.bf16.mxu0 %v4251_v1  ;;  %v1063_v0 = vld [vmem:[%s5296_s16 + $0x14b0] sm:$0xff]  ;;  %v4527_v1 = vpack.c.bf16 %v1072_v58, %v1064_v57  ;;  %v4273_v7 = vpack.c.bf16 %v1069_v63, %v1061_v62  ;;  %v4291_v57 = vpack.c.bf16 %v1150_v52, %v1142_v51  ;;  %v1141_v58 = vld [vmem:[%s5296_s16 + $0x1720] sm:$0xff]  ;;  %v1158_v63 = vld [vmem:[%s5296_s16 + $0x17a8] sm:$0xff] }
 0x22a   : > { %4508 = vmatprep.subr.bf16.mxu1 %v4507_v5  ;;  %v1080_v5 = vld [vmem:[%s5296_s16 + $0x1538] sm:$0xff]  ;;  %v4529_v8 = vpack.c.bf16 %v1071_v2, %v1063_v0  ;;  %v1151_v62 = vld [vmem:[%s5296_s16 + $0x1770] sm:$0xff]  ;;  %v1166_v0 = vld [vmem:[%s5296_s16 + $0x17e8] sm:$0xff] }
 0x22b   : > { %v1168_v2 = vld [vmem:[%s5296_s16 + $0x17f8] sm:$0xff] }
 0x22c   : > { %4254 = vmatpush1.bf16.msra.mxu0 %v4253_v11  ;;  %v1085_v11 = vld [vmem:[%s5296_s16 + $0x1560] sm:$0xff]  ;;  %v1224_v51 = vld [vmem:[%s5296_s16 + $0x19b8] sm:$0xff] }
 0x22d   : > { %4510 = vmatpush1.bf16.msra.mxu1 %v4509_v12  ;;  %4256 = vmatprep.subr.bf16.mxu0 %v4255_v13  ;;  %v1079_v12 = vld [vmem:[%s5296_s16 + $0x1530] sm:$0xff]  ;;  %v4531_v13 = vpack.c.bf16 %v1088_v6, %v1080_v5  ;;  %v4277_v19 = vpack.c.bf16 %v1085_v11, %v1077_v10  ;;  %v4295_v5 = vpack.c.bf16 %v1166_v0, %v1158_v63  ;;  %v1157_v6 = vld [vmem:[%s5296_s16 + $0x17a0] sm:$0xff]  ;;  %v1174_v11 = vld [vmem:[%s5296_s16 + $0x1828] sm:$0xff] }
 0x22e   : > { %4512 = vmatprep.subr.bf16.mxu1 %v4511_v17  ;;  %v1096_v17 = vld [vmem:[%s5296_s16 + $0x15b8] sm:$0xff]  ;;  %v4533_v20 = vpack.c.bf16 %v1087_v14, %v1079_v12  ;;  %v1167_v10 = vld [vmem:[%s5296_s16 + $0x17f0] sm:$0xff]  ;;  %v1182_v12 = vld [vmem:[%s5296_s16 + $0x1868] sm:$0xff] }
 0x22f   : > { %v1184_v14 = vld [vmem:[%s5296_s16 + $0x1878] sm:$0xff] }
 0x230   : > { %4258 = vmatpush1.bf16.msra.mxu0 %v4257_v23  ;;  %v1101_v23 = vld [vmem:[%s5296_s16 + $0x15e0] sm:$0xff]  ;;  %v1232_v52 = vld [vmem:[%s5296_s16 + $0x19f8] sm:$0xff] }
 0x231   : > { %4514 = vmatpush1.bf16.msra.mxu1 %v4513_v24  ;;  %4260 = vmatprep.subr.bf16.mxu0 %v4259_v25  ;;  %v1095_v24 = vld [vmem:[%s5296_s16 + $0x15b0] sm:$0xff]  ;;  %v4535_v25 = vpack.c.bf16 %v1104_v18, %v1096_v17  ;;  %v4281_v31 = vpack.c.bf16 %v1101_v23, %v1093_v22  ;;  %v4299_v17 = vpack.c.bf16 %v1182_v12, %v1174_v11  ;;  %v1173_v18 = vld [vmem:[%s5296_s16 + $0x1820] sm:$0xff]  ;;  %v1190_v23 = vld [vmem:[%s5296_s16 + $0x18a8] sm:$0xff] }
 0x232   : > { %4516 = vmatprep.subr.bf16.mxu1 %v4515_v29  ;;  %v1112_v29 = vld [vmem:[%s5296_s16 + $0x1638] sm:$0xff]  ;;  %v4537_v32 = vpack.c.bf16 %v1103_v26, %v1095_v24  ;;  %v1183_v22 = vld [vmem:[%s5296_s16 + $0x1870] sm:$0xff]  ;;  %v1198_v24 = vld [vmem:[%s5296_s16 + $0x18e8] sm:$0xff] }
 0x233   : > { %v1200_v26 = vld [vmem:[%s5296_s16 + $0x18f8] sm:$0xff] }
 0x234   : > { %4262 = vmatpush1.bf16.msra.mxu0 %v4261_v35  ;;  %v1117_v35 = vld [vmem:[%s5296_s16 + $0x1660] sm:$0xff]  ;;  %v1240_v63 = vld [vmem:[%s5296_s16 + $0x1a38] sm:$0xff] }
 0x235   : > { %4518 = vmatpush1.bf16.msra.mxu1 %v4517_v36  ;;  %4264 = vmatprep.subr.bf16.mxu0 %v4263_v37  ;;  %v1111_v36 = vld [vmem:[%s5296_s16 + $0x1630] sm:$0xff]  ;;  %v4539_v37 = vpack.c.bf16 %v1120_v30, %v1112_v29  ;;  %v4285_v43 = vpack.c.bf16 %v1117_v35, %v1109_v34  ;;  %v4303_v29 = vpack.c.bf16 %v1198_v24, %v1190_v23  ;;  %v1189_v30 = vld [vmem:[%s5296_s16 + $0x18a0] sm:$0xff]  ;;  %v1206_v35 = vld [vmem:[%s5296_s16 + $0x1928] sm:$0xff] }
 0x236   : > { %4520 = vmatprep.subr.bf16.mxu1 %v4519_v41  ;;  %v1128_v41 = vld [vmem:[%s5296_s16 + $0x16b8] sm:$0xff]  ;;  %v4541_v44 = vpack.c.bf16 %v1119_v38, %v1111_v36  ;;  %v1199_v34 = vld [vmem:[%s5296_s16 + $0x18f0] sm:$0xff]  ;;  %v1214_v36 = vld [vmem:[%s5296_s16 + $0x1968] sm:$0xff] }
 0x237   : > { %v1208_v38 = vld [vmem:[%s5296_s16 + $0x1938] sm:$0xff] }
 0x238   : > { %4266 = vmatpush1.bf16.msra.mxu0 %v4265_v47  ;;  %v1133_v47 = vld [vmem:[%s5296_s16 + $0x16e0] sm:$0xff]  ;;  %v1248_v0 = vld [vmem:[%s5296_s16 + $0x1a78] sm:$0xff] }
 0x239   : > { %4522 = vmatpush1.bf16.msra.mxu1 %v4521_v48  ;;  %4268 = vmatprep.subr.bf16.mxu0 %v4267_v49  ;;  %v1127_v48 = vld [vmem:[%s5296_s16 + $0x16b0] sm:$0xff]  ;;  %v4543_v49 = vpack.c.bf16 %v1136_v42, %v1128_v41  ;;  %v4289_v55 = vpack.c.bf16 %v1133_v47, %v1125_v46  ;;  %v4307_v42 = vpack.c.bf16 %v1214_v36, %v1206_v35  ;;  %v1256_v11 = vld [vmem:[%s5296_s16 + $0x1ab8] sm:$0xff]  ;;  %v1294_v35 = vld [vmem:[%s5296_s16 + $0x1be8] sm:$0xff] }
 0x23a   : > { %4524 = vmatprep.subr.bf16.mxu1 %v4523_v53  ;;  %v1144_v53 = vld [vmem:[%s5296_s16 + $0x1738] sm:$0xff]  ;;  %v4545_v56 = vpack.c.bf16 %v1135_v50, %v1127_v48  ;;  %v4563_v46 = vpack.c.bf16 %v1216_v39, %v1208_v38  ;;  %v1215_v47 = vld [vmem:[%s5296_s16 + $0x1970] sm:$0xff]  ;;  %v1222_v48 = vld [vmem:[%s5296_s16 + $0x19a8] sm:$0xff] }
 0x23b   : > { %v4870_v50 = vld [vmem:[%s6655_s0 + $0x38] sm:$0xff] }
 0x23c   : > { %4270 = vmatpush1.bf16.msra.mxu0 %v4269_v59  ;;  %v1149_v59 = vld [vmem:[%s5296_s16 + $0x1760] sm:$0xff]  ;;  %v1264_v12 = vld [vmem:[%s5296_s16 + $0x1af8] sm:$0xff] }
 0x23d   : > { %4526 = vmatpush1.bf16.msra.mxu1 %v4525_v60  ;;  %4272 = vmatprep.subr.bf16.mxu0 %v4271_v61  ;;  %v1143_v60 = vld [vmem:[%s5296_s16 + $0x1730] sm:$0xff]  ;;  %v4547_v61 = vpack.c.bf16 %v1152_v54, %v1144_v53  ;;  %v4293_v3 = vpack.c.bf16 %v1149_v59, %v1141_v58  ;;  %v4567_v59 = vpack.c.bf16 %v1232_v52, %v1224_v51  ;;  %v1272_v23 = vld [vmem:[%s5296_s16 + $0x1b38] sm:$0xff] }
 0x23e   : > { %4528 = vmatprep.subr.bf16.mxu1 %v4527_v1  ;;  %v1160_v1 = vld [vmem:[%s5296_s16 + $0x17b8] sm:$0xff]  ;;  %v4549_v4 = vpack.c.bf16 %v1151_v62, %v1143_v60  ;;  %v1223_v58 = vld [vmem:[%s5296_s16 + $0x19b0] sm:$0xff]  ;;  %v1246_v62 = vld [vmem:[%s5296_s16 + $0x1a68] sm:$0xff] }
 0x23f   : > { %v1231_v60 = vld [vmem:[%s5296_s16 + $0x19f0] sm:$0xff]  ;;  %v1280_v24 = vld [vmem:[%s5296_s16 + $0x1b78] sm:$0xff] }
 0x240   : > { %4274 = vmatpush1.bf16.msra.mxu0 %v4273_v7  ;;  %v1165_v7 = vld [vmem:[%s5296_s16 + $0x17e0] sm:$0xff]  ;;  %v1288_v39 = vld [vmem:[%s5296_s16 + $0x1bb8] sm:$0xff]  ;;  %v1287_v51 = vld [vmem:[%s5296_s16 + $0x1bb0] sm:$0xff] }
 0x241   : > { %4530 = vmatpush1.bf16.msra.mxu1 %v4529_v8  ;;  %4276 = vmatprep.subr.bf16.mxu0 %v4275_v9  ;;  %v1159_v8 = vld [vmem:[%s5296_s16 + $0x17b0] sm:$0xff]  ;;  %v4551_v9 = vpack.c.bf16 %v1168_v2, %v1160_v1  ;;  %v4297_v15 = vpack.c.bf16 %v1165_v7, %v1157_v6  ;;  %v4569_v2 = vpack.c.bf16 %v1231_v60, %v1223_v58  ;;  %v1304_v60 = vld [vmem:[%s5296_s16 + $0x1c38] sm:$0xff] }
 0x242   : > { %4532 = vmatprep.subr.bf16.mxu1 %v4531_v13  ;;  %v1176_v13 = vld [vmem:[%s5296_s16 + $0x1838] sm:$0xff]  ;;  %v4553_v16 = vpack.c.bf16 %v1167_v10, %v1159_v8  ;;  %v1239_v6 = vld [vmem:[%s5296_s16 + $0x1a30] sm:$0xff]  ;;  %v4571_v7 = vpack.c.bf16 %v1248_v0, %v1240_v63  ;;  %v1262_v10 = vld [vmem:[%s5296_s16 + $0x1ae8] sm:$0xff] }
 0x243   : > { %v1247_v8 = vld [vmem:[%s5296_s16 + $0x1a70] sm:$0xff] }
 0x244   : > { %4278 = vmatpush1.bf16.msra.mxu0 %v4277_v19  ;;  %v1181_v19 = vld [vmem:[%s5296_s16 + $0x1860] sm:$0xff] }
 0x245   : > { %4534 = vmatpush1.bf16.msra.mxu1 %v4533_v20  ;;  %4280 = vmatprep.subr.bf16.mxu0 %v4279_v21  ;;  %v1175_v20 = vld [vmem:[%s5296_s16 + $0x1830] sm:$0xff]  ;;  %v4555_v21 = vpack.c.bf16 %v1184_v14, %v1176_v13  ;;  %v4301_v27 = vpack.c.bf16 %v1181_v19, %v1173_v18  ;;  %v4573_v14 = vpack.c.bf16 %v1247_v8, %v1239_v6  ;;  %v1309_v6 = vld [vmem:[%s5296_s16 + $0x1c60] sm:$0xff] }
 0x246   : > { %4536 = vmatprep.subr.bf16.mxu1 %v4535_v25  ;;  %v1192_v25 = vld [vmem:[%s5296_s16 + $0x18b8] sm:$0xff]  ;;  %v4557_v28 = vpack.c.bf16 %v1183_v22, %v1175_v20  ;;  %v1255_v18 = vld [vmem:[%s5296_s16 + $0x1ab0] sm:$0xff]  ;;  %v4575_v19 = vpack.c.bf16 %v1264_v12, %v1256_v11  ;;  %v1278_v22 = vld [vmem:[%s5296_s16 + $0x1b68] sm:$0xff] }
 0x247   : > { %v1263_v20 = vld [vmem:[%s5296_s16 + $0x1af0] sm:$0xff]  ;;  %v1318_v12 = vld [vmem:[%s5296_s16 + $0x1ca8] sm:$0xff] }
 0x248   : > { %4282 = vmatpush1.bf16.msra.mxu0 %v4281_v31  ;;  %v1197_v31 = vld [vmem:[%s5296_s16 + $0x18e0] sm:$0xff]  ;;  %v1311_v11 = vld [vmem:[%s5296_s16 + $0x1c70] sm:$0xff] }
 0x249   : > { %4538 = vmatpush1.bf16.msra.mxu1 %v4537_v32  ;;  %4284 = vmatprep.subr.bf16.mxu0 %v4283_v33  ;;  %v1191_v32 = vld [vmem:[%s5296_s16 + $0x18b0] sm:$0xff]  ;;  %v4559_v33 = vpack.c.bf16 %v1200_v26, %v1192_v25  ;;  %v4305_v40 = vpack.c.bf16 %v1197_v31, %v1189_v30  ;;  %v4577_v26 = vpack.c.bf16 %v1263_v20, %v1255_v18 }
 0x24a   : > { %4540 = vmatprep.subr.bf16.mxu1 %v4539_v37  ;;  %v4869_v37 = vld [vmem:[%s6655_s0 + $0x20] sm:$0xff]  ;;  %v4561_v41 = vpack.c.bf16 %v1199_v34, %v1191_v32  ;;  %v1271_v30 = vld [vmem:[%s5296_s16 + $0x1b30] sm:$0xff]  ;;  %v4579_v32 = vpack.c.bf16 %v1280_v24, %v1272_v23  ;;  %v1286_v34 = vld [vmem:[%s5296_s16 + $0x1ba8] sm:$0xff] }
 0x24c   : > { %4286 = vmatpush1.bf16.msra.mxu0 %v4285_v43  ;;  %v1205_v43 = vld [vmem:[%s5296_s16 + $0x1920] sm:$0xff] }
 0x24d   : > { %4542 = vmatpush1.bf16.msra.mxu1 %v4541_v44  ;;  %4288 = vmatprep.subr.bf16.mxu0 %v4287_v45  ;;  %v1213_v44 = vld [vmem:[%s5296_s16 + $0x1960] sm:$0xff]  ;;  %v1207_v45 = vld [vmem:[%s5296_s16 + $0x1930] sm:$0xff] }
 0x24e   : > { %4544 = vmatprep.subr.bf16.mxu1 %v4543_v49  ;;  %v1230_v49 = vld [vmem:[%s5296_s16 + $0x19e8] sm:$0xff]  ;;  %v4309_v53 = vpack.c.bf16 %v1213_v44, %v1205_v43  ;;  %v4565_v54 = vpack.c.bf16 %v1215_v47, %v1207_v45 }
 0x250   : > { %4290 = vmatpush1.bf16.msra.mxu0 %v4289_v55  ;;  %v4311_v55 = vpack.c.bf16 %v1230_v49, %v1222_v48  ;;  %v4327_v48 = vpack.c.bf16 %v1294_v35, %v1286_v34  ;;  %v1285_v49 = vld [vmem:[%s5296_s16 + $0x1ba0] sm:$0xff]  ;;  %v1342_v34 = vld [vmem:[%s5296_s16 + $0x1d68] sm:$0xff] }
 0x251   : > { %4546 = vmatpush1.bf16.msra.mxu1 %v4545_v56  ;;  %4292 = vmatprep.subr.bf16.mxu0 %v4291_v57  ;;  %v1221_v56 = vld [vmem:[%s5296_s16 + $0x19a0] sm:$0xff] }
 0x252   : > { %4548 = vmatprep.subr.bf16.mxu1 %v4547_v61  ;;  %v1229_v57 = vld [vmem:[%s5296_s16 + $0x19e0] sm:$0xff]  ;;  %v1238_v61 = vld [vmem:[%s5296_s16 + $0x1a28] sm:$0xff] }
 0x253   : > { %v4313_v1 = vpack.c.bf16 %v1229_v57, %v1221_v56  ;;  %v1302_v56 = vld [vmem:[%s5296_s16 + $0x1c28] sm:$0xff] }
 0x254   : > { %4294 = vmatpush1.bf16.msra.mxu0 %v4293_v3  ;;  %v4315_v3 = vpack.c.bf16 %v1246_v62, %v1238_v61  ;;  %v1310_v57 = vld [vmem:[%s5296_s16 + $0x1c68] sm:$0xff]  ;;  %v1312_v61 = vld [vmem:[%s5296_s16 + $0x1c78] sm:$0xff] }
 0x255   : > { %4550 = vmatpush1.bf16.msra.mxu1 %v4549_v4  ;;  %4296 = vmatprep.subr.bf16.mxu0 %v4295_v5  ;;  %v1237_v4 = vld [vmem:[%s5296_s16 + $0x1a20] sm:$0xff] }
 0x256   : > { %4552 = vmatprep.subr.bf16.mxu1 %v4551_v9  ;;  %v1245_v5 = vld [vmem:[%s5296_s16 + $0x1a60] sm:$0xff]  ;;  %v1254_v9 = vld [vmem:[%s5296_s16 + $0x1aa8] sm:$0xff] }
 0x257   : > { %v4317_v13 = vpack.c.bf16 %v1245_v5, %v1237_v4  ;;  %v4331_v4 = vpack.c.bf16 %v1310_v57, %v1302_v56  ;;  %v1301_v5 = vld [vmem:[%s5296_s16 + $0x1c20] sm:$0xff]  ;;  %v1358_v56 = vld [vmem:[%s5296_s16 + $0x1de8] sm:$0xff] }
 0x258   : > { %4298 = vmatpush1.bf16.msra.mxu0 %v4297_v15  ;;  %v4319_v15 = vpack.c.bf16 %v1262_v10, %v1254_v9  ;;  %v4587_v10 = vpack.c.bf16 %v1312_v61, %v1304_v60  ;;  %v4333_v20 = vpack.c.bf16 %v1309_v6, %v1301_v5 }
 0x259   : > { %4554 = vmatpush1.bf16.msra.mxu1 %v4553_v16  ;;  %4300 = vmatprep.subr.bf16.mxu0 %v4299_v17  ;;  %v1253_v16 = vld [vmem:[%s5296_s16 + $0x1aa0] sm:$0xff] }
 0x25a   : > { %4556 = vmatprep.subr.bf16.mxu1 %v4555_v21  ;;  %v1261_v17 = vld [vmem:[%s5296_s16 + $0x1ae0] sm:$0xff]  ;;  %v1270_v21 = vld [vmem:[%s5296_s16 + $0x1b28] sm:$0xff] }
 0x25b   : > { %2200 = vmatmul.mubr.f32.vlgmr.msra.gmra.mrb[2].mxu0 %v4869_v37  ;;  %v4321_v25 = vpack.c.bf16 %v1261_v17, %v1253_v16  ;;  %v1320_v16 = vld [vmem:[%s5296_s16 + $0x1cb8] sm:$0xff] }
 0x25c   : > { %4302 = vmatpush1.bf16.msra.mxu0 %v4301_v27  ;;  %2484 = vmatmul.mubr.f32.vlgmr.msra.gmra.mrb[2].mxu1 %v4869_v37  ;;  %v4323_v27 = vpack.c.bf16 %v1278_v22, %v1270_v21  ;;  %v1328_v17 = vld [vmem:[%s5296_s16 + $0x1cf8] sm:$0xff] }
 0x25d   : > { %4558 = vmatpush1.bf16.msra.mxu1 %v4557_v28  ;;  %4304 = vmatprep.subr.bf16.mxu0 %v4303_v29  ;;  %v1269_v28 = vld [vmem:[%s5296_s16 + $0x1b20] sm:$0xff] }
 0x25e   : > { %4560 = vmatprep.subr.bf16.mxu1 %v4559_v33  ;;  %2270 = vmatprep.mubr.f32.mxu0 %v4870_v50  ;;  %v1277_v29 = vld [vmem:[%s5296_s16 + $0x1b60] sm:$0xff]  ;;  %v1279_v33 = vld [vmem:[%s5296_s16 + $0x1b70] sm:$0xff] }
 0x25f   : > { %2554 = vmatprep.mubr.f32.mxu1 %v4870_v50  ;;  %v4325_v44 = vpack.c.bf16 %v1277_v29, %v1269_v28  ;;  %v4581_v47 = vpack.c.bf16 %v1279_v33, %v1271_v30  ;;  %v1293_v50 = vld [vmem:[%s5296_s16 + $0x1be0] sm:$0xff]  ;;  %v4591_v30 = vpack.c.bf16 %v1328_v17, %v1320_v16  ;;  %v1334_v33 = vld [vmem:[%s5296_s16 + $0x1d28] sm:$0xff] }
 0x260   : > { %4306 = vmatpush1.bf16.msra.mxu0 %v4305_v40  ;;  %v1296_v40 = vld [vmem:[%s5296_s16 + $0x1bf8] sm:$0xff]  ;;  %v4329_v0 = vpack.c.bf16 %v1293_v50, %v1285_v49  ;;  %v1333_v49 = vld [vmem:[%s5296_s16 + $0x1d20] sm:$0xff] }
 0x261   : > { %4562 = vmatpush1.bf16.msra.mxu1 %v4561_v41  ;;  %4308 = vmatprep.subr.bf16.mxu0 %v4307_v42  ;;  %v1341_v50 = vld [vmem:[%s5296_s16 + $0x1d60] sm:$0xff] }
 0x262   : > { %4564 = vmatprep.subr.bf16.mxu1 %v4563_v46  ;;  %v4341_v61 = vpack.c.bf16 %v1341_v50, %v1333_v49 }
 0x264   : > { %4310 = vmatpush1.bf16.msra.mxu0 %v4309_v53 }
 0x265   : > { %4566 = vmatpush1.bf16.msra.mxu1 %v4565_v54  ;;  %4312 = vmatprep.subr.bf16.mxu0 %v4311_v55  ;;  %v4583_v54 = vpack.c.bf16 %v1296_v40, %v1288_v39  ;;  %v1295_v55 = vld [vmem:[%s5296_s16 + $0x1bf0] sm:$0xff]  ;;  %v1336_v39 = vld [vmem:[%s5296_s16 + $0x1d38] sm:$0xff] }
 0x266   : > { %4568 = vmatprep.subr.bf16.mxu1 %v4567_v59  ;;  %v1344_v40 = vld [vmem:[%s5296_s16 + $0x1d78] sm:$0xff] }
 0x268   : > { %4314 = vmatpush1.bf16.msra.mxu0 %v4313_v1 }
 0x269   : > { %4570 = vmatpush1.bf16.msra.mxu1 %v4569_v2  ;;  %4316 = vmatprep.subr.bf16.mxu0 %v4315_v3  ;;  %v4585_v3 = vpack.c.bf16 %v1295_v55, %v1287_v51  ;;  %v1335_v51 = vld [vmem:[%s5296_s16 + $0x1d30] sm:$0xff]  ;;  %v1350_v55 = vld [vmem:[%s5296_s16 + $0x1da8] sm:$0xff] }
 0x26a   : > { %4572 = vmatprep.subr.bf16.mxu1 %v4571_v7  ;;  %v1303_v7 = vld [vmem:[%s5296_s16 + $0x1c30] sm:$0xff] }
 0x26b   : > { %v4589_v23 = vpack.c.bf16 %v1311_v11, %v1303_v7  ;;  %v1359_v7 = vld [vmem:[%s5296_s16 + $0x1df0] sm:$0xff] }
 0x26c   : > { %4318 = vmatpush1.bf16.msra.mxu0 %v4317_v13  ;;  %v1326_v13 = vld [vmem:[%s5296_s16 + $0x1ce8] sm:$0xff] }
 0x26d   : > { %4574 = vmatpush1.bf16.msra.mxu1 %v4573_v14  ;;  %4320 = vmatprep.subr.bf16.mxu0 %v4319_v15  ;;  %v4335_v24 = vpack.c.bf16 %v1326_v13, %v1318_v12  ;;  %v1368_v12 = vld [vmem:[%s5296_s16 + $0x1e38] sm:$0xff] }
 0x26e   : > { %v6314_v31 = vpop.f32.mrb[0].mxu0  ;;  %4576 = vmatprep.subr.bf16.mxu1 %v4575_v19  ;;  %v1376_v13 = vld [vmem:[%s5296_s16 + $0x1e78] sm:$0xff] }
 0x26f   : > { %v2561_v36 = vrot.slane %v6314_v31, 4  ;;  %v6320_v37 = vpop.f32.mrb[0].mxu1  ;;  %v6322_v38 = vpop.f32.mrb[1].mxu0 }
 0x270   : > { %v2573_v41 = vrot.slane %v6320_v37, 4  ;;  %v2567_v42 = vrot.slane %v6322_v38, 4  ;;  %v6328_v43 = vpop.f32.mrb[1].mxu1  ;;  %4322 = vmatpush1.bf16.msra.mxu0 %v4321_v25  ;;  %v1317_v25 = vld [vmem:[%s5296_s16 + $0x1ca0] sm:$0xff] }
 0x271   : > { %v2562_v45 = vadd.f32 %v2561_v36, %v6314_v31  ;;  %v2579_v46 = vrot.slane %v6328_v43, 4  ;;  %4578 = vmatpush1.bf16.msra.mxu1 %v4577_v26  ;;  %4324 = vmatprep.subr.bf16.mxu0 %v4323_v27  ;;  %v1325_v26 = vld [vmem:[%s5296_s16 + $0x1ce0] sm:$0xff]  ;;  %v1319_v27 = vld [vmem:[%s5296_s16 + $0x1cb0] sm:$0xff] }
 0x272   : > { %v2574_v52 = vadd.f32 %v2573_v41, %v6320_v37  ;;  %v2568_v53 = vadd.f32 %v2567_v42, %v6322_v38  ;;  %4580 = vmatprep.subr.bf16.mxu1 %v4579_v32  ;;  %v1327_v32 = vld [vmem:[%s5296_s16 + $0x1cf0] sm:$0xff] }
 0x273   : > { %v2563_v58 = vrot.slane %v2562_v45, 2  ;;  %v2580_v59 = vadd.f32 %v2579_v46, %v6328_v43 }
 0x274   : > { %v2575_v62 = vrot.slane %v2574_v52, 2  ;;  %v2569_v63 = vrot.slane %v2568_v53, 2  ;;  %4326 = vmatpush1.bf16.msra.mxu0 %v4325_v44  ;;  %v4337_v44 = vpack.c.bf16 %v1325_v26, %v1317_v25  ;;  %v4603_v26 = vpack.c.bf16 %v1376_v13, %v1368_v12  ;;  %v1416_v12 = vld [vmem:[%s5296_s16 + $0x1fb8] sm:$0xff] }
 0x275   : > { %v2564_v1 = vadd.f32 %v2563_v58, %v2562_v45  ;;  %v2581_v2 = vrot.slane %v2580_v59, 2  ;;  %4582 = vmatpush1.bf16.msra.mxu1 %v4581_v47  ;;  %4328 = vmatprep.subr.bf16.mxu0 %v4327_v48  ;;  %v4593_v47 = vpack.c.bf16 %v1327_v32, %v1319_v27  ;;  %v4339_v48 = vpack.c.bf16 %v1342_v34, %v1334_v33  ;;  %v1375_v27 = vld [vmem:[%s5296_s16 + $0x1e70] sm:$0xff]  ;;  %v1384_v33 = vld [vmem:[%s5296_s16 + $0x1eb8] sm:$0xff] }
 0x276   : > { %v2576_v8 = vadd.f32 %v2575_v62, %v2574_v52  ;;  %v2570_v9 = vadd.f32 %v2569_v63, %v2568_v53  ;;  %4584 = vmatprep.subr.bf16.mxu1 %v4583_v54  ;;  %v4595_v54 = vpack.c.bf16 %v1344_v40, %v1336_v39  ;;  %v1392_v34 = vld [vmem:[%s5296_s16 + $0x1ef8] sm:$0xff] }
 0x277   : > { %v2565_v14 = vrot.slane %v2564_v1, 1  ;;  %v2582_v15 = vadd.f32 %v2581_v2, %v2580_v59  ;;  %v1352_v59 = vld [vmem:[%s5296_s16 + $0x1db8] sm:$0xff]  ;;  %v1357_v2 = vld [vmem:[%s5296_s16 + $0x1de0] sm:$0xff] }
 0x278   : > { %v2577_v18 = vrot.slane %v2576_v8, 1  ;;  %v2571_v19 = vrot.slane %v2570_v9, 1  ;;  %4330 = vmatpush1.bf16.msra.mxu0 %v4329_v0  ;;  %v4343_v0 = vpack.c.bf16 %v1358_v56, %v1350_v55  ;;  %v1406_v55 = vld [vmem:[%s5296_s16 + $0x1f68] sm:$0xff]  ;;  %v1424_v13 = vld [vmem:[%s5296_s16 + $0x1ff8] sm:$0xff] }
 0x279   : > { %v2566_v21 = vadd.f32 %v2565_v14, %v2564_v1  ;;  %v2583_v22 = vrot.slane %v2582_v15, 1  ;;  %4586 = vmatpush1.bf16.msra.mxu1 %v4585_v3  ;;  %4332 = vmatprep.subr.bf16.mxu0 %v4331_v4  ;;  %v1349_v1 = vld [vmem:[%s5296_s16 + $0x1da0] sm:$0xff]  ;;  %v1351_v3 = vld [vmem:[%s5296_s16 + $0x1db0] sm:$0xff] }
 0x27a   : > { %v2578_v28 = vadd.f32 %v2577_v18, %v2576_v8  ;;  %v2572_v29 = vadd.f32 %v2571_v19, %v2570_v9  ;;  %4588 = vmatprep.subr.bf16.mxu1 %v4587_v10  ;;  %v1366_v8 = vld [vmem:[%s5296_s16 + $0x1e28] sm:$0xff]  ;;  %v4345_v16 = vpack.c.bf16 %v1357_v2, %v1349_v1  ;;  %v4601_v19 = vpack.c.bf16 %v1359_v7, %v1351_v3  ;;  %v1405_v2 = vld [vmem:[%s5296_s16 + $0x1f60] sm:$0xff]  ;;  %v1399_v3 = vld [vmem:[%s5296_s16 + $0x1f30] sm:$0xff] }
 0x27b   : > { %v2610_v35 = vmul.f32 0.125, %v2566_v21  ;;  %v2584_v36 = vadd.f32 %v2583_v22, %v2582_v15  ;;  %v1374_v9 = vld [vmem:[%s5296_s16 + $0x1e68] sm:$0xff]  ;;  %v1365_v21 = vld [vmem:[%s5296_s16 + $0x1e20] sm:$0xff] }
 0x27c   : > { %v2612_v41 = vmul.f32 0.125, %v2578_v28  ;;  %v2611_v42 = vmul.f32 0.125, %v2572_v29  ;;  %4334 = vmatpush1.bf16.msra.mxu0 %v4333_v20  ;;  %v4347_v20 = vpack.c.bf16 %v1374_v9, %v1366_v8  ;;  %v1373_v22 = vld [vmem:[%s5296_s16 + $0x1e60] sm:$0xff]  ;;  %v1382_v28 = vld [vmem:[%s5296_s16 + $0x1ea8] sm:$0xff] }
 0x27d   : > { %v6360_v45 = vsub.f32 %v6314_v31, %v2610_v35  ;;  %v2613_v46 = vmul.f32 0.125, %v2584_v36  ;;  %4590 = vmatpush1.bf16.msra.mxu1 %v4589_v23  ;;  %4336 = vmatprep.subr.bf16.mxu0 %v4335_v24  ;;  %v1343_v31 = vld [vmem:[%s5296_s16 + $0x1d70] sm:$0xff]  ;;  %v1390_v29 = vld [vmem:[%s5296_s16 + $0x1ee8] sm:$0xff]  ;;  %v4349_v39 = vpack.c.bf16 %v1373_v22, %v1365_v21  ;;  %v1421_v21 = vld [vmem:[%s5296_s16 + $0x1fe0] sm:$0xff]  ;;  %v4615_v22 = vpack.c.bf16 %v1424_v13, %v1416_v12 }
 0x27e   : > { %v6366_v52 = vsub.f32 %v6320_v37, %v2612_v41  ;;  %v6369_v53 = vsub.f32 %v6322_v38, %v2611_v42  ;;  %4592 = vmatprep.subr.bf16.mxu1 %v4591_v30  ;;  %v1360_v37 = vld [vmem:[%s5296_s16 + $0x1df8] sm:$0xff]  ;;  %v1367_v23 = vld [vmem:[%s5296_s16 + $0x1e30] sm:$0xff]  ;;  %v1414_v8 = vld [vmem:[%s5296_s16 + $0x1fa8] sm:$0xff] }
 0x27f   : > { %v2626_v57 = vmul.f32 %v6360_v45, %v6360_v45  ;;  %v6377_v58 = vsub.f32 %v6328_v43, %v2613_v46  ;;  %v4597_v43 = vpack.c.bf16 %v1343_v31, %v1335_v51  ;;  %v4599_v6 = vpack.c.bf16 %v1360_v37, %v1352_v59  ;;  %v1381_v46 = vld [vmem:[%s5296_s16 + $0x1ea0] sm:$0xff]  ;;  %v1398_v31 = vld [vmem:[%s5296_s16 + $0x1f28] sm:$0xff]  ;;  %v1400_v59 = vld [vmem:[%s5296_s16 + $0x1f38] sm:$0xff] }
 0x280   : > { %v2628_v38 = vmul.f32 %v6366_v52, %v6366_v52  ;;  %v2627_v60 = vmul.f32 %v6369_v53, %v6369_v53  ;;  %4338 = vmatpush1.bf16.msra.mxu0 %v4337_v44  ;;  %v4605_v42 = vpack.c.bf16 %v1375_v27, %v1367_v23  ;;  %v4351_v44 = vpack.c.bf16 %v1390_v29, %v1382_v28  ;;  %v1408_v37 = vld [vmem:[%s5296_s16 + $0x1f78] sm:$0xff]  ;;  %v1422_v9 = vld [vmem:[%s5296_s16 + $0x1fe8] sm:$0xff]  ;;  %v1415_v23 = vld [vmem:[%s5296_s16 + $0x1fb0] sm:$0xff] }
 0x281   : > { %v2634_v62 = vrot.slane %v2626_v57, 4  ;;  %v2629_v63 = vmul.f32 %v6377_v58, %v6377_v58  ;;  %4594 = vmatpush1.bf16.msra.mxu1 %v4593_v47  ;;  %4340 = vmatprep.subr.bf16.mxu0 %v4339_v48  ;;  %v1389_v47 = vld [vmem:[%s5296_s16 + $0x1ee0] sm:$0xff]  ;;  %v1383_v48 = vld [vmem:[%s5296_s16 + $0x1eb0] sm:$0xff]  ;;  %v4607_v51 = vpack.c.bf16 %v1392_v34, %v1384_v33  ;;  %v4355_v1 = vpack.c.bf16 %v1406_v55, %v1398_v31  ;;  %v2875_v55 = vld [vmem:[%s5312_s10 + $0x8] sm:$0xff] }
 0x282   : > { %v2646_v4 = vrot.slane %v2628_v38, 4  ;;  %v2640_v5 = vrot.slane %v2627_v60, 4  ;;  %4596 = vmatprep.subr.bf16.mxu1 %v4595_v54  ;;  %v1391_v54 = vld [vmem:[%s5296_s16 + $0x1ef0] sm:$0xff]  ;;  %v4611_v7 = vpack.c.bf16 %v1408_v37, %v1400_v59  ;;  %v2722_v27 = vlaneseq  ;;  %v2874_v31 = vld [vmem:[%s5312_s10] sm:$0xff]  ;;  %v2907_v37 = vld [vmem:[%s5312_s10 + $0x108] sm:$0xff] }
 0x283   : > { %v2635_v10 = vadd.f32 %v2634_v62, %v2626_v57  ;;  %v2652_v11 = vrot.slane %v2629_v63, 4  ;;  %v1397_v62 = vld [vmem:[%s5296_s16 + $0x1f20] sm:$0xff]  ;;  %v4871_v34 = vld [vmem:[%s6655_s0 + $0x30] sm:$0xff]  ;;  %v2879_v13 = vld [vmem:[%s5312_s10 + $0x28] sm:$0xff] }
 0x284   : > { %v2647_v14 = vadd.f32 %v2646_v4, %v2628_v38  ;;  %v2641_v15 = vadd.f32 %v2640_v5, %v2627_v60  ;;  %4342 = vmatpush1.bf16.msra.mxu0 %v4341_v61  ;;  %v4353_v61 = vpack.c.bf16 %v1389_v47, %v1381_v46  ;;  %v1407_v4 = vld [vmem:[%s5296_s16 + $0x1f70] sm:$0xff]  ;;  %v2906_v59 = vld [vmem:[%s5312_s10 + $0x100] sm:$0xff] }
 0x285   : > { %v2636_v17 = vrot.slane %v2635_v10, 2  ;;  %v2653_v18 = vadd.f32 %v2652_v11, %v2629_v63  ;;  %4598 = vmatpush1.bf16.msra.mxu1 %v4597_v43  ;;  %4344 = vmatprep.subr.bf16.mxu0 %v4343_v0  ;;  %v4609_v0 = vpack.c.bf16 %v1391_v54, %v1383_v48  ;;  %v2890_v48 = vld [vmem:[%s5312_s10 + $0x80] sm:$0xff]  ;;  %v2923_v54 = vld [vmem:[%s5312_s10 + $0x188] sm:$0xff] }
 0x286   : > { %v2648_v24 = vrot.slane %v2647_v14, 2  ;;  %v2642_v25 = vrot.slane %v2641_v15, 2  ;;  %4600 = vmatprep.subr.bf16.mxu1 %v4599_v6  ;;  %v2878_v12 = vld [vmem:[%s5312_s10 + $0x20] sm:$0xff] }
 0x287   : > { %v2637_v30 = vadd.f32 %v2636_v17, %v2635_v10  ;;  %v2654_v32 = vrot.slane %v2653_v18, 2  ;;  %v4613_v17 = vpack.c.bf16 %v1407_v4, %v1399_v3  ;;  %v2908_v4 = vld [vmem:[%s5312_s10 + $0x110] sm:$0xff] }
 0x288   : > { %v2649_v35 = vadd.f32 %v2648_v24, %v2647_v14  ;;  %v2643_v36 = vadd.f32 %v2642_v25, %v2641_v15  ;;  %4346 = vmatpush1.bf16.msra.mxu0 %v4345_v16  ;;  %v4357_v16 = vpack.c.bf16 %v1405_v2, %v1397_v62  ;;  %v1423_v24 = vld [vmem:[%s5296_s16 + $0x1ff0] sm:$0xff]  ;;  %v5061_v25 = vmov 1966171168  }
 0x289   : > { %v2638_v40 = vrot.slane %v2637_v30, 1  ;;  %v2655_v41 = vadd.f32 %v2654_v32, %v2653_v18  ;;  %4602 = vmatpush1.bf16.msra.mxu1 %v4601_v19  ;;  %4348 = vmatprep.subr.bf16.mxu0 %v4347_v20  ;;  %v4359_v19 = vpack.c.bf16 %v1422_v9, %v1414_v8  ;;  %v1413_v20 = vld [vmem:[%s5296_s16 + $0x1fa0] sm:$0xff]  ;;  %v4617_v29 = vpack.c.bf16 %v1423_v24, %v1415_v23  ;;  %v2924_v62 = vld [vmem:[%s5312_s10 + $0x190] sm:$0xff]  ;;  %v2895_v8 = vld [vmem:[%s5312_s10 + $0xa8] sm:$0xff] }
 0x28a   : > { %v2650_v49 = vrot.slane %v2649_v35, 1  ;;  %v2644_v50 = vrot.slane %v2643_v36, 1  ;;  %4604 = vmatprep.subr.bf16.mxu1 %v4603_v26  ;;  %v2720_v26 = vunpack.c.l.s4 %v5061_v25  ;;  %v4361_v28 = vpack.c.bf16 %v1421_v21, %v1413_v20  ;;  %v2926_v9 = vld [vmem:[%s5312_s10 + $0x1a0] sm:$0xff]  ;;  %v2897_v20 = vld [vmem:[%s5312_s10 + $0xb8] sm:$0xff]  ;;  %v2928_v21 = vld [vmem:[%s5312_s10 + $0x1b0] sm:$0xff] }
 0x28b   : > { %v2639_v56 = vadd.f32 %v2638_v40, %v2637_v30  ;;  %v2656_v57 = vrot.slane %v2655_v41, 1  ;;  %v6423_v32 = vshrl.u32 %v2722_v27, 7  ;;  %v2929_v23 = vld [vmem:[%s5312_s10 + $0x1b8] sm:$0xff]  ;;  %v2880_v24 = vld [vmem:[%s5312_s10 + $0x30] sm:$0xff] }
 0x28c   : > { %v2651_v38 = vadd.f32 %v2650_v49, %v2649_v35  ;;  %v2645_v60 = vadd.f32 %v2644_v50, %v2643_v36  ;;  %4350 = vmatpush1.bf16.msra.mxu0 %v4349_v39  ;;  %v2721_v30 = vunpack.c.0.s8 %v2720_v26  ;;  %v2891_v49 = vld [vmem:[%s5312_s10 + $0x88] sm:$0xff]  ;;  %v2922_v50 = vld [vmem:[%s5312_s10 + $0x180] sm:$0xff]  ;;  %v2881_v25 = vld [vmem:[%s5312_s10 + $0x38] sm:$0xff]  ;;  %v4663_v26 = vpack.c.bf16 %v2929_v23, %v2928_v21 }
 0x28d   : > { %v2682_v63 = vmul.f32 0.125, %v2639_v56  ;;  %v2657_v43 = vadd.f32 %v2656_v57, %v2655_v41  ;;  %4606 = vmatpush1.bf16.msra.mxu1 %v4605_v42  ;;  %4352 = vmatprep.subr.bf16.mxu0 %v4351_v44  ;;  %v4651_v56 = vpack.c.bf16 %v2923_v54, %v2922_v50  ;;  %v4621_v57 = vpack.c.bf16 %v2875_v55, %v2874_v31  ;;  %v2915_v50 = vld [vmem:[%s5312_s10 + $0x148] sm:$0xff]  ;;  %v2900_v31 = vld [vmem:[%s5312_s10 + $0xd0] sm:$0xff]  ;;  %v2901_v55 = vld [vmem:[%s5312_s10 + $0xd8] sm:$0xff] }
 0x28e   : > { %v2684_v5 = vmul.f32 0.125, %v2651_v38  ;;  %v2683_v6 = vmul.f32 0.125, %v2645_v60  ;;  %4608 = vmatprep.subr.bf16.mxu1 %v4607_v51  ;;  %v6429_v36 = vsub.s32 %v2721_v30, %v6423_v32  ;;  %v4619_v51 = vpack.c.bf16 %v2891_v49, %v2890_v48  ;;  %v2892_v60 = vld [vmem:[%s5312_s10 + $0x90] sm:$0xff]  ;;  %v2883_v48 = vld [vmem:[%s5312_s10 + $0x48] sm:$0xff]  ;;  %v2914_v49 = vld [vmem:[%s5312_s10 + $0x140] sm:$0xff] }
 0x28f   : > { %v2691_v10 = vadd.f32 1e-05, %v2682_v63  ;;  %v2685_v11 = vmul.f32 0.125, %v2657_v43  ;;  %v4653_v38 = vpack.c.bf16 %v2907_v37, %v2906_v59  ;;  %v2925_v43 = vld [vmem:[%s5312_s10 + $0x198] sm:$0xff]  ;;  %v4633_v27 = vpack.c.bf16 %v2881_v25, %v2880_v24  ;;  %v2884_v37 = vld [vmem:[%s5312_s10 + $0x50] sm:$0xff]  ;;  %v2954_v24 = vld [vmem:[%s5312_s10 + $0x280] sm:$0xff] }
 0x290   : > { %v2693_v14 = vadd.f32 1e-05, %v2684_v5  ;;  %v2692_v15 = vadd.f32 1e-05, %v2683_v6  ;;  %4354 = vmatpush1.bf16.msra.mxu0 %v4353_v61  ;;  %v2893_v61 = vld [vmem:[%s5312_s10 + $0x98] sm:$0xff]  ;;  %v4655_v2 = vpack.c.bf16 %v2925_v43, %v2924_v62  ;;  %v4669_v54 = vpack.c.bf16 %v2915_v50, %v2914_v49  ;;  %v2916_v62 = vld [vmem:[%s5312_s10 + $0x150] sm:$0xff] }
 0x291   : > { %4848 = vrsqrt.f32 %v2691_v10  ;;  %v2694_v18 = vadd.f32 1e-05, %v2685_v11  ;;  %4610 = vmatpush1.bf16.msra.mxu1 %v4609_v0  ;;  %4356 = vmatprep.subr.bf16.mxu0 %v4355_v1  ;;  %v4623_v63 = vpack.c.bf16 %v2893_v61, %v2892_v60  ;;  %v2876_v0 = vld [vmem:[%s5312_s10 + $0x10] sm:$0xff]  ;;  %v2877_v1 = vld [vmem:[%s5312_s10 + $0x18] sm:$0xff]  ;;  %v2927_v11 = vld [vmem:[%s5312_s10 + $0x1a8] sm:$0xff] }
 0x292   : > { %4850 = vrsqrt.f32 %v2693_v14  ;;  %4612 = vmatprep.subr.bf16.mxu1 %v4611_v7  ;;  %v4625_v3 = vpack.c.bf16 %v2877_v1, %v2876_v0  ;;  %v2909_v5 = vld [vmem:[%s5312_s10 + $0x118] sm:$0xff]  ;;  %v2894_v7 = vld [vmem:[%s5312_s10 + $0xa0] sm:$0xff]  ;;  %v4659_v14 = vpack.c.bf16 %v2927_v11, %v2926_v9  ;;  %v2903_v1 = vld [vmem:[%s5312_s10 + $0xe8] sm:$0xff] }
 0x293   : > { %4852 = vrsqrt.f32 %v2692_v15  ;;  %v4657_v6 = vpack.c.bf16 %v2909_v5, %v2908_v4  ;;  %v4627_v10 = vpack.c.bf16 %v2895_v8, %v2894_v7  ;;  %v4629_v15 = vpack.c.bf16 %v2879_v13, %v2878_v12  ;;  %v2933_v59 = vld [vmem:[%s5312_s10 + $0x1d8] sm:$0xff]  ;;  %v2902_v0 = vld [vmem:[%s5312_s10 + $0xe0] sm:$0xff]  ;;  %v2935_v4 = vld [vmem:[%s5312_s10 + $0x1e8] sm:$0xff] }
 0x294   : > { %4854 = vrsqrt.f32 %v2694_v18  ;;  %4358 = vmatpush1.bf16.msra.mxu0 %v4357_v16  ;;  %v2910_v16 = vld [vmem:[%s5312_s10 + $0x120] sm:$0xff]  ;;  %v2904_v12 = vld [vmem:[%s5312_s10 + $0xf0] sm:$0xff]  ;;  %v2905_v13 = vld [vmem:[%s5312_s10 + $0xf8] sm:$0xff] }
 0x295   : > { %4614 = vmatpush1.bf16.msra.mxu1 %v4613_v17  ;;  %4360 = vmatprep.subr.bf16.mxu0 %v4359_v19  ;;  %v2911_v17 = vld [vmem:[%s5312_s10 + $0x128] sm:$0xff]  ;;  %v2896_v19 = vld [vmem:[%s5312_s10 + $0xb0] sm:$0xff]  ;;  %v2886_v5 = vld [vmem:[%s5312_s10 + $0x60] sm:$0xff] }
 0x296   : > { %4616 = vmatprep.subr.bf16.mxu1 %v4615_v22  ;;  %v4661_v18 = vpack.c.bf16 %v2911_v17, %v2910_v16  ;;  %v4631_v22 = vpack.c.bf16 %v2897_v20, %v2896_v19  ;;  %v2918_v9 = vld [vmem:[%s5312_s10 + $0x160] sm:$0xff]  ;;  %v2937_v16 = vld [vmem:[%s5312_s10 + $0x1f8] sm:$0xff]  ;;  %v2888_v17 = vld [vmem:[%s5312_s10 + $0x70] sm:$0xff] }
 0x297   : > { %v2920_v21 = vld [vmem:[%s5312_s10 + $0x170] sm:$0xff]  ;;  %v2955_v25 = vld [vmem:[%s5312_s10 + $0x288] sm:$0xff] }
 0x298   : > { %4362 = vmatpush1.bf16.msra.mxu0 %v4361_v28  ;;  %v2912_v28 = vld [vmem:[%s5312_s10 + $0x130] sm:$0xff] }
 0x299   : > { %4618 = vmatpush1.bf16.msra.mxu1 %v4617_v29  ;;  %4620 = vmatprep.subr.bf16.mxu0 %v4619_v51  ;;  %v2913_v29 = vld [vmem:[%s5312_s10 + $0x138] sm:$0xff] }
 0x29a   : > { %4652 = vmatprep.subr.bf16.mxu1 %v4651_v56  ;;  %v4665_v30 = vpack.c.bf16 %v2913_v29, %v2912_v28  ;;  %v2932_v56 = vld [vmem:[%s5312_s10 + $0x1d0] sm:$0xff]  ;;  %v2987_v28 = vld [vmem:[%s5312_s10 + $0x388] sm:$0xff] }
 0x29b   : > { %v4849_v33 = vpop.eup %4848  ;;  %2271 = vmatmul.mubr.f32.vlgmr.msra.gmra.mrb[2].mxu0 %v4871_v34  ;;  %v4671_v60 = vpack.c.bf16 %v2933_v59, %v2932_v56 }
 0x29c   : > { %v4851_v35 = vpop.eup %4850  ;;  %2555 = vmatmul.mubr.f32.vlgmr.msra.gmra.mrb[2].mxu1 %v4871_v34  ;;  %4622 = vmatpush3.bf16.msra.mxu0 %v4621_v57  ;;  %v2899_v34 = vld [vmem:[%s5312_s10 + $0xc8] sm:$0xff]  ;;  %v4639_v57 = vpack.c.bf16 %v2901_v55, %v2900_v31 }
 0x29d   : > { %v4853_v39 = vpop.eup %4852  ;;  %4654 = vmatpush3.bf16.msra.mxu1 %v4653_v38  ;;  %4624 = vmatprep.subr.bf16.mxu0 %v4623_v63  ;;  %v2885_v38 = vld [vmem:[%s5312_s10 + $0x58] sm:$0xff] }
 0x29e   : > { %v4855_v40 = vpop.eup %4854  ;;  %v2715_v41 = vcombine.low %v4849_v33, %v4853_v39  ;;  %4656 = vmatprep.subr.bf16.mxu1 %v4655_v2  ;;  %v2898_v33 = vld [vmem:[%s5312_s10 + $0xc0] sm:$0xff]  ;;  %v4641_v61 = vpack.c.bf16 %v2885_v38, %v2884_v37  ;;  %v2917_v63 = vld [vmem:[%s5312_s10 + $0x158] sm:$0xff] }
 0x29f   : > { %v2716_v42 = vcombine.low %v4851_v35, %v4855_v40  ;;  %v4635_v35 = vpack.c.bf16 %v2899_v34, %v2898_v33  ;;  %v2930_v39 = vld [vmem:[%s5312_s10 + $0x1c0] sm:$0xff]  ;;  %v2931_v40 = vld [vmem:[%s5312_s10 + $0x1c8] sm:$0xff]  ;;  %v4673_v43 = vpack.c.bf16 %v2917_v63, %v2916_v62 }
 0x2a0   : > { %v6432_v44 = vrot.slane %v2715_v41, %v6429_v36  ;;  %4626 = vmatpush3.bf16.msra.mxu0 %v4625_v3  ;;  %v2882_v41 = vld [vmem:[%s5312_s10 + $0x40] sm:$0xff]  ;;  %v4643_v3 = vpack.c.bf16 %v2903_v1, %v2902_v0 }
 0x2a1   : > { %v6435_v46 = vrot.slane %v2716_v42, %v6429_v36  ;;  %4658 = vmatpush3.bf16.msra.mxu1 %v4657_v6  ;;  %4628 = vmatprep.subr.bf16.mxu0 %v4627_v10  ;;  %v4667_v42 = vpack.c.bf16 %v2931_v40, %v2930_v39  ;;  %v4637_v51 = vpack.c.bf16 %v2883_v48, %v2882_v41  ;;  %v2934_v2 = vld [vmem:[%s5312_s10 + $0x1e0] sm:$0xff]  ;;  %v2887_v6 = vld [vmem:[%s5312_s10 + $0x68] sm:$0xff] }
 0x2a2   : > { %4660 = vmatprep.subr.bf16.mxu1 %v4659_v14  ;;  %v4675_v7 = vpack.c.bf16 %v2935_v4, %v2934_v2  ;;  %v4645_v8 = vpack.c.bf16 %v2887_v6, %v2886_v5  ;;  %v2919_v10 = vld [vmem:[%s5312_s10 + $0x168] sm:$0xff]  ;;  %v2936_v14 = vld [vmem:[%s5312_s10 + $0x1f0] sm:$0xff] }
 0x2a3   : > { %v2747_v47 = vcombine.low %v6432_v44, %v6435_v46  ;;  %v4677_v11 = vpack.c.bf16 %v2919_v10, %v2918_v9  ;;  %v4679_v19 = vpack.c.bf16 %v2937_v16, %v2936_v14  ;;  %v2785_v44 = vsub.s32 4, %v6423_v32 }
 0x2a4   : > { %4630 = vmatpush3.bf16.msra.mxu0 %v4629_v15  ;;  %v4647_v15 = vpack.c.bf16 %v2905_v13, %v2904_v12 }
 0x2a5   : > { %4662 = vmatpush3.bf16.msra.mxu1 %v4661_v18  ;;  %4632 = vmatprep.subr.bf16.mxu0 %v4631_v22  ;;  %v2889_v18 = vld [vmem:[%s5312_s10 + $0x78] sm:$0xff] }
 0x2a6   : > { %4664 = vmatprep.subr.bf16.mxu1 %v4663_v26  ;;  %v4649_v20 = vpack.c.bf16 %v2889_v18, %v2888_v17  ;;  %v2921_v22 = vld [vmem:[%s5312_s10 + $0x178] sm:$0xff]  ;;  %v2986_v26 = vld [vmem:[%s5312_s10 + $0x380] sm:$0xff] }
 0x2a7   : > { %v4681_v23 = vpack.c.bf16 %v2921_v22, %v2920_v21  ;;  %v4715_v29 = vpack.c.bf16 %v2987_v28, %v2986_v26 }
 0x2a8   : > { %4634 = vmatpush3.bf16.msra.mxu0 %v4633_v27  ;;  %v4683_v27 = vpack.c.bf16 %v2955_v25, %v2954_v24 }
 0x2a9   : > { %4666 = vmatpush3.bf16.msra.mxu1 %v4665_v30  ;;  %4636 = vmatprep.subr.bf16.mxu0 %v4635_v35 }
 0x2aa   : > { %4668 = vmatprep.subr.bf16.mxu1 %v4667_v42 }
 0x2ac   : > { %4638 = vmatpush3.bf16.msra.mxu0 %v4637_v51 }
 0x2ad   : > { %4670 = vmatpush3.bf16.msra.mxu1 %v4669_v54  ;;  %4640 = vmatprep.subr.bf16.mxu0 %v4639_v57 }
 0x2ae   : > { %4672 = vmatprep.subr.bf16.mxu1 %v4671_v60 }
 0x2b0   : > { %4642 = vmatpush3.bf16.msra.mxu0 %v4641_v61 }
 0x2b1   : > { %4674 = vmatpush3.bf16.msra.mxu1 %v4673_v43  ;;  %4644 = vmatprep.subr.bf16.mxu0 %v4643_v3 }
 0x2b2   : > { %4676 = vmatprep.subr.bf16.mxu1 %v4675_v7 }
 0x2b4   : > { %4646 = vmatpush3.bf16.msra.mxu0 %v4645_v8 }
 0x2b5   : > { %4678 = vmatpush3.bf16.msra.mxu1 %v4677_v11  ;;  %4648 = vmatprep.subr.bf16.mxu0 %v4647_v15 }
 0x2b6   : > { %4680 = vmatprep.subr.bf16.mxu1 %v4679_v19 }
 0x2b8   : > { %4650 = vmatpush3.bf16.msra.mxu0 %v4649_v20 }
 0x2b9   : > { %4682 = vmatpush3.bf16.msra.mxu1 %v4681_v23  ;;  %4684 = vmatprep.subr.bf16.mxu0 %v4683_v27 }
 0x2ba   : > { %4716 = vmatprep.subr.bf16.mxu1 %v4715_v29 }
 0x36e   : > { %v2272_v30 = vpop.f32.mrb[2].mxu0 }
 0x36f   : > { %v2585_v33 = vrot.slane %v2272_v30, 4  ;;  %v2556_v34 = vpop.f32.mrb[2].mxu1  ;;  %v2274_v35 = vpop.f32.mrb[3].mxu0 }
 0x370   : > { %v2597_v39 = vrot.slane %v2556_v34, 4  ;;  %v2591_v40 = vrot.slane %v2274_v35, 4  ;;  %v2558_v41 = vpop.f32.mrb[3].mxu1 }
 0x371   : > { %v2586_v42 = vadd.f32 %v2585_v33, %v2272_v30  ;;  %v2603_v48 = vrot.slane %v2558_v41, 4 }
 0x372   : > { %v2598_v49 = vadd.f32 %v2597_v39, %v2556_v34  ;;  %v2592_v50 = vadd.f32 %v2591_v40, %v2274_v35 }
 0x373   : > { %v2587_v51 = vrot.slane %v2586_v42, 2  ;;  %v2604_v54 = vadd.f32 %v2603_v48, %v2558_v41 }
 0x374   : > { %v2599_v31 = vrot.slane %v2598_v49, 2  ;;  %v2593_v55 = vrot.slane %v2592_v50, 2 }
 0x375   : > { %v2588_v56 = vadd.f32 %v2587_v51, %v2586_v42  ;;  %v2605_v57 = vrot.slane %v2604_v54, 2 }
 0x376   : > { %v2600_v59 = vadd.f32 %v2599_v31, %v2598_v49  ;;  %v2594_v37 = vadd.f32 %v2593_v55, %v2592_v50 }
 0x377   : > { %v2589_v38 = vrot.slane %v2588_v56, 1  ;;  %v2606_v60 = vadd.f32 %v2605_v57, %v2604_v54 }
 0x378   : > { %v2601_v61 = vrot.slane %v2600_v59, 1  ;;  %v2595_v62 = vrot.slane %v2594_v37, 1 }
 0x379   : > { %v2590_v63 = vadd.f32 %v2589_v38, %v2588_v56  ;;  %v2607_v43 = vrot.slane %v2606_v60, 1 }
 0x37a   : > { %v2602_v0 = vadd.f32 %v2601_v61, %v2600_v59  ;;  %v2596_v1 = vadd.f32 %v2595_v62, %v2594_v37 }
 0x37b   : > { %v2614_v2 = vmul.f32 0.125, %v2590_v63  ;;  %v2608_v3 = vadd.f32 %v2607_v43, %v2606_v60 }
 0x37c   : > { %v2616_v4 = vmul.f32 0.125, %v2602_v0  ;;  %v2615_v5 = vmul.f32 0.125, %v2596_v1  ;;  %v2755_v1 = vrot.slane %v2747_v47, %v6429_v36 }
 0x37d   : > { %v6507_v6 = vsub.f32 %v2272_v30, %v2614_v2  ;;  %v2617_v7 = vmul.f32 0.125, %v2608_v3  ;;  %v2690_v3 = vld [vmem:[%s5304_s11] sm:$0xff]  ;;  %s3448_s11 = sshll.u32 %s6694_s21, 3 }
 0x37e   : > { %v6509_v8 = vsub.f32 %v2556_v34, %v2616_v4  ;;  %v6511_v9 = vsub.f32 %v2274_v35, %v2615_v5  ;;  %v2797_v4 = vsub.s32 7, %v6423_v32  ;;  %v6533_v5 = vld [vmem:[%s5310_s13] sm:$0xff]  ;;  %s387_s25 = scalar_lea.vmem %s6660_s5, %s3448_s11 }
 0x37f   : > { %v2630_v10 = vmul.f32 %v6507_v6, %v6507_v6  ;;  %v6515_v11 = vsub.f32 %v2558_v41, %v2617_v7 }
 0x380   : > { %v2632_v12 = vmul.f32 %v6509_v8, %v6509_v8  ;;  %v2631_v13 = vmul.f32 %v6511_v9, %v6511_v9 }
 0x381   : > { %v2658_v14 = vrot.slane %v2630_v10, 4  ;;  %v2633_v15 = vmul.f32 %v6515_v11, %v6515_v11 }
 0x382   : > { %v2670_v16 = vrot.slane %v2632_v12, 4  ;;  %v2664_v17 = vrot.slane %v2631_v13, 4 }
 0x383   : > { %v2659_v18 = vadd.f32 %v2658_v14, %v2630_v10  ;;  %v2676_v19 = vrot.slane %v2633_v15, 4  ;;  %v2773_v10 = vsub.s32 1, %v6423_v32  ;;  %v2777_v14 = vsub.s32 2, %v6423_v32 }
 0x384   : > { %v2671_v20 = vadd.f32 %v2670_v16, %v2632_v12  ;;  %v2665_v21 = vadd.f32 %v2664_v17, %v2631_v13  ;;  %v2781_v12 = vsub.s32 3, %v6423_v32  ;;  %v2769_v13 = vsub.s32 0, %v6423_v32 }
 0x385   : > { %v2660_v22 = vrot.slane %v2659_v18, 2  ;;  %v2677_v23 = vadd.f32 %v2676_v19, %v2633_v15  ;;  %v2789_v15 = vsub.s32 5, %v6423_v32  ;;  %v2824_v47 = vrot.slane %v6533_v5, %v2773_v10 }
 0x386   : > { %v2672_v24 = vrot.slane %v2671_v20, 2  ;;  %v2666_v25 = vrot.slane %v2665_v21, 2  ;;  %v2832_v16 = vrot.slane %v6533_v5, %v2781_v12  ;;  %v2820_v17 = vrot.slane %v6533_v5, %v2769_v13 }
 0x387   : > { %v2661_v26 = vadd.f32 %v2660_v22, %v2659_v18  ;;  %v2678_v27 = vrot.slane %v2677_v23, 2  ;;  %v2828_v18 = vrot.slane %v6533_v5, %v2777_v14  ;;  %v2840_v19 = vrot.slane %v6533_v5, %v2789_v15 }
 0x388   : > { %v2673_v28 = vadd.f32 %v2672_v24, %v2671_v20  ;;  %v2667_v29 = vadd.f32 %v2666_v25, %v2665_v21  ;;  %v2848_v20 = vrot.slane %v6533_v5, %v2797_v4 }
 0x389   : > { %v2662_v30 = vrot.slane %v2661_v26, 1  ;;  %v2679_v33 = vadd.f32 %v2678_v27, %v2677_v23 }
 0x38a   : > { %v2674_v34 = vrot.slane %v2673_v28, 1  ;;  %v2668_v35 = vrot.slane %v2667_v29, 1 }
 0x38b   : > { %v2663_v39 = vadd.f32 %v2662_v30, %v2661_v26  ;;  %v2680_v40 = vrot.slane %v2679_v33, 1 }
 0x38c   : > { %v2675_v41 = vadd.f32 %v2674_v34, %v2673_v28  ;;  %v2669_v42 = vadd.f32 %v2668_v35, %v2667_v29  ;;  %v2938_v35 = vld [vmem:[%s5312_s10 + $0x200] sm:$0xff] }
 0x38d   : > { %v2686_v48 = vmul.f32 0.125, %v2663_v39  ;;  %v2681_v49 = vadd.f32 %v2680_v40, %v2679_v33  ;;  %v2939_v39 = vld [vmem:[%s5312_s10 + $0x208] sm:$0xff] }
 0x38e   : > { %v2688_v50 = vmul.f32 0.125, %v2675_v41  ;;  %v2687_v51 = vmul.f32 0.125, %v2669_v42  ;;  %v2970_v41 = vld [vmem:[%s5312_s10 + $0x300] sm:$0xff]  ;;  %v2971_v42 = vld [vmem:[%s5312_s10 + $0x308] sm:$0xff] }
 0x38f   : > { %v2695_v54 = vadd.f32 1e-05, %v2686_v48  ;;  %v2689_v31 = vmul.f32 0.125, %v2681_v49 }
 0x390   : > { %v2697_v55 = vadd.f32 1e-05, %v2688_v50  ;;  %v2696_v56 = vadd.f32 1e-05, %v2687_v51  ;;  %v2956_v50 = vld [vmem:[%s5312_s10 + $0x290] sm:$0xff]  ;;  %v4685_v51 = vpack.c.bf16 %v2939_v39, %v2938_v35 }
 0x391   : > { %4856 = vrsqrt.f32 %v2695_v54  ;;  %v2698_v57 = vadd.f32 1e-05, %v2689_v31 }
 0x392   : > { %4858 = vrsqrt.f32 %v2697_v55  ;;  %v2988_v55 = vld [vmem:[%s5312_s10 + $0x390] sm:$0xff] }
 0x393   : > { %4860 = vrsqrt.f32 %v2696_v56 }
 0x394   : > { %4862 = vrsqrt.f32 %v2698_v57 }
 0x39b   : > { %v4857_v59 = vpop.eup %4856 }
 0x39c   : > { %v4859_v37 = vpop.eup %4858 }
 0x39d   : > { %v4861_v38 = vpop.eup %4860 }
 0x39e   : > { %v4863_v60 = vpop.eup %4862  ;;  %v2717_v61 = vcombine.low %v4857_v59, %v4861_v38  ;;  %v4717_v59 = vpack.c.bf16 %v2971_v42, %v2970_v41  ;;  %v2941_v38 = vld [vmem:[%s5312_s10 + $0x218] sm:$0xff]  ;;  %v2947_v41 = vld [vmem:[%s5312_s10 + $0x248] sm:$0xff] }
 0x39f   : > { %v2718_v62 = vcombine.low %v4859_v37, %v4863_v60  ;;  %v2940_v37 = vld [vmem:[%s5312_s10 + $0x210] sm:$0xff] }
 0x3a0   : > { %v2739_v63 = vrot.slane %v2717_v61, %v6429_v36  ;;  %v2972_v61 = vld [vmem:[%s5312_s10 + $0x310] sm:$0xff] }
 0x3a1   : > { %v2746_v43 = vrot.slane %v2718_v62, %v6429_v36  ;;  %v2973_v62 = vld [vmem:[%s5312_s10 + $0x318] sm:$0xff] }
 0x3a3   : > { %v2748_v0 = vcombine.low %v2739_v63, %v2746_v43  ;;  %v2958_v63 = vld [vmem:[%s5312_s10 + $0x2a0] sm:$0xff] }
 0x3a5   : > { %v2762_v2 = vrot.slane %v2748_v0, %v6429_v36  ;;  %v2793_v36 = vsub.s32 6, %v6423_v32 }
 0x3a7   : > { %v2763_v7 = vcombine.low %v2755_v1, %v2762_v2  ;;  %v2959_v1 = vld [vmem:[%s5312_s10 + $0x2a8] sm:$0xff]  ;;  %v2990_v2 = vld [vmem:[%s5312_s10 + $0x3a0] sm:$0xff] }
 0x3a9   : > { %v2765_v46 = vmul.f32 %v2763_v7, %v2690_v3  ;;  %v2991_v3 = vld [vmem:[%s5312_s10 + $0x3a8] sm:$0xff] }
 0x3ab   : > { %v2798_v21 = vrot.slane %v2765_v46, %v2797_v4  ;;  %v2774_v22 = vrot.slane %v2765_v46, %v2773_v10  ;;  %v2782_v23 = vrot.slane %v2765_v46, %v2781_v12  ;;  %v2770_v24 = vrot.slane %v2765_v46, %v2769_v13  ;;  %v2942_v13 = vld [vmem:[%s5312_s10 + $0x220] sm:$0xff] }
 0x3ac   : > { %v2778_v25 = vrot.slane %v2765_v46, %v2777_v14  ;;  %v2790_v26 = vrot.slane %v2765_v46, %v2789_v15  ;;  %v2786_v27 = vrot.slane %v2765_v46, %v2785_v44  ;;  %v2794_v28 = vrot.slane %v2765_v46, %v2793_v36  ;;  %v2943_v14 = vld [vmem:[%s5312_s10 + $0x228] sm:$0xff] }
 0x3ad   : > { %v2814_v29 = vmul.f32 %v2798_v21, %v6515_v11  ;;  %v2808_v30 = vmul.f32 %v2774_v22, %v6369_v53  ;;  %v2810_v33 = vmul.f32 %v2782_v23, %v6377_v58  ;;  %v2807_v34 = vmul.f32 %v2770_v24, %v6360_v45  ;;  %v2944_v23 = vld [vmem:[%s5312_s10 + $0x230] sm:$0xff]  ;;  %v2945_v24 = vld [vmem:[%s5312_s10 + $0x238] sm:$0xff] }
 0x3ae   : > { %v2809_v40 = vmul.f32 %v2778_v25, %v6366_v52  ;;  %v2812_v48 = vmul.f32 %v2790_v26, %v6511_v9  ;;  %v6563_v49 = vmul.f32 %v2786_v27, %v6507_v6  ;;  %v6566_v53 = vmul.f32 %v2794_v28, %v6509_v8  ;;  %v2957_v9 = vld [vmem:[%s5312_s10 + $0x298] sm:$0xff]  ;;  %v2976_v27 = vld [vmem:[%s5312_s10 + $0x330] sm:$0xff] }
 0x3af   : > { %v2858_v58 = vadd.f32 %v2824_v47, %v2808_v30  ;;  %v2860_v45 = vadd.f32 %v2832_v16, %v2810_v33  ;;  %v2857_v11 = vadd.f32 %v2820_v17, %v2807_v34  ;;  %v2864_v31 = vadd.f32 %v2848_v20, %v2814_v29  ;;  %v2989_v6 = vld [vmem:[%s5312_s10 + $0x398] sm:$0xff]  ;;  %v2974_v47 = vld [vmem:[%s5312_s10 + $0x320] sm:$0xff]  ;;  %v2975_v16 = vld [vmem:[%s5312_s10 + $0x328] sm:$0xff] }
 0x3b0   : > { %v2859_v52 = vadd.f32 %v2828_v18, %v2809_v40  ;;  %v2862_v54 = vadd.f32 %v2840_v19, %v2812_v48  ;;  %v4687_v43 = vpack.c.bf16 %v2957_v9, %v2956_v50  ;;  %v4719_v0 = vpack.c.bf16 %v2989_v6, %v2988_v55  ;;  %v2960_v17 = vld [vmem:[%s5312_s10 + $0x2b0] sm:$0xff]  ;;  %v2961_v18 = vld [vmem:[%s5312_s10 + $0x2b8] sm:$0xff]  ;;  %v2962_v29 = vld [vmem:[%s5312_s10 + $0x2c0] sm:$0xff] }
 0x3b1   : > { %v2866_v8 = vmax.f32 %v2858_v58, 0.0  ;;  %v2868_v56 = vmax.f32 %v2860_v45, 0.0  ;;  %v2865_v57 = vmax.f32 %v2857_v11, 0.0  ;;  %v2872_v7 = vmax.f32 %v2864_v31, 0.0  ;;  %v2992_v19 = vld [vmem:[%s5312_s10 + $0x3b0] sm:$0xff]  ;;  %v2993_v20 = vld [vmem:[%s5312_s10 + $0x3b8] sm:$0xff] }
 0x3b2   : > { %v2867_v60 = vmax.f32 %v2859_v52, 0.0  ;;  %v2870_v4 = vmax.f32 %v2862_v54, 0.0  ;;  %v4689_v10 = vpack.c.bf16 %v2941_v38, %v2940_v37  ;;  %v4721_v12 = vpack.c.bf16 %v2973_v62, %v2972_v61  ;;  %v2977_v28 = vld [vmem:[%s5312_s10 + $0x338] sm:$0xff]  ;;  %v2963_v30 = vld [vmem:[%s5312_s10 + $0x2c8] sm:$0xff]  ;;  %v2994_v33 = vld [vmem:[%s5312_s10 + $0x3c0] sm:$0xff] }
 0x3b3   : > { %3066 = vmatprep.mubr.f32.mxu0 %v2866_v8  ;;  %3136 = vmatprep.mubr.f32.mxu1 %v2868_v56  ;;  %v4691_v15 = vpack.c.bf16 %v2959_v1, %v2958_v63  ;;  %v4723_v46 = vpack.c.bf16 %v2991_v3, %v2990_v2  ;;  %v4693_v21 = vpack.c.bf16 %v2943_v14, %v2942_v13  ;;  %v2995_v34 = vld [vmem:[%s5312_s10 + $0x3c8] sm:$0xff]  ;;  %v2946_v40 = vld [vmem:[%s5312_s10 + $0x240] sm:$0xff]  ;;  %v2964_v11 = vld [vmem:[%s5312_s10 + $0x2d0] sm:$0xff] }
 0x3b4   : > { %3067 = vmatmul.mubr.f32.vlgmr.msra.gmra.mrb[4].mxu0 %v2865_v57  ;;  %3137 = vmatmul.mubr.f32.vlgmr.msra.gmra.mrb[4].mxu1 %v2867_v60  ;;  %v4725_v22 = vpack.c.bf16 %v2975_v16, %v2974_v47  ;;  %v4695_v25 = vpack.c.bf16 %v2961_v18, %v2960_v17  ;;  %v4727_v26 = vpack.c.bf16 %v2993_v20, %v2992_v19  ;;  %v2978_v58 = vld [vmem:[%s5312_s10 + $0x340] sm:$0xff]  ;;  %v2979_v45 = vld [vmem:[%s5312_s10 + $0x348] sm:$0xff]  ;;  %v2965_v50 = vld [vmem:[%s5312_s10 + $0x2d8] sm:$0xff] }
 0x3b5   : > { %4686 = vmatpush3.bf16.msra.mxu0 %v4685_v51  ;;  %4718 = vmatpush3.bf16.msra.mxu1 %v4717_v59  ;;  %v4697_v35 = vpack.c.bf16 %v2945_v24, %v2944_v23  ;;  %v4729_v39 = vpack.c.bf16 %v2977_v28, %v2976_v27  ;;  %v4699_v42 = vpack.c.bf16 %v2963_v30, %v2962_v29  ;;  %v2996_v52 = vld [vmem:[%s5312_s10 + $0x3d0] sm:$0xff]  ;;  %v2997_v51 = vld [vmem:[%s5312_s10 + $0x3d8] sm:$0xff]  ;;  %v2966_v59 = vld [vmem:[%s5312_s10 + $0x2e0] sm:$0xff] }
 0x3b6   : > { %3206 = vmatprep.mubr.f32.mxu0 %v2870_v4  ;;  %3276 = vmatprep.mubr.f32.mxu1 %v2872_v7  ;;  %v4731_v48 = vpack.c.bf16 %v2995_v34, %v2994_v33  ;;  %v4701_v54 = vpack.c.bf16 %v2947_v41, %v2946_v40  ;;  %v4733_v31 = vpack.c.bf16 %v2979_v45, %v2978_v58  ;;  %v2948_v9 = vld [vmem:[%s5312_s10 + $0x250] sm:$0xff]  ;;  %v2949_v55 = vld [vmem:[%s5312_s10 + $0x258] sm:$0xff]  ;;  %v2967_v37 = vld [vmem:[%s5312_s10 + $0x2e8] sm:$0xff] }
 0x3b7   : > { %4688 = vmatprep.subr.bf16.mxu0 %v4687_v43  ;;  %4720 = vmatprep.subr.bf16.mxu1 %v4719_v0  ;;  %v4703_v6 = vpack.c.bf16 %v2965_v50, %v2964_v11  ;;  %v4735_v8 = vpack.c.bf16 %v2997_v51, %v2996_v52  ;;  %v2980_v56 = vld [vmem:[%s5312_s10 + $0x350] sm:$0xff]  ;;  %v2981_v57 = vld [vmem:[%s5312_s10 + $0x358] sm:$0xff]  ;;  %v2998_v38 = vld [vmem:[%s5312_s10 + $0x3e0] sm:$0xff]  ;;  %v4705_v61 = vpack.c.bf16 %v2949_v55, %v2948_v9 }
 0x3b8   : > { %v2999_v60 = vld [vmem:[%s5312_s10 + $0x3e8] sm:$0xff]  ;;  %v4737_v62 = vpack.c.bf16 %v2981_v57, %v2980_v56  ;;  %v2950_v63 = vld [vmem:[%s5312_s10 + $0x260] sm:$0xff]  ;;  %v4707_v0 = vpack.c.bf16 %v2967_v37, %v2966_v59  ;;  %v2968_v4 = vld [vmem:[%s5312_s10 + $0x2f0] sm:$0xff]  ;;  %v2844_v20 = vrot.slane %v6533_v5, %v2793_v36 }
 0x3b9   : > { %4690 = vmatpush3.bf16.msra.mxu0 %v4689_v10  ;;  %4722 = vmatpush3.bf16.msra.mxu1 %v4721_v12  ;;  %v2951_v43 = vld [vmem:[%s5312_s10 + $0x268] sm:$0xff]  ;;  %v4739_v1 = vpack.c.bf16 %v2999_v60, %v2998_v38  ;;  %v2982_v2 = vld [vmem:[%s5312_s10 + $0x360] sm:$0xff]  ;;  %v2969_v7 = vld [vmem:[%s5312_s10 + $0x2f8] sm:$0xff] }
 0x3ba   : > { %4692 = vmatprep.subr.bf16.mxu0 %v4691_v15  ;;  %4724 = vmatprep.subr.bf16.mxu1 %v4723_v46  ;;  %v2983_v3 = vld [vmem:[%s5312_s10 + $0x368] sm:$0xff]  ;;  %v3000_v10 = vld [vmem:[%s5312_s10 + $0x3f0] sm:$0xff]  ;;  %v3001_v12 = vld [vmem:[%s5312_s10 + $0x3f8] sm:$0xff]  ;;  %v4709_v13 = vpack.c.bf16 %v2951_v43, %v2950_v63  ;;  %v2836_v46 = vrot.slane %v6533_v5, %v2785_v44  ;;  %v4711_v47 = vpack.c.bf16 %v2969_v7, %v2968_v4 }
 0x3bb   : > { %v4741_v14 = vpack.c.bf16 %v2983_v3, %v2982_v2  ;;  %v2952_v15 = vld [vmem:[%s5312_s10 + $0x270] sm:$0xff]  ;;  %v4743_v16 = vpack.c.bf16 %v3001_v12, %v3000_v10  ;;  %v2953_v17 = vld [vmem:[%s5312_s10 + $0x278] sm:$0xff]  ;;  %v2863_v23 = vadd.f32 %v2844_v20, %v6566_v53 }
 0x3bc   : > { %v2984_v18 = vld [vmem:[%s5312_s10 + $0x370] sm:$0xff]  ;;  %v2985_v19 = vld [vmem:[%s5312_s10 + $0x378] sm:$0xff]  ;;  %v2861_v44 = vadd.f32 %v2836_v46, %v6563_v49 }
 0x3bd   : > { %4694 = vmatpush3.bf16.msra.mxu0 %v4693_v21  ;;  %4726 = vmatpush3.bf16.msra.mxu1 %v4725_v22  ;;  %v4713_v21 = vpack.c.bf16 %v2953_v17, %v2952_v15  ;;  %v4745_v22 = vpack.c.bf16 %v2985_v19, %v2984_v18 }
 0x3be   : > { %4696 = vmatprep.subr.bf16.mxu0 %v4695_v25  ;;  %4728 = vmatprep.subr.bf16.mxu1 %v4727_v26  ;;  %v2869_v24 = vmax.f32 %v2861_v44, 0.0  ;;  %v2871_v25 = vmax.f32 %v2863_v23, 0.0 }
 0x3c1   : > { %4698 = vmatpush3.bf16.msra.mxu0 %v4697_v35  ;;  %4730 = vmatpush3.bf16.msra.mxu1 %v4729_v39 }
 0x3c2   : > { %4700 = vmatprep.subr.bf16.mxu0 %v4699_v42  ;;  %4732 = vmatprep.subr.bf16.mxu1 %v4731_v48 }
 0x3c5   : > { %4702 = vmatpush3.bf16.msra.mxu0 %v4701_v54  ;;  %4734 = vmatpush3.bf16.msra.mxu1 %v4733_v31 }
 0x3c6   : > { %4704 = vmatprep.subr.bf16.mxu0 %v4703_v6  ;;  %4736 = vmatprep.subr.bf16.mxu1 %v4735_v8 }
 0x3c9   : > { %4706 = vmatpush3.bf16.msra.mxu0 %v4705_v61  ;;  %4738 = vmatpush3.bf16.msra.mxu1 %v4737_v62 }
 0x3ca   : > { %4708 = vmatprep.subr.bf16.mxu0 %v4707_v0  ;;  %4740 = vmatprep.subr.bf16.mxu1 %v4739_v1 }
 0x3cd   : > { %4710 = vmatpush3.bf16.msra.mxu0 %v4709_v13  ;;  %4742 = vmatpush3.bf16.msra.mxu1 %v4741_v14 }
 0x3ce   : > { %4712 = vmatprep.subr.bf16.mxu0 %v4711_v47  ;;  %4744 = vmatprep.subr.bf16.mxu1 %v4743_v16 }
 0x3d1   : > { %4714 = vmatpush3.bf16.msra.mxu0 %v4713_v21  ;;  %4746 = vmatpush3.bf16.msra.mxu1 %v4745_v22 }
 0x3d4   : > { %3207 = vmatmul.mubr.f32.vlgmr.msra.gmra.mrb[6].mxu0 %v2869_v24  ;;  %3277 = vmatmul.mubr.f32.vlgmr.msra.gmra.mrb[6].mxu1 %v2871_v25 }
 0x487   : > { %v3487_v32 = vpop.f32.mrb[4].mxu0  ;;  %v3522_v5 = vpop.f32.mrb[4].mxu1 }
 0x488   : > { %v3488_v36 = vpop.f32.mrb[5].mxu0  ;;  %v3523_v26 = vpop.f32.mrb[5].mxu1 }
 0x489   : > { %v3489_v27 = vadd.f32 %v3488_v36, %v3487_v32  ;;  %v3524_v28 = vadd.f32 %v3523_v26, %v3522_v5 }
 0x48b   : > { %v3139_v29 = vadd.f32 %v3524_v28, %v3489_v27 }
 0x4a7   : > { %v3557_v30 = vpop.f32.mrb[6].mxu0  ;;  %v3592_v33 = vpop.f32.mrb[6].mxu1 }
 0x4a8   : > { %v3558_v49 = vpop.f32.mrb[7].mxu0  ;;  %v3593_v53 = vpop.f32.mrb[7].mxu1 }
 0x4a9   : > { %v3559_v34 = vadd.f32 %v3558_v49, %v3557_v30  ;;  %v3594_v35 = vadd.f32 %v3593_v53, %v3592_v33 }
 0x4ab   : > { %v3209_v39 = vadd.f32 %v3559_v34, %v3139_v29 }
 0x4ad   : > { %v3279_v40 = vadd.f32 %v3594_v35, %v3209_v39 }
 0x4af   : > { %3283 = vst [vmem:[%s387_s25] sm:$0xff] %v3279_v40 }
 0x4b0 PF: > { %s24_s23 = sadd.s32 1, %s5050_s23   ;;  %s6684_s26 = sld [smem:[#allocation12_spill]] }
 0x4b1   : > { %p21_p3 = scmp.ge.s32.totalorder %s24_s23, 4   ;;  %s6685_s20 = sld [smem:[#allocation14_spill]] }
 0x4b2   : > { %s6686_s30 = sld [smem:[#allocation13_spill]]  ;;  %s6687_s18 = smov %s5034_s19 }
 0x4b3   : > { %s6689_s21 = smov %s5046_s22  ;;  %23 = sbr.rel (!%p21_p3) target bundleno = 11 (0xb), region = 121 }
 0x4b6   : > { %s6688_s19 = smov %s6684_s26 }
 0x4b8   : > { %s6690_s22 = smov %s6686_s30 }
 0x4ba   :  { %3303 = vsyncpa [#allocation3], 1 }
 0x4bb   :  { %3305 = vsyncpa [#allocation3 + $0x1], 1 }
 0x4bc   :  { %3306 = vsyncpa [#allocation5], 1 }
 0x4bd   :  { %3308 = vsyncpa [#allocation5 + $0x1], 1 }
 0x4be   :  { %3309 = vsyncpa [#allocation8], 1 }
 0x4bf   :  { %3311 = vsyncpa [#allocation8 + $0x1], 1 }

</bundles_post_ra>
